<compile_context>
chip_gen: v7x
topology: tpu7x:2x2x1
jax: 0.10.0
libtpu: 0.0.40
codegen_flags: <defaults>
</compile_context>

<pallas_src>
import jax
import jax.numpy as jnp
from jax.experimental import pallas as pl
from jax.experimental.pallas import tpu as pltpu


def bilinear_fusion_kernel(x1_ref, x2_ref, w1a_ref, w1b_ref, wfused_ref, b1f_ref,
                           w2_ref, b2_ref, alpha_ref, out_ref):
    x1 = x1_ref[...]                      # (TB, D)  compute dtype (bf16)
    x2 = x2_ref[...]                      # (TB, D)
    d = x1.shape[1]

    # ---- fc1 on the x1/x2 slices of the implicit concat ----------------------
    # The bilinear bias is already folded into b1f (= b1 + bb @ w1c) upstream.
    h = (jnp.dot(x1, w1a_ref[...], preferred_element_type=jnp.float32)
         + jnp.dot(x2, w1b_ref[...], preferred_element_type=jnp.float32)
         + b1f_ref[...])                                       # (TB, HP) f32

    # ---- bilinear interaction, fused with fc1's `inter` block ----------------
    #   h += kron @ wfused,  kron[b, i*D + j] = x1[b, i] * x2[b, j]
    # Built in small column chunks (cs columns of x1 at a time) so the LHS stays
    # a few vregs wide -- no (TB, D^2) temp / spills -- and each chunk feeds one
    # accumulating MXU dot (in-place MRB accumulation on v7x).
    # (On v5e, if the VPU becomes binding, compute the chunk in f32 and cast once.)
    cs = min(8, d)
    for c0 in range(0, d, cs):
        cols = min(cs, d - c0)
        kron_chunk = jnp.concatenate(
            [x1[:, i:i + 1] * x2 for i in range(c0, c0 + cols)], axis=-1)
        h += jnp.dot(kron_chunk,
                     wfused_ref[pl.ds(c0 * d, cols * d), :],
                     preferred_element_type=jnp.float32)

    # ---- PReLU (single shared slope, scalar read from SMEM) ------------------
    alpha = alpha_ref[0]
    h = jnp.where(h >= 0, h, alpha * h)
    # TODO(synk): Dropout is identity here (p=0 / inference); no RNG mask emitted.

    # ---- fc2 (hidden K rows and output N lanes zero-padded in the wrapper) ---
    out = jnp.dot(h.astype(w2_ref.dtype), w2_ref[...],
                  preferred_element_type=jnp.float32) + b2_ref[...]
    out_ref[...] = out.astype(out_ref.dtype)


def _round_up(x, m):
    return ((x + m - 1) // m) * m


def _pad_cols(a, n_cols):
    if a.shape[-1] == n_cols:
        return a
    return jnp.pad(a, ((0, 0), (0, n_cols - a.shape[-1])))


def _choose_block_b(B):
    """Largest MXU row tile with >=2 grid steps, preferring an EVEN step count
    so ("parallel",) balances v7x's two TensorCores."""
    candidates = (512, 256, 128, 64, 32, 16, 8)
    even = [c for c in candidates if B >= 2 * c and pl.cdiv(B, c) % 2 == 0]
    if even:
        return even[0]
    two = [c for c in candidates if B >= 2 * c]
    if two:
        return two[0]
    return max(B, 1)


def _vmem_limit_bytes():
    """Generation-aware scoped-VMEM limit: ~3/4 of physical, capped at 96 MiB."""
    try:
        cap = int(pltpu.get_tpu_info().vmem_capacity_bytes)
    except Exception:
        cap = 64 * 1024 * 1024
    return max(16 * 1024 * 1024, min(cap * 3 // 4, 96 * 1024 * 1024))


def bilinear_feature_fusion(x1, x2, params, *, block_b=None,
                            compute_dtype=jnp.bfloat16):
    """x1, x2: (B, D).  Returns (B, output_dim) in x1.dtype."""
    B, D = x1.shape
    orig_dtype = x1.dtype
    out_dim = params["w2"].shape[0]
    HP = _round_up(D, 128)          # lane-dense hidden width (fc1 out / fc2 K)
    OP = _round_up(out_dim, 128)    # lane-dense output width

    if block_b is None:
        block_b = _choose_block_b(B)
    B_pad = _round_up(B, block_b)
    if B_pad != B:
        pad = B_pad - B
        x1 = jnp.pad(x1, ((0, pad), (0, 0)))
        x2 = jnp.pad(x2, ((0, pad), (0, 0)))

    cd = compute_dtype
    x1c = x1.astype(cd)
    x2c = x2.astype(cd)

    # ---- parameter plumbing (plain JAX glue; fusion done once, in f32) -------
    w1 = params["w1"].astype(jnp.float32)                 # (D, 3D)
    w1a = w1[:, 0:D].T                                    # (D, D)   x1 slice
    w1b = w1[:, D:2 * D].T                                # (D, D)   x2 slice
    w1c = w1[:, 2 * D:3 * D].T                            # (D, D)   inter slice
    # Bilinear weight W[o, i, j] -> W_flat[i*D + j, o]; fold with w1c.
    wflat = jnp.transpose(params["wb"].astype(jnp.float32), (1, 2, 0)).reshape(D * D, D)
    wfused = wflat @ w1c                                  # (D*D, D)
    b1f = (params["b1"].astype(jnp.float32)
           + params["bb"].astype(jnp.float32) @ w1c).reshape(1, D)

    # Zero-pad only the N / hidden dims to lane-dense widths (K dims untouched).
    w1a_p = _pad_cols(w1a, HP).astype(cd)
    w1b_p = _pad_cols(w1b, HP).astype(cd)
    wfused_p = _pad_cols(wfused, HP).astype(cd)
    b1f_p = _pad_cols(b1f, HP)                                            # f32
    w2_p = jnp.zeros((HP, OP), cd).at[:D, :out_dim].set(params["w2"].T.astype(cd))
    b2_p = jnp.zeros((1, OP), jnp.float32).at[:, :out_dim].set(
        params["b2"].reshape(1, out_dim).astype(jnp.float32))
    # PReLU() default is a single shared slope; keep it as an SMEM scalar.
    alpha = params["alpha"].reshape(-1)[:1].astype(jnp.float32)

    grid = (B_pad // block_b,)
    cd_bytes = jnp.dtype(cd).itemsize
    flops = (2 * B_pad * D * D * HP          # fused bilinear (kron @ wfused)
             + 2 * 2 * B_pad * D * HP        # fc1 x1/x2 slices
             + 2 * B_pad * HP * OP)          # fc2
    bytes_accessed = (2 * B_pad * D * cd_bytes                                # x1, x2
                      + (D * D * HP + 2 * D * HP + HP * OP) * cd_bytes        # weights
                      + (HP + OP) * 4                                         # biases
                      + B_pad * OP * jnp.dtype(orig_dtype).itemsize)          # out

    def _run(weight_kwargs):
        def _wspec(shape):
            return pl.BlockSpec(shape, lambda b: (0, 0), **weight_kwargs)

        return pl.pallas_call(
            bilinear_fusion_kernel,
            out_shape=jax.ShapeDtypeStruct((B_pad, OP), orig_dtype),
            grid_spec=pltpu.PrefetchScalarGridSpec(
                num_scalar_prefetch=0,
                grid=grid,
                in_specs=[
                    pl.BlockSpec((block_b, D), lambda b: (b, 0)),       # x1
                    pl.BlockSpec((block_b, D), lambda b: (b, 0)),       # x2
                    _wspec((D, HP)),                                    # fc1 W (x1 part)
                    _wspec((D, HP)),                                    # fc1 W (x2 part)
                    _wspec((D * D, HP)),                                # wflat @ w1c
                    _wspec((1, HP)),                                    # fused fc1 bias
                    _wspec((HP, OP)),                                   # fc2 W (padded)
                    _wspec((1, OP)),                                    # fc2 bias (padded)
                    pl.BlockSpec(memory_space=pltpu.MemorySpace.SMEM),  # PReLU alpha
                ],
                out_specs=pl.BlockSpec((block_b, OP), lambda b: (b, 0)),
            ),
            compiler_params=pltpu.CompilerParams(
                dimension_semantics=("parallel",),
                vmem_limit_bytes=_vmem_limit_bytes()),
            cost_estimate=pl.CostEstimate(flops=flops, transcendentals=0,
                                          bytes_accessed=bytes_accessed),
        )(x1c, x2c, w1a_p, w1b_p, wfused_p, b1f_p, w2_p, b2_p, alpha)

    try:
        # Grid-invariant weights: single VMEM buffer (no pointless double-buffering).
        out = _run({"pipeline_mode": pl.Buffered(1)})
    except Exception:
        # Fallback for JAX versions without pipeline_mode / Buffered(1) support.
        out = _run({})

    return out[:B, :out_dim]


def reference(x1, x2, p):
    """Pure-JAX (f32) reference matching the PyTorch forward exactly."""
    inter = jnp.einsum("bi,oij,bj->bo", x1, p["wb"], x2) + p["bb"]
    cat = jnp.concatenate([x1, x2, inter], axis=-1)
    h = cat @ p["w1"].T + p["b1"]
    h = jnp.where(h >= 0, h, p["alpha"] * h)          # PReLU (single shared alpha)
    return h @ p["w2"].T + p["b2"]


if __name__ == "__main__":
    B, D, OUT = 16, 32, 16

    key = jax.random.PRNGKey(0)
    ks = jax.random.split(key, 8)
    params = {
        # nn.Bilinear(D, D, D): weight (D, D, D), bias (D,)
        "wb": jax.random.normal(ks[0], (D, D, D), jnp.float32) * 0.05,
        "bb": jax.random.normal(ks[1], (D,), jnp.float32) * 0.05,
        # nn.Linear(3D, D)
        "w1": jax.random.normal(ks[2], (D, 3 * D), jnp.float32) * 0.05,
        "b1": jax.random.normal(ks[3], (D,), jnp.float32) * 0.05,
        # PReLU() default single parameter init = 0.25
        "alpha": jnp.full((1,), 0.25, jnp.float32),
        # nn.Linear(D, OUT)
        "w2": jax.random.normal(ks[4], (OUT, D), jnp.float32) * 0.05,
        "b2": jax.random.normal(ks[5], (OUT,), jnp.float32) * 0.05,
    }
    x1 = jax.random.normal(ks[6], (B, D), jnp.float32)
    x2 = jax.random.normal(ks[7], (B, D), jnp.float32)

    out = bilinear_feature_fusion(x1, x2, params)     # bf16 MXU operands, f32 accum
    out = jax.block_until_ready(out)

    ref = reference(x1, x2, params)
    assert out.shape == (B, OUT), out.shape
    # Tolerance loosened for bf16 matmul operands (f32 accumulation).
    assert jnp.allclose(out, ref, atol=2e-2, rtol=2e-2), (
        float(jnp.max(jnp.abs(out - ref))))

    print("KERNEL_OK")
</pallas_src>

<mosaic_0001>
module attributes {stable_mosaic.version = 11 : i64} {
  func.func @bilinear_fusion_kernel(%arg0: i32, %arg1: memref<8x32xbf16, #tpu.memory_space<vmem>>, %arg2: memref<8x32xbf16, #tpu.memory_space<vmem>>, %arg3: memref<32x128xbf16, #tpu.memory_space<vmem>>, %arg4: memref<32x128xbf16, #tpu.memory_space<vmem>>, %arg5: memref<1024x128xbf16, #tpu.memory_space<vmem>>, %arg6: memref<1x128xf32, #tpu.memory_space<vmem>>, %arg7: memref<128x128xbf16, #tpu.memory_space<vmem>>, %arg8: memref<1x128xf32, #tpu.memory_space<vmem>>, %arg9: memref<1xf32, #tpu.memory_space<smem>>, %arg10: memref<8x128xf32, #tpu.memory_space<vmem>>) attributes {dimension_semantics = [#tpu.dimension_semantics<parallel>], iteration_bounds = array<i64: 2>, scalar_prefetch = 0 : i64, scratch_operands = 0 : i64, tpu.core_type = #tpu.core_type<tc>, window_params = [{transform_indices = @transform_0, window_bounds = array<i64: 8, 32>}, {transform_indices = @transform_1, window_bounds = array<i64: 8, 32>}, {pipeline_mode = #tpu.pipeline_mode<synchronous>, transform_indices = @transform_2, window_bounds = array<i64: 32, 128>}, {pipeline_mode = #tpu.pipeline_mode<synchronous>, transform_indices = @transform_3, window_bounds = array<i64: 32, 128>}, {pipeline_mode = #tpu.pipeline_mode<synchronous>, transform_indices = @transform_4, window_bounds = array<i64: 1024, 128>}, {pipeline_mode = #tpu.pipeline_mode<synchronous>, transform_indices = @transform_5, window_bounds = array<i64: 1, 128>}, {pipeline_mode = #tpu.pipeline_mode<synchronous>, transform_indices = @transform_6, window_bounds = array<i64: 128, 128>}, {pipeline_mode = #tpu.pipeline_mode<synchronous>, transform_indices = @transform_7, window_bounds = array<i64: 1, 128>}, {transform_indices = @transform_8, window_bounds = array<i64: 1>}, {transform_indices = @transform_9, window_bounds = array<i64: 8, 128>}]} {
    %c0 = arith.constant 0 : index
    %c0_0 = arith.constant 0 : index
    %0 = vector.load %arg1[%c0, %c0_0] : memref<8x32xbf16, #tpu.memory_space<vmem>>, vector<8x32xbf16>
    %c0_1 = arith.constant 0 : index
    %c0_2 = arith.constant 0 : index
    %1 = vector.load %arg2[%c0_1, %c0_2] : memref<8x32xbf16, #tpu.memory_space<vmem>>, vector<8x32xbf16>
    %c0_3 = arith.constant 0 : index
    %c0_4 = arith.constant 0 : index
    %2 = vector.load %arg3[%c0_3, %c0_4] : memref<32x128xbf16, #tpu.memory_space<vmem>>, vector<32x128xbf16>
    %cst = arith.constant dense<0.000000e+00> : vector<8x128xf32>
    %3 = tpu.matmul %0, %2, %cst {dimension_numbers = #tpu.dot_dimension_numbers<[1], [0], [0], [1], [0, 0, 1, 1], [], []>} : vector<8x32xbf16>, vector<32x128xbf16>, vector<8x128xf32> -> vector<8x128xf32>
    %c0_5 = arith.constant 0 : index
    %c0_6 = arith.constant 0 : index
    %4 = vector.load %arg4[%c0_5, %c0_6] : memref<32x128xbf16, #tpu.memory_space<vmem>>, vector<32x128xbf16>
    %cst_7 = arith.constant dense<0.000000e+00> : vector<8x128xf32>
    %5 = tpu.matmul %1, %4, %cst_7 {dimension_numbers = #tpu.dot_dimension_numbers<[1], [0], [0], [1], [0, 0, 1, 1], [], []>} : vector<8x32xbf16>, vector<32x128xbf16>, vector<8x128xf32> -> vector<8x128xf32>
    %6 = arith.addf %3, %5 : vector<8x128xf32>
    %c0_8 = arith.constant 0 : index
    %c0_9 = arith.constant 0 : index
    %7 = vector.load %arg6[%c0_8, %c0_9] : memref<1x128xf32, #tpu.memory_space<vmem>>, vector<1x128xf32>
    %8 = vector.broadcast %7 : vector<1x128xf32> to vector<8x128xf32>
    %9 = arith.addf %6, %8 : vector<8x128xf32>
    %10 = vector.extract_strided_slice %0 {offsets = [0, 0], sizes = [8, 1], strides = [1, 1]} : vector<8x32xbf16> to vector<8x1xbf16>
    %11 = vector.broadcast %10 : vector<8x1xbf16> to vector<8x32xbf16>
    %12 = arith.mulf %11, %1 : vector<8x32xbf16>
    %13 = vector.extract_strided_slice %0 {offsets = [0, 1], sizes = [8, 1], strides = [1, 1]} : vector<8x32xbf16> to vector<8x1xbf16>
    %14 = vector.broadcast %13 : vector<8x1xbf16> to vector<8x32xbf16>
    %15 = arith.mulf %14, %1 : vector<8x32xbf16>
    %16 = vector.extract_strided_slice %0 {offsets = [0, 2], sizes = [8, 1], strides = [1, 1]} : vector<8x32xbf16> to vector<8x1xbf16>
    %17 = vector.broadcast %16 : vector<8x1xbf16> to vector<8x32xbf16>
    %18 = arith.mulf %17, %1 : vector<8x32xbf16>
    %19 = vector.extract_strided_slice %0 {offsets = [0, 3], sizes = [8, 1], strides = [1, 1]} : vector<8x32xbf16> to vector<8x1xbf16>
    %20 = vector.broadcast %19 : vector<8x1xbf16> to vector<8x32xbf16>
    %21 = arith.mulf %20, %1 : vector<8x32xbf16>
    %22 = vector.extract_strided_slice %0 {offsets = [0, 4], sizes = [8, 1], strides = [1, 1]} : vector<8x32xbf16> to vector<8x1xbf16>
    %23 = vector.broadcast %22 : vector<8x1xbf16> to vector<8x32xbf16>
    %24 = arith.mulf %23, %1 : vector<8x32xbf16>
    %25 = vector.extract_strided_slice %0 {offsets = [0, 5], sizes = [8, 1], strides = [1, 1]} : vector<8x32xbf16> to vector<8x1xbf16>
    %26 = vector.broadcast %25 : vector<8x1xbf16> to vector<8x32xbf16>
    %27 = arith.mulf %26, %1 : vector<8x32xbf16>
    %28 = vector.extract_strided_slice %0 {offsets = [0, 6], sizes = [8, 1], strides = [1, 1]} : vector<8x32xbf16> to vector<8x1xbf16>
    %29 = vector.broadcast %28 : vector<8x1xbf16> to vector<8x32xbf16>
    %30 = arith.mulf %29, %1 : vector<8x32xbf16>
    %31 = vector.extract_strided_slice %0 {offsets = [0, 7], sizes = [8, 1], strides = [1, 1]} : vector<8x32xbf16> to vector<8x1xbf16>
    %32 = vector.broadcast %31 : vector<8x1xbf16> to vector<8x32xbf16>
    %33 = arith.mulf %32, %1 : vector<8x32xbf16>
    %34 = tpu.concatenate %12, %15, %18, %21, %24, %27, %30, %33 in 1 : vector<8x32xbf16>, vector<8x32xbf16>, vector<8x32xbf16>, vector<8x32xbf16>, vector<8x32xbf16>, vector<8x32xbf16>, vector<8x32xbf16>, vector<8x32xbf16> -> vector<8x256xbf16>
    %c0_10 = arith.constant 0 : index
    %c0_11 = arith.constant 0 : index
    %35 = vector.load %arg5[%c0_10, %c0_11] : memref<1024x128xbf16, #tpu.memory_space<vmem>>, vector<256x128xbf16>
    %cst_12 = arith.constant dense<0.000000e+00> : vector<8x128xf32>
    %36 = tpu.matmul %34, %35, %cst_12 {dimension_numbers = #tpu.dot_dimension_numbers<[1], [0], [0], [1], [0, 0, 1, 1], [], []>} : vector<8x256xbf16>, vector<256x128xbf16>, vector<8x128xf32> -> vector<8x128xf32>
    %37 = arith.addf %9, %36 : vector<8x128xf32>
    %38 = vector.extract_strided_slice %0 {offsets = [0, 8], sizes = [8, 1], strides = [1, 1]} : vector<8x32xbf16> to vector<8x1xbf16>
    %39 = vector.broadcast %38 : vector<8x1xbf16> to vector<8x32xbf16>
    %40 = arith.mulf %39, %1 : vector<8x32xbf16>
    %41 = vector.extract_strided_slice %0 {offsets = [0, 9], sizes = [8, 1], strides = [1, 1]} : vector<8x32xbf16> to vector<8x1xbf16>
    %42 = vector.broadcast %41 : vector<8x1xbf16> to vector<8x32xbf16>
    %43 = arith.mulf %42, %1 : vector<8x32xbf16>
    %44 = vector.extract_strided_slice %0 {offsets = [0, 10], sizes = [8, 1], strides = [1, 1]} : vector<8x32xbf16> to vector<8x1xbf16>
    %45 = vector.broadcast %44 : vector<8x1xbf16> to vector<8x32xbf16>
    %46 = arith.mulf %45, %1 : vector<8x32xbf16>
    %47 = vector.extract_strided_slice %0 {offsets = [0, 11], sizes = [8, 1], strides = [1, 1]} : vector<8x32xbf16> to vector<8x1xbf16>
    %48 = vector.broadcast %47 : vector<8x1xbf16> to vector<8x32xbf16>
    %49 = arith.mulf %48, %1 : vector<8x32xbf16>
    %50 = vector.extract_strided_slice %0 {offsets = [0, 12], sizes = [8, 1], strides = [1, 1]} : vector<8x32xbf16> to vector<8x1xbf16>
    %51 = vector.broadcast %50 : vector<8x1xbf16> to vector<8x32xbf16>
    %52 = arith.mulf %51, %1 : vector<8x32xbf16>
    %53 = vector.extract_strided_slice %0 {offsets = [0, 13], sizes = [8, 1], strides = [1, 1]} : vector<8x32xbf16> to vector<8x1xbf16>
    %54 = vector.broadcast %53 : vector<8x1xbf16> to vector<8x32xbf16>
    %55 = arith.mulf %54, %1 : vector<8x32xbf16>
    %56 = vector.extract_strided_slice %0 {offsets = [0, 14], sizes = [8, 1], strides = [1, 1]} : vector<8x32xbf16> to vector<8x1xbf16>
    %57 = vector.broadcast %56 : vector<8x1xbf16> to vector<8x32xbf16>
    %58 = arith.mulf %57, %1 : vector<8x32xbf16>
    %59 = vector.extract_strided_slice %0 {offsets = [0, 15], sizes = [8, 1], strides = [1, 1]} : vector<8x32xbf16> to vector<8x1xbf16>
    %60 = vector.broadcast %59 : vector<8x1xbf16> to vector<8x32xbf16>
    %61 = arith.mulf %60, %1 : vector<8x32xbf16>
    %62 = tpu.concatenate %40, %43, %46, %49, %52, %55, %58, %61 in 1 : vector<8x32xbf16>, vector<8x32xbf16>, vector<8x32xbf16>, vector<8x32xbf16>, vector<8x32xbf16>, vector<8x32xbf16>, vector<8x32xbf16>, vector<8x32xbf16> -> vector<8x256xbf16>
    %c256 = arith.constant 256 : index
    %c0_13 = arith.constant 0 : index
    %63 = vector.load %arg5[%c256, %c0_13] : memref<1024x128xbf16, #tpu.memory_space<vmem>>, vector<256x128xbf16>
    %cst_14 = arith.constant dense<0.000000e+00> : vector<8x128xf32>
    %64 = tpu.matmul %62, %63, %cst_14 {dimension_numbers = #tpu.dot_dimension_numbers<[1], [0], [0], [1], [0, 0, 1, 1], [], []>} : vector<8x256xbf16>, vector<256x128xbf16>, vector<8x128xf32> -> vector<8x128xf32>
    %65 = arith.addf %37, %64 : vector<8x128xf32>
    %66 = vector.extract_strided_slice %0 {offsets = [0, 16], sizes = [8, 1], strides = [1, 1]} : vector<8x32xbf16> to vector<8x1xbf16>
    %67 = vector.broadcast %66 : vector<8x1xbf16> to vector<8x32xbf16>
    %68 = arith.mulf %67, %1 : vector<8x32xbf16>
    %69 = vector.extract_strided_slice %0 {offsets = [0, 17], sizes = [8, 1], strides = [1, 1]} : vector<8x32xbf16> to vector<8x1xbf16>
    %70 = vector.broadcast %69 : vector<8x1xbf16> to vector<8x32xbf16>
    %71 = arith.mulf %70, %1 : vector<8x32xbf16>
    %72 = vector.extract_strided_slice %0 {offsets = [0, 18], sizes = [8, 1], strides = [1, 1]} : vector<8x32xbf16> to vector<8x1xbf16>
    %73 = vector.broadcast %72 : vector<8x1xbf16> to vector<8x32xbf16>
    %74 = arith.mulf %73, %1 : vector<8x32xbf16>
    %75 = vector.extract_strided_slice %0 {offsets = [0, 19], sizes = [8, 1], strides = [1, 1]} : vector<8x32xbf16> to vector<8x1xbf16>
    %76 = vector.broadcast %75 : vector<8x1xbf16> to vector<8x32xbf16>
    %77 = arith.mulf %76, %1 : vector<8x32xbf16>
    %78 = vector.extract_strided_slice %0 {offsets = [0, 20], sizes = [8, 1], strides = [1, 1]} : vector<8x32xbf16> to vector<8x1xbf16>
    %79 = vector.broadcast %78 : vector<8x1xbf16> to vector<8x32xbf16>
    %80 = arith.mulf %79, %1 : vector<8x32xbf16>
    %81 = vector.extract_strided_slice %0 {offsets = [0, 21], sizes = [8, 1], strides = [1, 1]} : vector<8x32xbf16> to vector<8x1xbf16>
    %82 = vector.broadcast %81 : vector<8x1xbf16> to vector<8x32xbf16>
    %83 = arith.mulf %82, %1 : vector<8x32xbf16>
    %84 = vector.extract_strided_slice %0 {offsets = [0, 22], sizes = [8, 1], strides = [1, 1]} : vector<8x32xbf16> to vector<8x1xbf16>
    %85 = vector.broadcast %84 : vector<8x1xbf16> to vector<8x32xbf16>
    %86 = arith.mulf %85, %1 : vector<8x32xbf16>
    %87 = vector.extract_strided_slice %0 {offsets = [0, 23], sizes = [8, 1], strides = [1, 1]} : vector<8x32xbf16> to vector<8x1xbf16>
    %88 = vector.broadcast %87 : vector<8x1xbf16> to vector<8x32xbf16>
    %89 = arith.mulf %88, %1 : vector<8x32xbf16>
    %90 = tpu.concatenate %68, %71, %74, %77, %80, %83, %86, %89 in 1 : vector<8x32xbf16>, vector<8x32xbf16>, vector<8x32xbf16>, vector<8x32xbf16>, vector<8x32xbf16>, vector<8x32xbf16>, vector<8x32xbf16>, vector<8x32xbf16> -> vector<8x256xbf16>
    %c512 = arith.constant 512 : index
    %c0_15 = arith.constant 0 : index
    %91 = vector.load %arg5[%c512, %c0_15] : memref<1024x128xbf16, #tpu.memory_space<vmem>>, vector<256x128xbf16>
    %cst_16 = arith.constant dense<0.000000e+00> : vector<8x128xf32>
    %92 = tpu.matmul %90, %91, %cst_16 {dimension_numbers = #tpu.dot_dimension_numbers<[1], [0], [0], [1], [0, 0, 1, 1], [], []>} : vector<8x256xbf16>, vector<256x128xbf16>, vector<8x128xf32> -> vector<8x128xf32>
    %93 = arith.addf %65, %92 : vector<8x128xf32>
    %94 = vector.extract_strided_slice %0 {offsets = [0, 24], sizes = [8, 1], strides = [1, 1]} : vector<8x32xbf16> to vector<8x1xbf16>
    %95 = vector.broadcast %94 : vector<8x1xbf16> to vector<8x32xbf16>
    %96 = arith.mulf %95, %1 : vector<8x32xbf16>
    %97 = vector.extract_strided_slice %0 {offsets = [0, 25], sizes = [8, 1], strides = [1, 1]} : vector<8x32xbf16> to vector<8x1xbf16>
    %98 = vector.broadcast %97 : vector<8x1xbf16> to vector<8x32xbf16>
    %99 = arith.mulf %98, %1 : vector<8x32xbf16>
    %100 = vector.extract_strided_slice %0 {offsets = [0, 26], sizes = [8, 1], strides = [1, 1]} : vector<8x32xbf16> to vector<8x1xbf16>
    %101 = vector.broadcast %100 : vector<8x1xbf16> to vector<8x32xbf16>
    %102 = arith.mulf %101, %1 : vector<8x32xbf16>
    %103 = vector.extract_strided_slice %0 {offsets = [0, 27], sizes = [8, 1], strides = [1, 1]} : vector<8x32xbf16> to vector<8x1xbf16>
    %104 = vector.broadcast %103 : vector<8x1xbf16> to vector<8x32xbf16>
    %105 = arith.mulf %104, %1 : vector<8x32xbf16>
    %106 = vector.extract_strided_slice %0 {offsets = [0, 28], sizes = [8, 1], strides = [1, 1]} : vector<8x32xbf16> to vector<8x1xbf16>
    %107 = vector.broadcast %106 : vector<8x1xbf16> to vector<8x32xbf16>
    %108 = arith.mulf %107, %1 : vector<8x32xbf16>
    %109 = vector.extract_strided_slice %0 {offsets = [0, 29], sizes = [8, 1], strides = [1, 1]} : vector<8x32xbf16> to vector<8x1xbf16>
    %110 = vector.broadcast %109 : vector<8x1xbf16> to vector<8x32xbf16>
    %111 = arith.mulf %110, %1 : vector<8x32xbf16>
    %112 = vector.extract_strided_slice %0 {offsets = [0, 30], sizes = [8, 1], strides = [1, 1]} : vector<8x32xbf16> to vector<8x1xbf16>
    %113 = vector.broadcast %112 : vector<8x1xbf16> to vector<8x32xbf16>
    %114 = arith.mulf %113, %1 : vector<8x32xbf16>
    %115 = vector.extract_strided_slice %0 {offsets = [0, 31], sizes = [8, 1], strides = [1, 1]} : vector<8x32xbf16> to vector<8x1xbf16>
    %116 = vector.broadcast %115 : vector<8x1xbf16> to vector<8x32xbf16>
    %117 = arith.mulf %116, %1 : vector<8x32xbf16>
    %118 = tpu.concatenate %96, %99, %102, %105, %108, %111, %114, %117 in 1 : vector<8x32xbf16>, vector<8x32xbf16>, vector<8x32xbf16>, vector<8x32xbf16>, vector<8x32xbf16>, vector<8x32xbf16>, vector<8x32xbf16>, vector<8x32xbf16> -> vector<8x256xbf16>
    %c768 = arith.constant 768 : index
    %c0_17 = arith.constant 0 : index
    %119 = vector.load %arg5[%c768, %c0_17] : memref<1024x128xbf16, #tpu.memory_space<vmem>>, vector<256x128xbf16>
    %cst_18 = arith.constant dense<0.000000e+00> : vector<8x128xf32>
    %120 = tpu.matmul %118, %119, %cst_18 {dimension_numbers = #tpu.dot_dimension_numbers<[1], [0], [0], [1], [0, 0, 1, 1], [], []>} : vector<8x256xbf16>, vector<256x128xbf16>, vector<8x128xf32> -> vector<8x128xf32>
    %121 = arith.addf %93, %120 : vector<8x128xf32>
    %c0_19 = arith.constant 0 : index
    %122 = memref.load %arg9[%c0_19] : memref<1xf32, #tpu.memory_space<smem>>
    %cst_20 = arith.constant 0.000000e+00 : f32
    %123 = vector.broadcast %cst_20 : f32 to vector<8x128xf32>
    %124 = arith.cmpf oge, %121, %123 : vector<8x128xf32>
    %125 = vector.broadcast %122 : f32 to vector<8x128xf32>
    %126 = arith.mulf %125, %121 : vector<8x128xf32>
    %127 = arith.select %124, %121, %126 : vector<8x128xi1>, vector<8x128xf32>
    %128 = arith.truncf %127 : vector<8x128xf32> to vector<8x128xbf16>
    %c0_21 = arith.constant 0 : index
    %c0_22 = arith.constant 0 : index
    %129 = vector.load %arg7[%c0_21, %c0_22] : memref<128x128xbf16, #tpu.memory_space<vmem>>, vector<128x128xbf16>
    %cst_23 = arith.constant dense<0.000000e+00> : vector<8x128xf32>
    %130 = tpu.matmul %128, %129, %cst_23 {dimension_numbers = #tpu.dot_dimension_numbers<[1], [0], [0], [1], [0, 0, 1, 1], [], []>} : vector<8x128xbf16>, vector<128x128xbf16>, vector<8x128xf32> -> vector<8x128xf32>
    %c0_24 = arith.constant 0 : index
    %c0_25 = arith.constant 0 : index
    %131 = vector.load %arg8[%c0_24, %c0_25] : memref<1x128xf32, #tpu.memory_space<vmem>>, vector<1x128xf32>
    %132 = vector.broadcast %131 : vector<1x128xf32> to vector<8x128xf32>
    %133 = arith.addf %130, %132 : vector<8x128xf32>
    %c0_26 = arith.constant 0 : index
    %c0_27 = arith.constant 0 : index
    %134 = vector.load %arg10[%c0_26, %c0_27] : memref<8x128xf32, #tpu.memory_space<vmem>>, vector<8x128xf32>
    tpu.vector_store %arg10[%c0_26, %c0_27], %133 {strides = array<i32>} : memref<8x128xf32, #tpu.memory_space<vmem>>, vector<8x128xf32>,
    return
  }
  func.func @transform_0(%arg0: i32) -> (i32, i32) {
    %c0_i32 = arith.constant 0 : i32
    %c0_i32_0 = arith.constant 0 : i32
    return %arg0, %c0_i32 : i32, i32
  }
  func.func @transform_1(%arg0: i32) -> (i32, i32) {
    %c0_i32 = arith.constant 0 : i32
    %c0_i32_0 = arith.constant 0 : i32
    return %arg0, %c0_i32 : i32, i32
  }
  func.func @transform_2(%arg0: i32) -> (i32, i32) {
    %c0_i32 = arith.constant 0 : i32
    %c0_i32_0 = arith.constant 0 : i32
    %c0_i32_1 = arith.constant 0 : i32
    return %c0_i32, %c0_i32_0 : i32, i32
  }
  func.func @transform_3(%arg0: i32) -> (i32, i32) {
    %c0_i32 = arith.constant 0 : i32
    %c0_i32_0 = arith.constant 0 : i32
    %c0_i32_1 = arith.constant 0 : i32
    return %c0_i32, %c0_i32_0 : i32, i32
  }
  func.func @transform_4(%arg0: i32) -> (i32, i32) {
    %c0_i32 = arith.constant 0 : i32
    %c0_i32_0 = arith.constant 0 : i32
    %c0_i32_1 = arith.constant 0 : i32
    return %c0_i32, %c0_i32_0 : i32, i32
  }
  func.func @transform_5(%arg0: i32) -> (i32, i32) {
    %c0_i32 = arith.constant 0 : i32
    %c0_i32_0 = arith.constant 0 : i32
    %c0_i32_1 = arith.constant 0 : i32
    return %c0_i32, %c0_i32_0 : i32, i32
  }
  func.func @transform_6(%arg0: i32) -> (i32, i32) {
    %c0_i32 = arith.constant 0 : i32
    %c0_i32_0 = arith.constant 0 : i32
    %c0_i32_1 = arith.constant 0 : i32
    return %c0_i32, %c0_i32_0 : i32, i32
  }
  func.func @transform_7(%arg0: i32) -> (i32, i32) {
    %c0_i32 = arith.constant 0 : i32
    %c0_i32_0 = arith.constant 0 : i32
    %c0_i32_1 = arith.constant 0 : i32
    return %c0_i32, %c0_i32_0 : i32, i32
  }
  func.func @transform_8(%arg0: i32) -> i32 {
    %c0_i32 = arith.constant 0 : i32
    %c0_i32_0 = arith.constant 0 : i32
    return %c0_i32 : i32
  }
  func.func @transform_9(%arg0: i32) -> (i32, i32) {
    %c0_i32 = arith.constant 0 : i32
    %c0_i32_0 = arith.constant 0 : i32
    return %arg0, %c0_i32 : i32, i32
  }
}

module attributes {stable_mosaic.version = 11 : i64} {
  func.func @bilinear_fusion_kernel(%arg0: i32, %arg1: memref<8x32xbf16, #tpu.memory_space<vmem>>, %arg2: memref<8x32xbf16, #tpu.memory_space<vmem>>, %arg3: memref<32x128xbf16, #tpu.memory_space<vmem>>, %arg4: memref<32x128xbf16, #tpu.memory_space<vmem>>, %arg5: memref<1024x128xbf16, #tpu.memory_space<vmem>>, %arg6: memref<1x128xf32, #tpu.memory_space<vmem>>, %arg7: memref<128x128xbf16, #tpu.memory_space<vmem>>, %arg8: memref<1x128xf32, #tpu.memory_space<vmem>>, %arg9: memref<1xf32, #tpu.memory_space<smem>>, %arg10: memref<8x128xf32, #tpu.memory_space<vmem>>) attributes {dimension_semantics = [#tpu.dimension_semantics<parallel>], iteration_bounds = array<i64: 2>, scalar_prefetch = 0 : i64, scratch_operands = 0 : i64, tpu.core_type = #tpu.core_type<tc>, window_params = [{transform_indices = @transform_0, window_bounds = array<i64: 8, 32>}, {transform_indices = @transform_1, window_bounds = array<i64: 8, 32>}, {pipeline_mode = #tpu.pipeline_mode<synchronous>, transform_indices = @transform_2, window_bounds = array<i64: 32, 128>}, {pipeline_mode = #tpu.pipeline_mode<synchronous>, transform_indices = @transform_3, window_bounds = array<i64: 32, 128>}, {pipeline_mode = #tpu.pipeline_mode<synchronous>, transform_indices = @transform_4, window_bounds = array<i64: 1024, 128>}, {pipeline_mode = #tpu.pipeline_mode<synchronous>, transform_indices = @transform_5, window_bounds = array<i64: 1, 128>}, {pipeline_mode = #tpu.pipeline_mode<synchronous>, transform_indices = @transform_6, window_bounds = array<i64: 128, 128>}, {pipeline_mode = #tpu.pipeline_mode<synchronous>, transform_indices = @transform_7, window_bounds = array<i64: 1, 128>}, {transform_indices = @transform_8, window_bounds = array<i64: 1>}, {transform_indices = @transform_9, window_bounds = array<i64: 8, 128>}]} {
    %c0 = arith.constant 0 : index
    %c0_0 = arith.constant 0 : index
    %0 = vector.load %arg1[%c0, %c0_0] : memref<8x32xbf16, #tpu.memory_space<vmem>>, vector<8x32xbf16>
    %c0_1 = arith.constant 0 : index
    %c0_2 = arith.constant 0 : index
    %1 = vector.load %arg2[%c0_1, %c0_2] : memref<8x32xbf16, #tpu.memory_space<vmem>>, vector<8x32xbf16>
    %c0_3 = arith.constant 0 : index
    %c0_4 = arith.constant 0 : index
    %2 = vector.load %arg3[%c0_3, %c0_4] : memref<32x128xbf16, #tpu.memory_space<vmem>>, vector<32x128xbf16>
    %cst = arith.constant dense<0.000000e+00> : vector<8x128xf32>
    %3 = tpu.matmul %0, %2, %cst {dimension_numbers = #tpu.dot_dimension_numbers<[1], [0], [0], [1], [0, 0, 1, 1], [], []>} : vector<8x32xbf16>, vector<32x128xbf16>, vector<8x128xf32> -> vector<8x128xf32>
    %c0_5 = arith.constant 0 : index
    %c0_6 = arith.constant 0 : index
    %4 = vector.load %arg4[%c0_5, %c0_6] : memref<32x128xbf16, #tpu.memory_space<vmem>>, vector<32x128xbf16>
    %cst_7 = arith.constant dense<0.000000e+00> : vector<8x128xf32>
    %5 = tpu.matmul %1, %4, %cst_7 {dimension_numbers = #tpu.dot_dimension_numbers<[1], [0], [0], [1], [0, 0, 1, 1], [], []>} : vector<8x32xbf16>, vector<32x128xbf16>, vector<8x128xf32> -> vector<8x128xf32>
    %6 = arith.addf %3, %5 : vector<8x128xf32>
    %c0_8 = arith.constant 0 : index
    %c0_9 = arith.constant 0 : index
    %7 = vector.load %arg6[%c0_8, %c0_9] : memref<1x128xf32, #tpu.memory_space<vmem>>, vector<1x128xf32>
    %8 = vector.broadcast %7 : vector<1x128xf32> to vector<8x128xf32>
    %9 = arith.addf %6, %8 : vector<8x128xf32>
    %10 = vector.extract_strided_slice %0 {offsets = [0, 0], sizes = [8, 1], strides = [1, 1]} : vector<8x32xbf16> to vector<8x1xbf16>
    %11 = vector.broadcast %10 : vector<8x1xbf16> to vector<8x32xbf16>
    %12 = arith.mulf %11, %1 : vector<8x32xbf16>
    %13 = vector.extract_strided_slice %0 {offsets = [0, 1], sizes = [8, 1], strides = [1, 1]} : vector<8x32xbf16> to vector<8x1xbf16>
    %14 = vector.broadcast %13 : vector<8x1xbf16> to vector<8x32xbf16>
    %15 = arith.mulf %14, %1 : vector<8x32xbf16>
    %16 = vector.extract_strided_slice %0 {offsets = [0, 2], sizes = [8, 1], strides = [1, 1]} : vector<8x32xbf16> to vector<8x1xbf16>
    %17 = vector.broadcast %16 : vector<8x1xbf16> to vector<8x32xbf16>
    %18 = arith.mulf %17, %1 : vector<8x32xbf16>
    %19 = vector.extract_strided_slice %0 {offsets = [0, 3], sizes = [8, 1], strides = [1, 1]} : vector<8x32xbf16> to vector<8x1xbf16>
    %20 = vector.broadcast %19 : vector<8x1xbf16> to vector<8x32xbf16>
    %21 = arith.mulf %20, %1 : vector<8x32xbf16>
    %22 = vector.extract_strided_slice %0 {offsets = [0, 4], sizes = [8, 1], strides = [1, 1]} : vector<8x32xbf16> to vector<8x1xbf16>
    %23 = vector.broadcast %22 : vector<8x1xbf16> to vector<8x32xbf16>
    %24 = arith.mulf %23, %1 : vector<8x32xbf16>
    %25 = vector.extract_strided_slice %0 {offsets = [0, 5], sizes = [8, 1], strides = [1, 1]} : vector<8x32xbf16> to vector<8x1xbf16>
    %26 = vector.broadcast %25 : vector<8x1xbf16> to vector<8x32xbf16>
    %27 = arith.mulf %26, %1 : vector<8x32xbf16>
    %28 = vector.extract_strided_slice %0 {offsets = [0, 6], sizes = [8, 1], strides = [1, 1]} : vector<8x32xbf16> to vector<8x1xbf16>
    %29 = vector.broadcast %28 : vector<8x1xbf16> to vector<8x32xbf16>
    %30 = arith.mulf %29, %1 : vector<8x32xbf16>
    %31 = vector.extract_strided_slice %0 {offsets = [0, 7], sizes = [8, 1], strides = [1, 1]} : vector<8x32xbf16> to vector<8x1xbf16>
    %32 = vector.broadcast %31 : vector<8x1xbf16> to vector<8x32xbf16>
    %33 = arith.mulf %32, %1 : vector<8x32xbf16>
    %34 = tpu.concatenate %12, %15, %18, %21, %24, %27, %30, %33 in 1 : vector<8x32xbf16>, vector<8x32xbf16>, vector<8x32xbf16>, vector<8x32xbf16>, vector<8x32xbf16>, vector<8x32xbf16>, vector<8x32xbf16>, vector<8x32xbf16> -> vector<8x256xbf16>
    %c0_10 = arith.constant 0 : index
    %c0_11 = arith.constant 0 : index
    %35 = vector.load %arg5[%c0_10, %c0_11] : memref<1024x128xbf16, #tpu.memory_space<vmem>>, vector<256x128xbf16>
    %cst_12 = arith.constant dense<0.000000e+00> : vector<8x128xf32>
    %36 = tpu.matmul %34, %35, %cst_12 {dimension_numbers = #tpu.dot_dimension_numbers<[1], [0], [0], [1], [0, 0, 1, 1], [], []>} : vector<8x256xbf16>, vector<256x128xbf16>, vector<8x128xf32> -> vector<8x128xf32>
    %37 = arith.addf %9, %36 : vector<8x128xf32>
    %38 = vector.extract_strided_slice %0 {offsets = [0, 8], sizes = [8, 1], strides = [1, 1]} : vector<8x32xbf16> to vector<8x1xbf16>
    %39 = vector.broadcast %38 : vector<8x1xbf16> to vector<8x32xbf16>
    %40 = arith.mulf %39, %1 : vector<8x32xbf16>
    %41 = vector.extract_strided_slice %0 {offsets = [0, 9], sizes = [8, 1], strides = [1, 1]} : vector<8x32xbf16> to vector<8x1xbf16>
    %42 = vector.broadcast %41 : vector<8x1xbf16> to vector<8x32xbf16>
    %43 = arith.mulf %42, %1 : vector<8x32xbf16>
    %44 = vector.extract_strided_slice %0 {offsets = [0, 10], sizes = [8, 1], strides = [1, 1]} : vector<8x32xbf16> to vector<8x1xbf16>
    %45 = vector.broadcast %44 : vector<8x1xbf16> to vector<8x32xbf16>
    %46 = arith.mulf %45, %1 : vector<8x32xbf16>
    %47 = vector.extract_strided_slice %0 {offsets = [0, 11], sizes = [8, 1], strides = [1, 1]} : vector<8x32xbf16> to vector<8x1xbf16>
    %48 = vector.broadcast %47 : vector<8x1xbf16> to vector<8x32xbf16>
    %49 = arith.mulf %48, %1 : vector<8x32xbf16>
    %50 = vector.extract_strided_slice %0 {offsets = [0, 12], sizes = [8, 1], strides = [1, 1]} : vector<8x32xbf16> to vector<8x1xbf16>
    %51 = vector.broadcast %50 : vector<8x1xbf16> to vector<8x32xbf16>
    %52 = arith.mulf %51, %1 : vector<8x32xbf16>
    %53 = vector.extract_strided_slice %0 {offsets = [0, 13], sizes = [8, 1], strides = [1, 1]} : vector<8x32xbf16> to vector<8x1xbf16>
    %54 = vector.broadcast %53 : vector<8x1xbf16> to vector<8x32xbf16>
    %55 = arith.mulf %54, %1 : vector<8x32xbf16>
    %56 = vector.extract_strided_slice %0 {offsets = [0, 14], sizes = [8, 1], strides = [1, 1]} : vector<8x32xbf16> to vector<8x1xbf16>
    %57 = vector.broadcast %56 : vector<8x1xbf16> to vector<8x32xbf16>
    %58 = arith.mulf %57, %1 : vector<8x32xbf16>
    %59 = vector.extract_strided_slice %0 {offsets = [0, 15], sizes = [8, 1], strides = [1, 1]} : vector<8x32xbf16> to vector<8x1xbf16>
    %60 = vector.broadcast %59 : vector<8x1xbf16> to vector<8x32xbf16>
    %61 = arith.mulf %60, %1 : vector<8x32xbf16>
    %62 = tpu.concatenate %40, %43, %46, %49, %52, %55, %58, %61 in 1 : vector<8x32xbf16>, vector<8x32xbf16>, vector<8x32xbf16>, vector<8x32xbf16>, vector<8x32xbf16>, vector<8x32xbf16>, vector<8x32xbf16>, vector<8x32xbf16> -> vector<8x256xbf16>
    %c256 = arith.constant 256 : index
    %c0_13 = arith.constant 0 : index
    %63 = vector.load %arg5[%c256, %c0_13] : memref<1024x128xbf16, #tpu.memory_space<vmem>>, vector<256x128xbf16>
    %cst_14 = arith.constant dense<0.000000e+00> : vector<8x128xf32>
    %64 = tpu.matmul %62, %63, %cst_14 {dimension_numbers = #tpu.dot_dimension_numbers<[1], [0], [0], [1], [0, 0, 1, 1], [], []>} : vector<8x256xbf16>, vector<256x128xbf16>, vector<8x128xf32> -> vector<8x128xf32>
    %65 = arith.addf %37, %64 : vector<8x128xf32>
    %66 = vector.extract_strided_slice %0 {offsets = [0, 16], sizes = [8, 1], strides = [1, 1]} : vector<8x32xbf16> to vector<8x1xbf16>
    %67 = vector.broadcast %66 : vector<8x1xbf16> to vector<8x32xbf16>
    %68 = arith.mulf %67, %1 : vector<8x32xbf16>
    %69 = vector.extract_strided_slice %0 {offsets = [0, 17], sizes = [8, 1], strides = [1, 1]} : vector<8x32xbf16> to vector<8x1xbf16>
    %70 = vector.broadcast %69 : vector<8x1xbf16> to vector<8x32xbf16>
    %71 = arith.mulf %70, %1 : vector<8x32xbf16>
    %72 = vector.extract_strided_slice %0 {offsets = [0, 18], sizes = [8, 1], strides = [1, 1]} : vector<8x32xbf16> to vector<8x1xbf16>
    %73 = vector.broadcast %72 : vector<8x1xbf16> to vector<8x32xbf16>
    %74 = arith.mulf %73, %1 : vector<8x32xbf16>
    %75 = vector.extract_strided_slice %0 {offsets = [0, 19], sizes = [8, 1], strides = [1, 1]} : vector<8x32xbf16> to vector<8x1xbf16>
    %76 = vector.broadcast %75 : vector<8x1xbf16> to vector<8x32xbf16>
    %77 = arith.mulf %76, %1 : vector<8x32xbf16>
    %78 = vector.extract_strided_slice %0 {offsets = [0, 20], sizes = [8, 1], strides = [1, 1]} : vector<8x32xbf16> to vector<8x1xbf16>
    %79 = vector.broadcast %78 : vector<8x1xbf16> to vector<8x32xbf16>
    %80 = arith.mulf %79, %1 : vector<8x32xbf16>
    %81 = vector.extract_strided_slice %0 {offsets = [0, 21], sizes = [8, 1], strides = [1, 1]} : vector<8x32xbf16> to vector<8x1xbf16>
    %82 = vector.broadcast %81 : vector<8x1xbf16> to vector<8x32xbf16>
    %83 = arith.mulf %82, %1 : vector<8x32xbf16>
    %84 = vector.extract_strided_slice %0 {offsets = [0, 22], sizes = [8, 1], strides = [1, 1]} : vector<8x32xbf16> to vector<8x1xbf16>
    %85 = vector.broadcast %84 : vector<8x1xbf16> to vector<8x32xbf16>
    %86 = arith.mulf %85, %1 : vector<8x32xbf16>
    %87 = vector.extract_strided_slice %0 {offsets = [0, 23], sizes = [8, 1], strides = [1, 1]} : vector<8x32xbf16> to vector<8x1xbf16>
    %88 = vector.broadcast %87 : vector<8x1xbf16> to vector<8x32xbf16>
    %89 = arith.mulf %88, %1 : vector<8x32xbf16>
    %90 = tpu.concatenate %68, %71, %74, %77, %80, %83, %86, %89 in 1 : vector<8x32xbf16>, vector<8x32xbf16>, vector<8x32xbf16>, vector<8x32xbf16>, vector<8x32xbf16>, vector<8x32xbf16>, vector<8x32xbf16>, vector<8x32xbf16> -> vector<8x256xbf16>
    %c512 = arith.constant 512 : index
    %c0_15 = arith.constant 0 : index
    %91 = vector.load %arg5[%c512, %c0_15] : memref<1024x128xbf16, #tpu.memory_space<vmem>>, vector<256x128xbf16>
    %cst_16 = arith.constant dense<0.000000e+00> : vector<8x128xf32>
    %92 = tpu.matmul %90, %91, %cst_16 {dimension_numbers = #tpu.dot_dimension_numbers<[1], [0], [0], [1], [0, 0, 1, 1], [], []>} : vector<8x256xbf16>, vector<256x128xbf16>, vector<8x128xf32> -> vector<8x128xf32>
    %93 = arith.addf %65, %92 : vector<8x128xf32>
    %94 = vector.extract_strided_slice %0 {offsets = [0, 24], sizes = [8, 1], strides = [1, 1]} : vector<8x32xbf16> to vector<8x1xbf16>
    %95 = vector.broadcast %94 : vector<8x1xbf16> to vector<8x32xbf16>
    %96 = arith.mulf %95, %1 : vector<8x32xbf16>
    %97 = vector.extract_strided_slice %0 {offsets = [0, 25], sizes = [8, 1], strides = [1, 1]} : vector<8x32xbf16> to vector<8x1xbf16>
    %98 = vector.broadcast %97 : vector<8x1xbf16> to vector<8x32xbf16>
    %99 = arith.mulf %98, %1 : vector<8x32xbf16>
    %100 = vector.extract_strided_slice %0 {offsets = [0, 26], sizes = [8, 1], strides = [1, 1]} : vector<8x32xbf16> to vector<8x1xbf16>
    %101 = vector.broadcast %100 : vector<8x1xbf16> to vector<8x32xbf16>
    %102 = arith.mulf %101, %1 : vector<8x32xbf16>
    %103 = vector.extract_strided_slice %0 {offsets = [0, 27], sizes = [8, 1], strides = [1, 1]} : vector<8x32xbf16> to vector<8x1xbf16>
    %104 = vector.broadcast %103 : vector<8x1xbf16> to vector<8x32xbf16>
    %105 = arith.mulf %104, %1 : vector<8x32xbf16>
    %106 = vector.extract_strided_slice %0 {offsets = [0, 28], sizes = [8, 1], strides = [1, 1]} : vector<8x32xbf16> to vector<8x1xbf16>
    %107 = vector.broadcast %106 : vector<8x1xbf16> to vector<8x32xbf16>
    %108 = arith.mulf %107, %1 : vector<8x32xbf16>
    %109 = vector.extract_strided_slice %0 {offsets = [0, 29], sizes = [8, 1], strides = [1, 1]} : vector<8x32xbf16> to vector<8x1xbf16>
    %110 = vector.broadcast %109 : vector<8x1xbf16> to vector<8x32xbf16>
    %111 = arith.mulf %110, %1 : vector<8x32xbf16>
    %112 = vector.extract_strided_slice %0 {offsets = [0, 30], sizes = [8, 1], strides = [1, 1]} : vector<8x32xbf16> to vector<8x1xbf16>
    %113 = vector.broadcast %112 : vector<8x1xbf16> to vector<8x32xbf16>
    %114 = arith.mulf %113, %1 : vector<8x32xbf16>
    %115 = vector.extract_strided_slice %0 {offsets = [0, 31], sizes = [8, 1], strides = [1, 1]} : vector<8x32xbf16> to vector<8x1xbf16>
    %116 = vector.broadcast %115 : vector<8x1xbf16> to vector<8x32xbf16>
    %117 = arith.mulf %116, %1 : vector<8x32xbf16>
    %118 = tpu.concatenate %96, %99, %102, %105, %108, %111, %114, %117 in 1 : vector<8x32xbf16>, vector<8x32xbf16>, vector<8x32xbf16>, vector<8x32xbf16>, vector<8x32xbf16>, vector<8x32xbf16>, vector<8x32xbf16>, vector<8x32xbf16> -> vector<8x256xbf16>
    %c768 = arith.constant 768 : index
    %c0_17 = arith.constant 0 : index
    %119 = vector.load %arg5[%c768, %c0_17] : memref<1024x128xbf16, #tpu.memory_space<vmem>>, vector<256x128xbf16>
    %cst_18 = arith.constant dense<0.000000e+00> : vector<8x128xf32>
    %120 = tpu.matmul %118, %119, %cst_18 {dimension_numbers = #tpu.dot_dimension_numbers<[1], [0], [0], [1], [0, 0, 1, 1], [], []>} : vector<8x256xbf16>, vector<256x128xbf16>, vector<8x128xf32> -> vector<8x128xf32>
    %121 = arith.addf %93, %120 : vector<8x128xf32>
    %c0_19 = arith.constant 0 : index
    %122 = memref.load %arg9[%c0_19] : memref<1xf32, #tpu.memory_space<smem>>
    %cst_20 = arith.constant 0.000000e+00 : f32
    %123 = vector.broadcast %cst_20 : f32 to vector<8x128xf32>
    %124 = arith.cmpf oge, %121, %123 : vector<8x128xf32>
    %125 = vector.broadcast %122 : f32 to vector<8x128xf32>
    %126 = arith.mulf %125, %121 : vector<8x128xf32>
    %127 = arith.select %124, %121, %126 : vector<8x128xi1>, vector<8x128xf32>
    %128 = arith.truncf %127 : vector<8x128xf32> to vector<8x128xbf16>
    %c0_21 = arith.constant 0 : index
    %c0_22 = arith.constant 0 : index
    %129 = vector.load %arg7[%c0_21, %c0_22] : memref<128x128xbf16, #tpu.memory_space<vmem>>, vector<128x128xbf16>
    %cst_23 = arith.constant dense<0.000000e+00> : vector<8x128xf32>
    %130 = tpu.matmul %128, %129, %cst_23 {dimension_numbers = #tpu.dot_dimension_numbers<[1], [0], [0], [1], [0, 0, 1, 1], [], []>} : vector<8x128xbf16>, vector<128x128xbf16>, vector<8x128xf32> -> vector<8x128xf32>
    %c0_24 = arith.constant 0 : index
    %c0_25 = arith.constant 0 : index
    %131 = vector.load %arg8[%c0_24, %c0_25] : memref<1x128xf32, #tpu.memory_space<vmem>>, vector<1x128xf32>
    %132 = vector.broadcast %131 : vector<1x128xf32> to vector<8x128xf32>
    %133 = arith.addf %130, %132 : vector<8x128xf32>
    %c0_26 = arith.constant 0 : index
    %c0_27 = arith.constant 0 : index
    %134 = vector.load %arg10[%c0_26, %c0_27] : memref<8x128xf32, #tpu.memory_space<vmem>>, vector<8x128xf32>
    tpu.vector_store %arg10[%c0_26, %c0_27], %133 {strides = array<i32>} : memref<8x128xf32, #tpu.memory_space<vmem>>, vector<8x128xf32>,
    return
  }
  func.func @transform_0(%arg0: i32) -> (i32, i32) {
    %c0_i32 = arith.constant 0 : i32
    %c0_i32_0 = arith.constant 0 : i32
    return %arg0, %c0_i32 : i32, i32
  }
  func.func @transform_1(%arg0: i32) -> (i32, i32) {
    %c0_i32 = arith.constant 0 : i32
    %c0_i32_0 = arith.constant 0 : i32
    return %arg0, %c0_i32 : i32, i32
  }
  func.func @transform_2(%arg0: i32) -> (i32, i32) {
    %c0_i32 = arith.constant 0 : i32
    %c0_i32_0 = arith.constant 0 : i32
    %c0_i32_1 = arith.constant 0 : i32
    return %c0_i32, %c0_i32_0 : i32, i32
  }
  func.func @transform_3(%arg0: i32) -> (i32, i32) {
    %c0_i32 = arith.constant 0 : i32
    %c0_i32_0 = arith.constant 0 : i32
    %c0_i32_1 = arith.constant 0 : i32
    return %c0_i32, %c0_i32_0 : i32, i32
  }
  func.func @transform_4(%arg0: i32) -> (i32, i32) {
    %c0_i32 = arith.constant 0 : i32
    %c0_i32_0 = arith.constant 0 : i32
    %c0_i32_1 = arith.constant 0 : i32
    return %c0_i32, %c0_i32_0 : i32, i32
  }
  func.func @transform_5(%arg0: i32) -> (i32, i32) {
    %c0_i32 = arith.constant 0 : i32
    %c0_i32_0 = arith.constant 0 : i32
    %c0_i32_1 = arith.constant 0 : i32
    return %c0_i32, %c0_i32_0 : i32, i32
  }
  func.func @transform_6(%arg0: i32) -> (i32, i32) {
    %c0_i32 = arith.constant 0 : i32
    %c0_i32_0 = arith.constant 0 : i32
    %c0_i32_1 = arith.constant 0 : i32
    return %c0_i32, %c0_i32_0 : i32, i32
  }
  func.func @transform_7(%arg0: i32) -> (i32, i32) {
    %c0_i32 = arith.constant 0 : i32
    %c0_i32_0 = arith.constant 0 : i32
    %c0_i32_1 = arith.constant 0 : i32
    return %c0_i32, %c0_i32_0 : i32, i32
  }
  func.func @transform_8(%arg0: i32) -> i32 {
    %c0_i32 = arith.constant 0 : i32
    %c0_i32_0 = arith.constant 0 : i32
    return %c0_i32 : i32
  }
  func.func @transform_9(%arg0: i32) -> (i32, i32) {
    %c0_i32 = arith.constant 0 : i32
    %c0_i32_0 = arith.constant 0 : i32
    return %arg0, %c0_i32 : i32, i32
  }
}

</mosaic_0001>

<bundles_post_ra>
// kernel: tpu_custom_call.1
= control target key start
LH: loop header
LB: loop body
LE: loop exit
PB: predicated region body
PF: predicated region fallthrough
CT: control target
= control target key end

     0   :  { %s3465_s0 = inlined_call_operand.hbm [shape: bf16[16,32], index: 0, kind: input, shape index: {}]   ;;  %s3466_s1 = inlined_call_operand.hbm [shape: bf16[16,32], index: 1, kind: input, shape index: {}]   ;;  %s3467_s2 = inlined_call_operand.hbm [shape: bf16[32,128], index: 2, kind: input, shape index: {}]   ;;  %s3468_s3 = inlined_call_operand.hbm [shape: bf16[32,128], index: 3, kind: input, shape index: {}]   ;;  %s3469_s4 = inlined_call_operand.hbm [shape: bf16[1024,128], index: 4, kind: input, shape index: {}]   ;;  %s3470_s5 = inlined_call_operand.vmem [shape: f32[1,128], index: 5, kind: input, shape index: {}]   ;;  %s3471_s6 = inlined_call_operand.hbm [shape: bf16[128,128], index: 6, kind: input, shape index: {}]   ;;  %s3472_s7 = inlined_call_operand.vmem [shape: f32[1,128], index: 7, kind: input, shape index: {}]   ;;  %s3473_s8 = inlined_call_operand.<no memory space> [shape: f32[1], index: 8, kind: input, shape index: {}]   ;;  %s3474_s9 = inlined_call_operand.hbm [shape: f32[16,128], index: 9, kind: output, shape index: {}]  }
   0x1   :  { %3479 = sst [smem:[#allocation22_spill]] %s3467_s2 }
   0x2   :  { %3480 = sst [smem:[#allocation23_spill]] %s3468_s3 }
   0x3   :  { %3481 = sst [smem:[#allocation24_spill]] %s3469_s4 }
   0x4   :  { %3482 = sst [smem:[#allocation25_spill]] %s3471_s6 }
   0x5   :  { %14 = sst [smem:[#allocation2]] %s3473_s8 }
   0x6   :  { %15 = vsyncpa [#allocation4], 0 }
   0x7   :  { %17 = vsyncpa [#allocation4 + $0x1], 0 }
   0x8   :  { %18 = vsyncpa [#allocation7], 0 }
   0x9   :  { %20 = vsyncpa [#allocation7 + $0x1], 0 }
   0xa   :  { %21 = vsyncpa [#allocation10], 0 }
   0xb   :  { %22 = vsyncpa [#allocation13], 0 }
   0xc   :  { %23 = vsyncpa [#allocation5], 0 }
   0xd   :  { %25 = vsyncpa [#allocation5 + $0x1], 0  ;;  %s2946_s11 = smov 0   ;;  %s2948_s12 = smov 0  }
   0xe   :  { %s2950_s13 = smov 0   ;;  %s2952_s14 = smov 0  }
   0xf LB: > { %s2846_s8 = smov [#allocation8]   ;;  %s2967_s16 = sadd.s32 4294967295, %s2844_s14   ;;  %s2844_s14 = sphi %s2952_s14, %s3512_s14   ;;  %s2840_s13 = sphi %s2950_s13, %s3511_s13   ;;  %s2836_s12 = sphi %s2948_s12, %s3510_s12   ;;  %s2832_s11 = sphi %s2946_s11, %s3509_s11  }
  0x10   : > { %s273_s15 = sshll.u32 %s2846_s8, 4  ;;  %p2084_p0 = scmp.ge.s32.totalorder %s2844_s14, 1  ;;  %s2972_s15 = int_to_ptr.vmem [resolvable:$true] %s273_s15 }
  0x11   : > { %p3475_p1 = scmp.eq.s32.totalorder %s2967_s16, 0  ;;  %p261_p2 = scmp.lt.s32.totalorder %s2844_s14, 3 }
  0x12   : > { %s2847_s18 = smov [#allocation9]   ;;  %s2848_s21 = smov [#allocation11]  }
  0x13   : > { %p2974_p3 = pnand %p2084_p0, %p261_p2  ;;  %s286_s19 = sshll.u32 %s2847_s18, 4  ;;  %s2987_s19 = int_to_ptr.vmem [resolvable:$true] %s286_s19 }
  0x14   : > { %s299_s22 = sshll.u32 %s2848_s21, 4  ;;  %s3485_s2 = sld [smem:[#allocation22_spill]]  ;;  %s2989_s22 = int_to_ptr.vmem [resolvable:$true] %s299_s22 }
  0x15   : > { %s3483_s17 = scalar_select %p2974_p3, 1, 0 }
  0x16   : > { %p2371_p5 = pneg %p2974_p3 }
  0x18   : > { %p2983_p6 = pnand %p2371_p5, %p3475_p1 }
  0x1a   : > { %s2590_s25 = scalar_lea.hbm %s3485_s2, 256  ;;  %p2999_p8 = pneg %p2983_p6 }
  0x1b   : > { %p2591_p7 = scmp.ne.s32.totalorder %s3485_s2, %s2590_s25  ;;  %p2597_p11 = scmp.lt.u32.totalorder %s2590_s25, %s3485_s2 }
  0x1d   : > { %p2593_p9 = pnand %p2999_p8, %p2591_p7 }
  0x1f   : > { %p2594_p10 = pneg %p2593_p9 }
  0x21   : > { %p2599_p12 = pnand %p2597_p11, %p2594_p10 }
  0x23   : > { %2602 = shalt.err (!%p2599_p12)
}
  0x24   : > { %s2603_s10 = scalar_lea.vmem %s2972_s15, 256  ;;  %p2611_p5 = scmp.lt.s32.totalorder %s2972_s15, %s2972_s15 }
  0x25   : > { %p2604_p13 = scmp.ne.s32.totalorder %s2972_s15, %s2603_s10  ;;  %p2612_p4 = scmp.lt.s32.totalorder %s2603_s10, %s2603_s10 }
  0x27   : > { %p2606_p0 = pnand %p2604_p13, %p2999_p8  ;;  %p2613_p7 = por %p2612_p4, %p2611_p5 }
  0x29   : > { %p2607_p2 = pneg %p2606_p0 }
  0x2b   : > { %p2614_p9 = pnand %p2613_p7, %p2607_p2 }
  0x2d   : > { %2617 = shalt.err (!%p2614_p9)
}
  0x2e   : > { %s2849_s8 = smov 64   ;;  %s2850_s18 = smov 4  }
  0x2f   : > { %2374 = dma.hbm_to_vmem [thread:$0]  (!%p2983_p6), %s3485_s2, 256, %s2972_s15, [#allocation7], %s2849_s8, %s2849_s8, %s2850_s18  }
  0x30   : > { %s3487_s3 = sld [smem:[#allocation23_spill]] }
  0x36   : > { %s2618_s26 = scalar_lea.hbm %s3487_s3, 256 }
  0x37   : > { %p2619_p4 = scmp.ne.s32.totalorder %s3487_s3, %s2618_s26  ;;  %p2625_p12 = scmp.lt.u32.totalorder %s2618_s26, %s3487_s3 }
  0x39   : > { %p2621_p10 = pnand %p2619_p4, %p2999_p8 }
  0x3b   : > { %p2622_p11 = pneg %p2621_p10 }
  0x3d   : > { %p2627_p13 = pnand %p2625_p12, %p2622_p11 }
  0x3f   : > { %2630 = shalt.err (!%p2627_p13)
}
  0x40   : > { %s2631_s15 = scalar_lea.vmem %s2987_s19, 256  ;;  %p2639_p7 = scmp.lt.s32.totalorder %s2987_s19, %s2987_s19 }
  0x41   : > { %p2632_p0 = scmp.ne.s32.totalorder %s2987_s19, %s2631_s15  ;;  %p2640_p9 = scmp.lt.s32.totalorder %s2631_s15, %s2631_s15 }
  0x43   : > { %p2634_p2 = pnand %p2632_p0, %p2999_p8  ;;  %p2641_p4 = por %p2640_p9, %p2639_p7 }
  0x45   : > { %p2635_p5 = pneg %p2634_p2 }
  0x47   : > { %p2642_p10 = pnand %p2641_p4, %p2635_p5 }
  0x49   : > { %2645 = shalt.err (!%p2642_p10)
}
  0x4a   : > { %2377 = dma.hbm_to_vmem [thread:$0]  (!%p2983_p6), %s3487_s3, 256, %s2987_s19, [#allocation10], %s2849_s8, %s2849_s8, %s2850_s18  }
  0x4b   : > { %s3488_s4 = sld [smem:[#allocation24_spill]] }
  0x51   : > { %s2646_s26 = scalar_lea.hbm %s3488_s4, 8192 }
  0x52   : > { %p2647_p11 = scmp.ne.s32.totalorder %s3488_s4, %s2646_s26  ;;  %p2653_p0 = scmp.lt.u32.totalorder %s2646_s26, %s3488_s4 }
  0x54   : > { %p2649_p12 = pnand %p2647_p11, %p2999_p8 }
  0x56   : > { %p2650_p13 = pneg %p2649_p12 }
  0x58   : > { %p2655_p2 = pnand %p2653_p0, %p2650_p13 }
  0x5a   : > { %2658 = shalt.err (!%p2655_p2)
}
  0x5b   : > { %s2659_s19 = scalar_lea.vmem %s2989_s22, 8192  ;;  %p2667_p4 = scmp.lt.s32.totalorder %s2989_s22, %s2989_s22 }
  0x5c   : > { %p2660_p5 = scmp.ne.s32.totalorder %s2989_s22, %s2659_s19  ;;  %p2668_p10 = scmp.lt.s32.totalorder %s2659_s19, %s2659_s19 }
  0x5e   : > { %p2662_p7 = pnand %p2660_p5, %p2999_p8  ;;  %p2669_p11 = por %p2668_p10, %p2667_p4 }
  0x60   : > { %p2663_p9 = pneg %p2662_p7 }
  0x62   : > { %p2670_p12 = pnand %p2669_p11, %p2663_p9 }
  0x64   : > { %2673 = shalt.err (!%p2670_p12)
}
  0x65   : > { %2380 = dma.hbm_to_vmem [thread:$0]  (!%p2983_p6), %s3488_s4, 8192, %s2989_s22, [#allocation10], %s2849_s8, %s2849_s8, %s2850_s18  }
  0x66   : > { %s2851_s23 = smov [#allocation12]   ;;  %s3489_s6 = sld [smem:[#allocation25_spill]] }
  0x67   : > { %s315_s24 = sshll.u32 %s2851_s23, 4  ;;  %s316_s24 = int_to_ptr.vmem [resolvable:$true] %s315_s24 }
  0x6c   : > { %s2674_s27 = scalar_lea.hbm %s3489_s6, 1024 }
  0x6d   : > { %p2675_p13 = scmp.ne.s32.totalorder %s3489_s6, %s2674_s27  ;;  %p2681_p5 = scmp.lt.u32.totalorder %s2674_s27, %s3489_s6 }
  0x6f   : > { %p2677_p0 = pnand %p2675_p13, %p2999_p8 }
  0x71   : > { %p2678_p2 = pneg %p2677_p0 }
  0x73   : > { %p2683_p7 = pnand %p2681_p5, %p2678_p2 }
  0x75   : > { %2686 = shalt.err (!%p2683_p7)
}
  0x76   : > { %s2687_s22 = scalar_lea.vmem %s316_s24, 1024  ;;  %p2695_p11 = scmp.lt.s32.totalorder %s316_s24, %s316_s24 }
  0x77   : > { %p2688_p9 = scmp.ne.s32.totalorder %s316_s24, %s2687_s22  ;;  %p2696_p12 = scmp.lt.s32.totalorder %s2687_s22, %s2687_s22 }
  0x79   : > { %p2690_p4 = pnand %p2688_p9, %p2999_p8  ;;  %p2697_p1 = por %p2696_p12, %p2695_p11 }
  0x7b   : > { %p2691_p10 = pneg %p2690_p4 }
  0x7d   : > { %p2698_p3 = pnand %p2697_p1, %p2691_p10 }
  0x7f   : > { %2701 = shalt.err (!%p2698_p3)
}
  0x80   : > { %2383 = dma.hbm_to_vmem [thread:$0]  (!%p2983_p6), %s3489_s6, 1024, %s316_s24, [#allocation13], %s2849_s8, %s2849_s8, %s2850_s18  }
  0x81   : > { %s2083_s20 = sadd.s32 4294967294, %s2844_s14   ;;  %s3098_s28 = sadd.s32 1, %s2844_s14  }
  0x82   : > { %s35_s23 = ssub.s32 %s2844_s14, %s3098_s28  ;;  %s38_s25 = sadd.s32 1, %s2840_s13 }
  0x83   : > { %p36_p1 = scmp.eq.s32.totalorder %s35_s23, 0  ;;  %p45_p3 = scmp.ne.s32.totalorder %s2840_s13, %s2836_s12 }
  0x84   : > { %p46_p8 = scmp.eq.s32.totalorder %s2844_s14, 0  ;;  %p51_p13 = scmp.ne.s32.totalorder %s2836_s12, %s2832_s11 }
  0x85   : > { %s3109_s26 = scalar_select %p36_p1, %s2840_s13, %s38_s25  }
  0x86   : > { %p3111_p0 = por %p46_p8, %p45_p3  ;;  %p3492_p2 = scmp.eq.s32.totalorder %s2967_s16, 0 }
  0x87   : > { %3490 = sst [smem:[#allocation21_spill]] %s3109_s26  ;;  %p248_p5 = scmp.eq.s32.totalorder %s2967_s16, 1 }
  0x88   : > { %p3117_p6 = por %p3492_p2, %p51_p13  ;;  %p254_p7 = scmp.eq.s32.totalorder %s2083_s20, 1 }
  0x89   : > { %p2399_p9 = scmp.lt.s32.totalorder %s2844_s14, 2  ;;  %s335_s18 = sand.u32 1, %s2840_s13  }
  0x8a   : > { %s3493_s8 = scalar_select %p3117_p6, 1, 0 }
  0x8b   : > { %p3124_p4 = por %p248_p5, %p45_p3  ;;  %p3128_p10 = por %p254_p7, %p51_p13 }
  0x8c   : > { %s3132_s30 = sshll.u32 %s335_s18, 2  ;;  %s2091_s10 = sshll.u32 %s2844_s14, 6 }
  0x8d   : > { %s3494_s24 = scalar_select %p3124_p4, 1, 0 }
  0x8e   : > { %s3495_s29 = scalar_select %p3128_p10, 1, 0 }
  0x8f   : > { %s3138_s15 = scalar_lea.hbm %s3465_s0, %s2091_s10  ;;  %s339_s21 = scalar_lea.vmem [#allocation3], %s3132_s30 }
  0x90   : > { %s346_s20 = sshll.u32 %s339_s21, 4  ;;  %p3145_p11 = pnand %p2399_p9, %p3111_p0  ;;  %s3141_s20 = int_to_ptr.vmem [resolvable:$true] %s346_s20 }
  0x91   : > { %s3152_s19 = scalar_lea.hbm %s3466_s1, %s2091_s10  ;;  %s353_s22 = sand.u32 1, %s2844_s14  }
  0x92   : > { %s336_s3 = scalar_lea.sflag [#allocation4], %s335_s18  ;;  %s2702_s4 = scalar_lea.hbm %s3138_s15, 64 }
  0x93   : > { %p2703_p12 = scmp.ne.s32.totalorder %s3138_s15, %s2702_s4  ;;  %p2704_p1 = pneg %p3145_p11 }
  0x94   : > { %s2707_s6 = scalar_lea.hbm %s3465_s0, 128  ;;  %p2708_p13 = scmp.lt.u32.totalorder %s3138_s15, %s3465_s0 }
  0x95   : > { %p2705_p3 = pnand %p2704_p1, %p2703_p12  ;;  %p2709_p0 = scmp.lt.u32.totalorder %s2707_s6, %s2702_s4 }
  0x96   : > { %p2711_p5 = scmp.lt.u32.totalorder %s2702_s4, %s3138_s15 }
  0x97   : > { %p2706_p8 = pneg %p2705_p3  ;;  %p2710_p2 = por %p2709_p0, %p2708_p13 }
  0x99   : > { %p2712_p7 = por %p2711_p5, %p2710_p2 }
  0x9b   : > { %p2713_p9 = pnand %p2712_p7, %p2706_p8 }
  0x9d   : > { %2716 = shalt.err (!%p2713_p9)
}
  0x9e   : > { %s2717_s18 = scalar_lea.vmem %s3141_s20, 64  ;;  %s2852_s10 = smov [#allocation3]  }
  0x9f   : > { %p2718_p12 = scmp.ne.s32.totalorder %s3141_s20, %s2717_s18  ;;  %s2722_s25 = sshll.u32 %s2852_s10, 4  ;;  %s2723_s25 = int_to_ptr.vmem [resolvable:$false] %s2722_s25 }
  0xa0   : > { %s2724_s26 = scalar_lea.vmem %s2723_s25, 128  ;;  %p2725_p4 = scmp.lt.s32.totalorder %s3141_s20, %s2723_s25 }
  0xa1   : > { %p2720_p3 = pnand %p2718_p12, %p2704_p1  ;;  %p2726_p13 = scmp.lt.s32.totalorder %s2724_s26, %s2717_s18 }
  0xa3   : > { %p2721_p10 = pneg %p2720_p3  ;;  %p2727_p0 = por %p2726_p13, %p2725_p4 }
  0xa5   : > { %p2728_p2 = pnand %p2727_p0, %p2721_p10 }
  0xa7   : > { %2731 = shalt.err (!%p2728_p2)
}
  0xa8   : > { %2387 = dma.hbm_to_vmem [thread:$0]  (!%p3145_p11), %s3138_s15, 64, %s3141_s20, %s336_s3  }
  0xa9   : > { %s357_s4 = scalar_lea.vmem [#allocation6], %s3132_s30  ;;  %s354_s27 = scalar_lea.sflag [#allocation7], %s353_s22 }
  0xaa   : > { %s364_s6 = sshll.u32 %s357_s4, 4  ;;  %s2732_s21 = scalar_lea.hbm %s3152_s19, 64  ;;  %s365_s6 = int_to_ptr.vmem [resolvable:$true] %s364_s6 }
  0xab   : > { %p2733_p4 = scmp.ne.s32.totalorder %s3152_s19, %s2732_s21  ;;  %s2737_s10 = scalar_lea.hbm %s3466_s1, 128 }
  0xac   : > { %p2738_p5 = scmp.lt.u32.totalorder %s3152_s19, %s3466_s1  ;;  %p2739_p7 = scmp.lt.u32.totalorder %s2737_s10, %s2732_s21 }
  0xad   : > { %p2735_p10 = pnand %p2733_p4, %p2704_p1  ;;  %p2741_p12 = scmp.lt.u32.totalorder %s2732_s21, %s3152_s19 }
  0xae   : > { %p2740_p9 = por %p2739_p7, %p2738_p5 }
  0xaf   : > { %p2736_p8 = pneg %p2735_p10 }
  0xb0   : > { %p2742_p3 = por %p2741_p12, %p2740_p9 }
  0xb2   : > { %p2743_p13 = pnand %p2742_p3, %p2736_p8 }
  0xb4   : > { %2746 = shalt.err (!%p2743_p13)
}
  0xb5   : > { %s2747_s3 = scalar_lea.vmem %s365_s6, 64  ;;  %s2853_s30 = smov [#allocation6]  }
  0xb6   : > { %p2748_p0 = scmp.ne.s32.totalorder %s365_s6, %s2747_s3  ;;  %s2752_s15 = sshll.u32 %s2853_s30, 4  ;;  %s2753_s15 = int_to_ptr.vmem [resolvable:$false] %s2752_s15 }
  0xb7   : > { %s2754_s20 = scalar_lea.vmem %s2753_s15, 128  ;;  %p2755_p10 = scmp.lt.s32.totalorder %s365_s6, %s2753_s15 }
  0xb8   : > { %p2750_p2 = pnand %p2748_p0, %p2704_p1  ;;  %p2756_p6 = scmp.lt.s32.totalorder %s2754_s20, %s2747_s3 }
  0xba   : > { %p2751_p4 = pneg %p2750_p2  ;;  %p2757_p5 = por %p2756_p6, %p2755_p10 }
  0xbc   : > { %p2758_p7 = pnand %p2757_p5, %p2751_p4 }
  0xbe   : > { %2761 = shalt.err (!%p2758_p7)
}
  0xbf   : > { %2390 = dma.hbm_to_vmem [thread:$0]  (!%p3145_p11), %s3152_s19, 64, %s365_s6, %s354_s27  }
  0xc0   : > { %p3497_p8 = scmp.ne.s32.totalorder %s3483_s17, 0 }
  0xc1   : > { %s3205_s22 = sand.u32 (!%p3497_p8), 1, %s2836_s12   ;;  %p3498_p1 = scmp.ne.s32.totalorder (!%p3497_p8), %s3493_s8, 0 }
  0xc2   : > { %373 = sbr.rel (%p3497_p8) target bundleno = 992 (0x3e0), region = 56  ;;  %s2095_s4 = sshll.u32 (!%p3497_p8), %s3205_s22, 2 }
  0xc3   : > { %s376_s21 = scalar_lea.sflag (!%p3497_p8), [#allocation4], %s3205_s22  ;;  %s379_s2 = scalar_lea.vmem (!%p3497_p8), [#allocation3], %s2095_s4 }
  0xc9   : > { %2807 = dma.done.wait (%p3498_p1), %s376_s21, 64  }
  0xca   : > { %2809 = vsyncadd (%p3498_p1), %s376_s21, 4294967232  ;;  %s384_s23 = sand.u32 1, %s2967_s16   ;;  %s3214_s17 = scalar_lea.vmem [#allocation6], %s2095_s4 }
  0xcb   : > { %s385_s19 = scalar_lea.sflag [#allocation7], %s384_s23 }
  0xcc   : > { %2811 = dma.done.wait (%p3498_p1), %s385_s19, 64  }
  0xcd   : > { %2813 = vsyncadd (%p3498_p1), %s385_s19, 4294967232  ;;  %p3499_p6 = scmp.eq.s32.totalorder %s2967_s16, 0 }
  0xcf   : > { %2815 = dma.done.wait (%p3499_p6), [#allocation7], 256   ;;  %p3500_p11 = pmov %p3499_p6 }
  0xd0   : > { %p3501_p9 = pmov %p3499_p6 }
  0xd1   : > { %2817 = vsyncadd (%p3500_p11), [#allocation7], 4294967040 }
  0xd2   : > { %2819 = dma.done.wait (%p3501_p9), [#allocation10], 8448   ;;  %p3502_p12 = pmov %p3499_p6 }
  0xd3   : > { %p3503_p3 = pmov %p3499_p6 }
  0xd4   : > { %2821 = vsyncadd (%p3502_p12), [#allocation10], 4294958848 }
  0xd5   : > { %2823 = dma.done.wait (%p3503_p3), [#allocation13], 1024   ;;  %p3504_p13 = pmov %p3503_p3 }
  0xd6   : > { %v2854_v0 = vmov 6   ;;  %v2855_v1 = vmov 5   ;;  %v3232_v2 = vld [vmem:[%s379_s2] sm:$0xf]  ;;  %v2856_v3 = vmov 2   ;;  %v2857_v4 = vmov 1  }
  0xd7   : > { %2825 = vsyncadd (%p3504_p13), [#allocation13], 4294966272  ;;  %2483 = vset.pattern.permute.xlu1 %v2854_v0  ;;  %2481 = vset.pattern.permute.xlu0 %v2855_v1  ;;  %v2858_v5 = vmov 7   ;;  %v2859_v6 = vmov 13   ;;  %v2860_v7 = vmov 3   ;;  %v2861_v8 = vmov 14  }
  0xd8   : > { %647 = vperm.xlu1 %2483, %v3232_v2   ;;  %635 = vperm.xlu0 %2481, %v3232_v2   ;;  %v2862_v9 = vmov 9   ;;  %v2863_v10 = vmov 11   ;;  %v2864_v11 = vmov 10   ;;  %v2865_v12 = vmov 22   ;;  %v2514_v28 = vld [vmem:[#allocation11 + $0x40] sm:$0xff]   ;;  %v2515_v29 = vld [vmem:[#allocation9] sm:$0xff]  }
  0xd9   : > { %v2866_v13 = vmov 15   ;;  %v2867_v14 = vmov 29   ;;  %v2868_v15 = vmov 21   ;;  %v2869_v16 = vmov 30   ;;  %v2516_v30 = vld [vmem:[#allocation11] sm:$0xff]   ;;  %2216 = vmatprep.subr.bf16.mxu0 %v2514_v28  ;;  %v2517_v33 = vld [vmem:[#allocation11 + $0x48] sm:$0xff]  }
  0xda   : > { %v2870_v17 = vmov 17   ;;  %v2871_v18 = vmov 27   ;;  %v2872_v19 = vmov 18   ;;  %v2873_v20 = vmov 12   ;;  %2217 = vmatpush3.bf16.msra.mxu0 %v2516_v30  ;;  %v2518_v34 = vld [vmem:[#allocation9 + $0x8] sm:$0xff]   ;;  %v2519_v35 = vld [vmem:[#allocation11 + $0x8] sm:$0xff]  }
  0xdb   : > { %v2874_v21 = vmov 23   ;;  %v2875_v22 = vmov 16   ;;  %v2876_v23 = vmov 19   ;;  %v2877_v24 = vmov 25   ;;  %2218 = vmatprep.subr.bf16.mxu0 %v2517_v33  ;;  %v2520_v37 = vld [vmem:[#allocation11 + $0x50] sm:$0xff]   ;;  %v2521_v38 = vld [vmem:[#allocation8] sm:$0xff]  }
  0xdc   : > { %2484 = vset.pattern.permute.xlu1 %v2856_v3  ;;  %2482 = vset.pattern.permute.xlu0 %v2857_v4  ;;  %v2878_v25 = vmov 26   ;;  %v2879_v26 = vmov 31   ;;  %v2880_v27 = vmov 4   ;;  %v2881_v31 = vmov 0.0   ;;  %v2522_v39 = vld [vmem:[#allocation11 + $0x10] sm:$0xff]   ;;  %v2523_v42 = vld [vmem:[#allocation11 + $0x58] sm:$0xff]  }
  0xdd   : > { %599 = vperm.xlu1 %2484, %v3232_v2   ;;  %587 = vperm.xlu0 %2482, %v3232_v2   ;;  %v2882_v32 = vmov 0   ;;  %v2883_v36 = vmov 8   ;;  %vm467_vm0 = vcmask 261120   ;;  %vm2884_vm1 = vmmov 0   ;;  %v3269_v41 = vld [vmem:[%s3214_s17] sm:$0xf] }
  0xde   : > { %2313 = vmatprep.subr.bf16.mxu1 %v2881_v31  ;;  %2219 = vmatpush3.bf16.msra.mxu0 %v2519_v35  ;;  %v2885_v40 = vmov 20   ;;  %v2524_v43 = vld [vmem:[#allocation8 + $0x8] sm:$0xff]   ;;  %v2525_v44 = vld [vmem:[#allocation11 + $0x18] sm:$0xff]   ;;  %v2886_v45 = vmov 28   ;;  %v2887_v46 = vmov 839922192   ;;  %v581_v48 = vlaneseq }
  0xdf   : > { %2314 = vmatpush3.bf16.msra.mxu1 %v2515_v29  ;;  %2317 = vmatprep.mubr.msk.bf16.mxu1 %vm2884_vm1, %v2881_v31  ;;  %v579_v47 = vunpack.c.l.s4 %v2887_v46  ;;  %v2526_v49 = vld [vmem:[#allocation11 + $0x60] sm:$0xff]   ;;  %v2530_v55 = vld [vmem:[#allocation11 + $0x68] sm:$0xff]   ;;  %v2534_v60 = vld [vmem:[#allocation11 + $0x70] sm:$0xff]   ;;  %s2888_s8 = smov 32   ;;  %s2889_s6 = smov 64   ;;  %vm703_vm2 = vcmask 523264  }
  0xe0   : > { %2315 = vmatprep.subr.bf16.mxu1 %v2881_v31  ;;  %2220 = vmatprep.subr.bf16.mxu0 %v2520_v37  ;;  %v2527_v50 = vld [vmem:[#allocation11 + $0xc0] sm:$0xff]   ;;  %v582_v52 = vshrl.u32 %v581_v48, 7  ;;  %v2531_v56 = vld [vmem:[#allocation11 + $0xc8] sm:$0xff]   ;;  %v2535_v63 = vld [vmem:[#allocation11 + $0xd0] sm:$0xff]   ;;  %s2890_s27 = smov 96   ;;  %vm706_vm3 = vcmask 785408  }
  0xe1   : > { %2485 = vset.pattern.permute.xlu1 %v2858_v5  ;;  %2486 = vset.pattern.permute.xlu0 %v2859_v6  ;;  %v580_v51 = vunpack.c.0.s8 %v579_v47  ;;  %v2528_v53 = vld [vmem:[#allocation11 + $0x20] sm:$0xff]   ;;  %v2532_v58 = vld [vmem:[#allocation11 + $0x28] sm:$0xff]   ;;  %v2536_v3 = vld [vmem:[#allocation11 + $0x30] sm:$0xff]   ;;  %s1820_s25 = sld [smem:[#allocation2]]  ;;  %s2101_s26 = sshll.u32 %s3205_s22, 3 }
  0xe2   : > { %659 = vperm.xlu1 %2485, %v3232_v2   ;;  %948 = vperm.xlu0 %2486, %v3232_v2   ;;  %v2529_v54 = vld [vmem:[#allocation11 + $0x80] sm:$0xff]   ;;  %v2533_v59 = vld [vmem:[#allocation11 + $0x88] sm:$0xff]   ;;  %v2537_v4 = vld [vmem:[#allocation11 + $0x90] sm:$0xff]   ;;  %s2207_s15 = sshll.u32 %s2967_s16, 7  ;;  %s443_s20 = scalar_lea.vmem [#allocation14], %s2101_s26 }
  0xe3   : > { %2316 = vmatpush3.bf16.msra.mxu1 %v2518_v34  ;;  %2221 = vmatpush3.bf16.msra.mxu0 %v2522_v39  ;;  %v3279_v57 = vsub.s32 %v580_v51, %v582_v52  ;;  %v2538_v6 = vld [vmem:[#allocation11 + $0x78] sm:$0xff]   ;;  %v2545_v30 = vld [vmem:[#allocation11 + $0xa8] sm:$0xff]   ;;  %v2546_v39 = vld [vmem:[#allocation11 + $0xf0] sm:$0xff]   ;;  %s1952_s4 = sshll.u32 %s443_s20, 4  ;;  %s3421_s23 = scalar_lea.hbm %s3474_s9, %s2207_s15  ;;  %s3423_s4 = int_to_ptr.vmem [resolvable:$true] %s1952_s4 }
  0xe4   : > { %2321 = vmatprep.subr.bf16.mxu1 %v2881_v31  ;;  %2222 = vmatprep.subr.bf16.mxu0 %v2523_v42  ;;  %v2548_v46 = vld [vmem:[#allocation11 + $0xf8] sm:$0xff]   ;;  %v2550_v52 = vld [vmem:[#allocation11 + $0x140] sm:$0xff]   ;;  %s1939_s19 = scalar_lea.sflag [#allocation5], %s3205_s22  ;;  %s2762_s16 = scalar_lea.vmem %s3423_s4, 128 }
  0xe5   : > { %p2763_p0 = scmp.ne.s32.totalorder %s3423_s4, %s2762_s16  ;;  %p3505_p2 = scmp.ne.s32.totalorder %s3494_s24, 0 }
  0xe6   : > { %2487 = vset.pattern.permute.xlu1 %v2860_v7  ;;  %2489 = vset.pattern.permute.xlu0 %v2861_v8  ;;  %v2539_v7 = vld [vmem:[#allocation11 + $0xd8] sm:$0xff]   ;;  %s2892_s17 = smov [#allocation14]  }
  0xe7   : > { %611 = vperm.xlu1 %2487, %v3232_v2   ;;  %960 = vperm.xlu0 %2489, %v3232_v2   ;;  %p2764_p4 = pnand %p2763_p0, %p3505_p2 }
  0xe8   : > { %2318 = vmatmul.mubr.msk.bf16.vlgmr.msra.gmra.mrb[0].mxu1 %vm467_vm0, %v3269_v41  ;;  %2223 = vmatpush3.bf16.msra.mxu0 %v2525_v44 }
  0xe9   : > { %2322 = vmatpush3.bf16.msra.mxu1 %v2521_v38  ;;  %2325 = vmatprep.mubr.msk.bf16.mxu1 %vm2884_vm1, %v2881_v31  ;;  %p2765_p10 = pneg %p2764_p4 }
  0xea   : > { %2323 = vmatprep.subr.bf16.mxu1 %v2881_v31  ;;  %2224 = vmatprep.subr.bf16.mxu0 %v2526_v49  ;;  %v2549_v49 = vld [vmem:[#allocation11 + $0xb8] sm:$0xff]  }
  0xeb   : > { %2488 = vset.pattern.permute.xlu1 %v2862_v9  ;;  %2492 = vset.pattern.permute.xlu0 %v2863_v10 }
  0xec   : > { %900 = vperm.xlu1 %2488, %v3232_v2   ;;  %924 = vperm.xlu0 %2492, %v3232_v2  }
  0xed   : > { %2324 = vmatpush3.bf16.msra.mxu1 %v2524_v43  ;;  %2225 = vmatpush3.bf16.msra.mxu0 %v2528_v53 }
  0xee   : > { %2238 = vmatprep.subr.bf16.mxu1 %v2527_v50  ;;  %2226 = vmatprep.subr.bf16.mxu0 %v2530_v55 }
  0xf0   : > { %2490 = vset.pattern.permute.xlu1 %v2864_v11  ;;  %2495 = vset.pattern.permute.xlu0 %v2865_v12  ;;  %v2540_v12 = vld [vmem:[#allocation11 + $0x38] sm:$0xff]  }
  0xf1   : > { %912 = vperm.xlu1 %2490, %v3232_v2   ;;  %1271 = vperm.xlu0 %2495, %v3232_v2  }
  0xf2   : > { %2326 = vmatmul.mubr.msk.bf16.vlgmr.msra.gmra.mrb[4].mxu1 %vm467_vm0, %v3232_v2  ;;  %2227 = vmatpush3.bf16.msra.mxu0 %v2532_v58 }
  0xf3   : > { %2239 = vmatpush3.bf16.msra.mxu1 %v2529_v54  ;;  %2228 = vmatprep.subr.bf16.mxu0 %v2534_v60 }
  0xf4   : > { %2240 = vmatprep.subr.bf16.mxu1 %v2531_v56 }
  0xf5   : > { %2491 = vset.pattern.permute.xlu1 %v2866_v13  ;;  %2498 = vset.pattern.permute.xlu0 %v2867_v14  ;;  %v2541_v13 = vld [vmem:[#allocation11 + $0x98] sm:$0xff]  }
  0xf6   : > { %972 = vperm.xlu1 %2491, %v3232_v2   ;;  %1570 = vperm.xlu0 %2498, %v3232_v2  }
  0xf7   : > { %2241 = vmatpush3.bf16.msra.mxu1 %v2533_v59  ;;  %2229 = vmatpush3.bf16.msra.mxu0 %v2536_v3 }
  0xf8   : > { %2242 = vmatprep.subr.bf16.mxu1 %v2535_v63  ;;  %2230 = vmatprep.subr.bf16.mxu0 %v2538_v6 }
  0xfa   : > { %2493 = vset.pattern.permute.xlu1 %v2868_v15  ;;  %2501 = vset.pattern.permute.xlu0 %v2869_v16 }
  0xfb   : > { %1259 = vperm.xlu1 %2493, %v3232_v2   ;;  %1582 = vperm.xlu0 %2501, %v3232_v2  }
  0xfc   : > { %2243 = vmatpush3.bf16.msra.mxu1 %v2537_v4  ;;  %2231 = vmatpush3.bf16.msra.mxu0 %v2540_v12 }
  0xfd   : > { %2244 = vmatprep.subr.bf16.mxu1 %v2539_v7  ;;  %2260 = vmatprep.subr.bf16.mxu0 %v2550_v52  ;;  %v2558_v7 = vld [vmem:[#allocation11 + $0x1c0] sm:$0xff]  }
  0xff   : > { %2494 = vset.pattern.permute.xlu1 %v2870_v17  ;;  %2504 = vset.pattern.permute.xlu0 %v2871_v18  ;;  %v2542_v17 = vld [vmem:[#allocation11 + $0xe0] sm:$0xff]  }
 0x100   : > { %1211 = vperm.xlu1 %2494, %v3232_v2   ;;  %1546 = vperm.xlu0 %2504, %v3232_v2  }
 0x101   : > { %2245 = vmatpush3.bf16.msra.mxu1 %v2541_v13 }
 0x102   : > { %2246 = vmatprep.subr.bf16.mxu1 %v2542_v17 }
 0x104   : > { %2496 = vset.pattern.permute.xlu1 %v2872_v19  ;;  %2507 = vset.pattern.permute.xlu0 %v2873_v20  ;;  %v2543_v19 = vld [vmem:[#allocation11 + $0xa0] sm:$0xff]  }
 0x105   : > { %1223 = vperm.xlu1 %2496, %v3232_v2   ;;  %936 = vperm.xlu0 %2507, %v3232_v2  }
 0x106   : > { %2247 = vmatpush3.bf16.msra.mxu1 %v2543_v19 }
 0x109   : > { %2497 = vset.pattern.permute.xlu1 %v2874_v21  ;;  %2510 = vset.pattern.permute.xlu0 %v2875_v22 }
 0x10a   : > { %1283 = vperm.xlu1 %2497, %v3232_v2  }
 0x10e   : > { %2499 = vset.pattern.permute.xlu1 %v2876_v23 }
 0x10f   : > { %1235 = vperm.xlu1 %2499, %v3232_v2  }
 0x113   : > { %2500 = vset.pattern.permute.xlu1 %v2877_v24 }
 0x114   : > { %1522 = vperm.xlu1 %2500, %v3232_v2  }
 0x118   : > { %2502 = vset.pattern.permute.xlu1 %v2878_v25 }
 0x119   : > { %1534 = vperm.xlu1 %2502, %v3232_v2  }
 0x11d   : > { %2503 = vset.pattern.permute.xlu1 %v2879_v26 }
 0x11e   : > { %1594 = vperm.xlu1 %2503, %v3232_v2  }
 0x122   : > { %2505 = vset.pattern.permute.xlu1 %v2880_v27  ;;  %v2544_v27 = vld [vmem:[#allocation11 + $0xe8] sm:$0xff]  }
 0x123   : > { %623 = vperm.xlu1 %2505, %v3232_v2   ;;  %2248 = vmatprep.subr.bf16.mxu1 %v2544_v27 }
 0x124   : > { %2249 = vmatpush3.bf16.msra.mxu1 %v2545_v30 }
 0x125   : > { %2250 = vmatprep.subr.bf16.mxu1 %v2546_v39 }
 0x127   : > { %2506 = vset.pattern.permute.xlu1 %v2882_v32 }
 0x128   : > { %575 = vperm.xlu1 %2506, %v3232_v2  }
 0x12c   : > { %2508 = vset.pattern.permute.xlu1 %v2883_v36 }
 0x12d   : > { %888 = vperm.xlu1 %2508, %v3232_v2  }
 0x131   : > { %2509 = vset.pattern.permute.xlu1 %v2885_v40  ;;  %v2547_v40 = vld [vmem:[#allocation11 + $0xb0] sm:$0xff]  }
 0x132   : > { %1247 = vperm.xlu1 %2509, %v3232_v2   ;;  %2251 = vmatpush3.bf16.msra.mxu1 %v2547_v40 }
 0x133   : > { %2252 = vmatprep.subr.bf16.mxu1 %v2548_v46 }
 0x136   : > { %2511 = vset.pattern.permute.xlu1 %v2886_v45  ;;  %2253 = vmatpush3.bf16.msra.mxu1 %v2549_v49 }
 0x137   : > { %2282 = vmatprep.subr.bf16.mxu1 %v2558_v7 }
 0x157   : > { %v648_v61 = vpop.permute.xlu1 %647  ;;  %v636_v62 = vpop.permute.xlu0 %635 }
 0x158   : > { %v656_v0 = vrot.slane %v648_v61, %v3279_v57  ;;  %v644_v1 = vrot.slane %v636_v62, %v3279_v57 }
 0x15a   : > { %v645_v5 = vmul.bf16 %v644_v1, %v3269_v41  ;;  %v657_v8 = vmul.bf16 %v656_v0, %v3269_v41 }
 0x15c   : > { %v2112_v9 = vcombine.low %v645_v5, %v645_v5  ;;  %v600_v10 = vpop.permute.xlu1 %599  ;;  %v588_v11 = vpop.permute.xlu0 %587  ;;  %v2113_v18 = vcombine.low %v657_v8, %v657_v8 }
 0x15d   : > { %v608_v14 = vrot.slane %v600_v10, %v3279_v57  ;;  %v596_v15 = vrot.slane %v588_v11, %v3279_v57 }
 0x15e   : > { %688 = vrot.lane.b32.xlu1 %v2112_v9, %s2888_s8 }
 0x15f   : > { %v597_v16 = vmul.bf16 %v596_v15, %v3269_v41  ;;  %v609_v20 = vmul.bf16 %v608_v14, %v3269_v41 }
 0x161   : > { %v2109_v21 = vcombine.low %v597_v16, %v597_v16  ;;  %v660_v22 = vpop.permute.xlu1 %659  ;;  %v949_v23 = vpop.permute.xlu0 %948  ;;  %v2110_v32 = vcombine.low %v609_v20, %v609_v20  ;;  %v2891_v16 = vmov 24  }
 0x162   : > { %v668_v24 = vrot.slane %v660_v22, %v3279_v57  ;;  %693 = vrot.lane.b32.xlu1 %v2113_v18, %s2889_s6  ;;  %v957_v25 = vrot.slane %v949_v23, %v3279_v57 }
 0x163   : > { %673 = vrot.lane.b32.xlu0 %v2109_v21, %s2888_s8 }
 0x164   : > { %v669_v28 = vmul.bf16 %v668_v24, %v3269_v41  ;;  %v958_v29 = vmul.bf16 %v957_v25, %v3269_v41 }
 0x166   : > { %v2114_v33 = vcombine.low %v669_v28, %v669_v28  ;;  %v612_v34 = vpop.permute.xlu1 %611  ;;  %v961_v35 = vpop.permute.xlu0 %960  ;;  %v2134_v37 = vcombine.low %v958_v29, %v958_v29 }
 0x167   : > { %v620_v36 = vrot.slane %v612_v34, %v3279_v57  ;;  %678 = vrot.lane.b32.xlu0 %v2110_v32, %s2889_s6  ;;  %v969_v38 = vrot.slane %v961_v35, %v3279_v57 }
 0x168   : > { %698 = vrot.lane.b32.xlu1 %v2114_v33, %s2890_s27 }
 0x169   : > { %v621_v42 = vmul.bf16 %v620_v36, %v3269_v41  ;;  %v970_v43 = vmul.bf16 %v969_v38, %v3269_v41 }
 0x16b   : > { %v2111_v44 = vcombine.low %v621_v42, %v621_v42  ;;  %v901_v45 = vpop.permute.xlu1 %900  ;;  %1001 = vrot.lane.b32.xlu0 %v2134_v37, %s2888_s8  ;;  %v925_v48 = vpop.permute.xlu0 %924  ;;  %v2135_v50 = vcombine.low %v970_v43, %v970_v43 }
 0x16c   : > { %v909_v47 = vrot.slane %v901_v45, %v3279_v57  ;;  %v933_v53 = vrot.slane %v925_v48, %v3279_v57 }
 0x16d   : > { %683 = vrot.lane.b32.xlu1 %v2111_v44, %s2890_s27 }
 0x16e   : > { %v910_v51 = vmul.bf16 %v909_v47, %v3269_v41  ;;  %v934_v59 = vmul.bf16 %v933_v53, %v3269_v41 }
 0x170   : > { %v2131_v54 = vcombine.low %v910_v51, %v910_v51  ;;  %v913_v55 = vpop.permute.xlu1 %912  ;;  %v2133_v63 = vcombine.low %v934_v59, %v934_v59  ;;  %v1272_v1 = vpop.permute.xlu0 %1271 }
 0x171   : > { %v921_v56 = vrot.slane %v913_v55, %v3279_v57  ;;  %1006 = vrot.lane.b32.xlu1 %v2135_v50, %s2889_s6  ;;  %v1280_v6 = vrot.slane %v1272_v1, %v3279_v57 }
 0x172   : > { %986 = vrot.lane.b32.xlu0 %v2131_v54, %s2888_s8 }
 0x173   : > { %v922_v58 = vmul.bf16 %v921_v56, %v3269_v41  ;;  %v1281_v11 = vmul.bf16 %v1280_v6, %v3269_v41 }
 0x175   : > { %v2132_v60 = vcombine.low %v922_v58, %v922_v58  ;;  %v973_v61 = vpop.permute.xlu1 %972  ;;  %v1571_v14 = vpop.permute.xlu0 %1570  ;;  %v2157_v15 = vcombine.low %v1281_v11, %v1281_v11  ;;  %v2551_v11 = vld [vmem:[#allocation11 + $0x100] sm:$0xff]  }
 0x176   : > { %v981_v62 = vrot.slane %v973_v61, %v3279_v57  ;;  %v1579_v20 = vrot.slane %v1571_v14, %v3279_v57  ;;  %v2552_v14 = vld [vmem:[#allocation11 + $0x148] sm:$0xff]  }
 0x177   : > { %991 = vrot.lane.b32.xlu0 %v2132_v60, %s2889_s6 }
 0x178   : > { %v982_v0 = vmul.bf16 %v981_v62, %v3269_v41  ;;  %v1580_v24 = vmul.bf16 %v1579_v20, %v3269_v41  ;;  %v2555_v20 = vld [vmem:[#allocation11 + $0x110] sm:$0xff]  }
 0x17a   : > { %v2136_v3 = vcombine.low %v982_v0, %v982_v0  ;;  %v1260_v4 = vpop.permute.xlu1 %1259 }
 0x17b   : > { %996 = vrot.lane.b32.xlu0 %v2133_v63, %s2890_s27  ;;  %v1268_v5 = vrot.slane %v1260_v4, %v3279_v57 }
 0x17c   : > { %1011 = vrot.lane.b32.xlu1 %v2136_v3, %s2890_s27 }
 0x17d   : > { %v1269_v8 = vmul.bf16 %v1268_v5, %v3269_v41 }
 0x17f   : > { %v2156_v9 = vcombine.low %v1269_v8, %v1269_v8  ;;  %1199 = vperm.xlu0 %2510, %v3232_v2   ;;  %v1212_v10 = vpop.permute.xlu1 %1211 }
 0x180   : > { %1558 = vperm.xlu1 %2511, %v3232_v2   ;;  %v1220_v12 = vrot.slane %v1212_v10, %v3279_v57 }
 0x182   : > { %v1221_v13 = vmul.bf16 %v1220_v12, %v3269_v41 }
 0x183   : > { %1312 = vrot.lane.b32.xlu0 %v2156_v9, %s2888_s8 }
 0x184   : > { %2512 = vset.pattern.permute.xlu1 %v2891_v16  ;;  %v1224_v17 = vpop.permute.xlu1 %1223  ;;  %2513 = vset.pattern.permute.xlu0 %v2879_v26  ;;  %v2153_v18 = vcombine.low %v1221_v13, %v1221_v13  ;;  %v1583_v26 = vpop.permute.xlu0 %1582  ;;  %v2553_v16 = vld [vmem:[#allocation11 + $0x108] sm:$0xff]  }
 0x185   : > { %1510 = vperm.xlu1 %2512, %v3232_v2   ;;  %v1232_v19 = vrot.slane %v1224_v17, %v3279_v57  ;;  %v2178_v2 = vcombine.low %v1580_v24, %v1580_v24  ;;  %v1591_v28 = vrot.slane %v1583_v26, %v3279_v57  ;;  %v2557_v26 = vld [vmem:[#allocation11 + $0x118] sm:$0xff]  }
 0x187   : > { %v1233_v21 = vmul.bf16 %v1232_v19, %v3269_v41  ;;  %1317 = vrot.lane.b32.xlu0 %v2157_v15, %s2889_s6  ;;  %v1592_v34 = vmul.bf16 %v1591_v28, %v3269_v41 }
 0x188   : > { %v1547_v38 = vpop.permute.xlu0 %1546 }
 0x189   : > { %v2154_v22 = vcombine.low %v1233_v21, %v1233_v21  ;;  %1297 = vrot.lane.b32.xlu1 %v2153_v18, %s2888_s8  ;;  %v1284_v23 = vpop.permute.xlu1 %1283  ;;  %v2179_v39 = vcombine.low %v1592_v34, %v1592_v34  ;;  %v1555_v42 = vrot.slane %v1547_v38, %v3279_v57  ;;  %v2554_v18 = vld [vmem:[#allocation11 + $0x150] sm:$0xff]   ;;  %v2559_v34 = vld [vmem:[#allocation11 + $0x180] sm:$0xff]   ;;  %v2562_v38 = vld [vmem:[#allocation11 + $0x1c8] sm:$0xff]  }
 0x18a   : > { %v1292_v25 = vrot.slane %v1284_v23, %v3279_v57 }
 0x18b   : > { %v1556_v47 = vmul.bf16 %v1555_v42, %v3269_v41  ;;  %v2563_v42 = vld [vmem:[#allocation11 + $0x188] sm:$0xff]  }
 0x18c   : > { %v1293_v27 = vmul.bf16 %v1292_v25, %v3269_v41  ;;  %v937_v60 = vpop.permute.xlu0 %936 }
 0x18d   : > { %1302 = vrot.lane.b32.xlu1 %v2154_v22, %s2889_s6  ;;  %v2177_v51 = vcombine.low %v1556_v47, %v1556_v47  ;;  %v945_v17 = vrot.slane %v937_v60, %v3279_v57  ;;  %v2556_v22 = vld [vmem:[#allocation11 + $0x158] sm:$0xff]   ;;  %v2569_v47 = vld [vmem:[#allocation11 + $0x130] sm:$0xff]   ;;  %v2577_v60 = vld [vmem:[#allocation11 + $0x1a8] sm:$0xff]  }
 0x18e   : > { %v2158_v29 = vcombine.low %v1293_v27, %v1293_v27  ;;  %v1236_v30 = vpop.permute.xlu1 %1235 }
 0x18f   : > { %v1244_v32 = vrot.slane %v1236_v30, %v3279_v57  ;;  %v946_v21 = vmul.bf16 %v945_v17, %v3269_v41 }
 0x190   : > { %1322 = vrot.lane.b32.xlu0 %v2158_v29, %s2890_s27 }
 0x191   : > { %v1245_v33 = vmul.bf16 %v1244_v32, %v3269_v41  ;;  %1623 = vrot.lane.b32.xlu1 %v2178_v2, %s2888_s8  ;;  %v2560_v2 = vld [vmem:[#allocation11 + $0x160] sm:$0xff]  }
 0x193   : > { %v2155_v35 = vcombine.low %v1245_v33, %v1245_v33  ;;  %v1523_v36 = vpop.permute.xlu1 %1522 }
 0x194   : > { %v1531_v37 = vrot.slane %v1523_v36, %v3279_v57 }
 0x195   : > { %1307 = vrot.lane.b32.xlu0 %v2155_v35, %s2890_s27  ;;  %v2561_v35 = vld [vmem:[#allocation11 + $0x120] sm:$0xff]  }
 0x196   : > { %v1532_v40 = vmul.bf16 %v1531_v37, %v3269_v41 }
 0x198   : > { %v2175_v43 = vcombine.low %v1532_v40, %v1532_v40  ;;  %v1535_v44 = vpop.permute.xlu1 %1534 }
 0x199   : > { %v1543_v45 = vrot.slane %v1535_v44, %v3279_v57  ;;  %1628 = vrot.lane.b32.xlu0 %v2179_v39, %s2889_s6  ;;  %v2564_v39 = vld [vmem:[#allocation11 + $0x168] sm:$0xff]   ;;  %v2566_v44 = vld [vmem:[#allocation11 + $0x1d0] sm:$0xff]  }
 0x19a   : > { %1608 = vrot.lane.b32.xlu1 %v2175_v43, %s2888_s8  ;;  %v2565_v43 = vld [vmem:[#allocation11 + $0x128] sm:$0xff]   ;;  %s2766_s8 = sshll.u32 %s2892_s17, 4  ;;  %s2767_s8 = int_to_ptr.vmem [resolvable:$false] %s2766_s8 }
 0x19b   : > { %v1544_v46 = vmul.bf16 %v1543_v45, %v3269_v41  ;;  %v2568_v45 = vld [vmem:[#allocation11 + $0x170] sm:$0xff]   ;;  %p2769_p5 = scmp.lt.s32.totalorder %s3423_s4, %s2767_s8 }
 0x19d   : > { %v2176_v48 = vcombine.low %v1544_v46, %v1544_v46  ;;  %v1595_v49 = vpop.permute.xlu1 %1594  ;;  %v2567_v46 = vld [vmem:[#allocation11 + $0x190] sm:$0xff]  }
 0x19e   : > { %v1603_v50 = vrot.slane %v1595_v49, %v3279_v57  ;;  %v2572_v49 = vld [vmem:[#allocation11 + $0x178] sm:$0xff]  }
 0x19f   : > { %1613 = vrot.lane.b32.xlu1 %v2176_v48, %s2889_s6  ;;  %v2570_v48 = vld [vmem:[#allocation11 + $0x1d8] sm:$0xff]   ;;  %s2768_s6 = scalar_lea.vmem %s2767_s8, 256 }
 0x1a0   : > { %v1604_v52 = vmul.bf16 %v1603_v50, %v3269_v41  ;;  %v2571_v50 = vld [vmem:[#allocation11 + $0x198] sm:$0xff]   ;;  %p2770_p7 = scmp.lt.s32.totalorder %s2768_s6, %s2762_s16 }
 0x1a2   : > { %v2180_v53 = vcombine.low %v1604_v52, %v1604_v52  ;;  %v624_v54 = vpop.permute.xlu1 %623  ;;  %v2574_v52 = vld [vmem:[#allocation11 + $0x1e0] sm:$0xff]   ;;  %p2771_p8 = por %p2770_p7, %p2769_p5 }
 0x1a3   : > { %1618 = vrot.lane.b32.xlu1 %v2177_v51, %s2890_s27  ;;  %v632_v59 = vrot.slane %v624_v54, %v3279_v57  ;;  %v2573_v51 = vld [vmem:[#allocation11 + $0x138] sm:$0xff]   ;;  %v2575_v54 = vld [vmem:[#allocation11 + $0x1a0] sm:$0xff]  }
 0x1a4   : > { %1633 = vrot.lane.b32.xlu0 %v2180_v53, %s2890_s27  ;;  %p2772_p1 = pnand %p2771_p8, %p2765_p10 }
 0x1a5   : > { %v633_v62 = vmul.bf16 %v632_v59, %v3269_v41 }
 0x1a7   : > { %v576_v55 = vpop.permute.xlu1 %575 }
 0x1a8   : > { %v584_v63 = vrot.slane %v576_v55, %v3279_v57 }
 0x1aa   : > { %v585_v4 = vmul.bf16 %v584_v63, %v3269_v41 }
 0x1ac   : > { %v889_v56 = vpop.permute.xlu1 %888 }
 0x1ad   : > { %v897_v23 = vrot.slane %v889_v56, %v3279_v57  ;;  %v2576_v56 = vld [vmem:[#allocation11 + $0x1e8] sm:$0xff]  }
 0x1af   : > { %v898_v28 = vmul.bf16 %v897_v23, %v3269_v41 }
 0x1b1   : > { %v3357_v58 = vpop.permute.xlu1 %1247 }
 0x1d0   : > { %v689_v61 = vpop.permute.xlu1 %688 }
 0x1d1   : > { %v712_v3 = vsel %vm467_vm0, %v633_v62, %v689_v61  ;;  %v1256_v61 = vrot.slane %v3357_v58, %v3279_v57  ;;  %v2578_v62 = vld [vmem:[#allocation11 + $0x1f0] sm:$0xff]  }
 0x1d4   : > { %v694_v1 = vpop.permute.xlu1 %693 }
 0x1d5   : > { %v674_v0 = vpop.permute.xlu0 %673  ;;  %v714_v5 = vsel %vm703_vm2, %v712_v3, %v694_v1  ;;  %v505_v1 = vpop.f32.mrb[0].mxu1 }
 0x1d6   : > { %v702_v9 = vsel %vm467_vm0, %v585_v4, %v674_v0  ;;  %v2579_v4 = vld [vmem:[#allocation11 + $0x1b0] sm:$0xff]  }
 0x1d9   : > { %v679_v6 = vpop.permute.xlu0 %678 }
 0x1da   : > { %v699_v7 = vpop.permute.xlu1 %698  ;;  %v705_v12 = vsel %vm703_vm2, %v702_v9, %v679_v6  ;;  %v1257_v6 = vmul.bf16 %v1256_v61, %v3269_v41 }
 0x1db   : > { %v716_v8 = vsel %vm706_vm3, %v714_v5, %v699_v7  ;;  %v2319_v5 = vpop.f32.mrb[1].mxu1  ;;  %v2580_v7 = vld [vmem:[#allocation11 + $0x1f8] sm:$0xff]  }
 0x1dc   : > { %878 = vmatprep.mubr.bf16.mxu0 %v716_v8  ;;  %v508_v8 = vpop.f32.mrb[2].mxu1 }
 0x1dd   : > { %v1002_v10 = vpop.permute.xlu0 %1001 }
 0x1de   : > { %v1023_v27 = vsel %vm467_vm0, %v946_v21, %v1002_v10 }
 0x1df   : > { %v684_v13 = vpop.permute.xlu1 %683 }
 0x1e0   : > { %v708_v15 = vsel %vm706_vm3, %v705_v12, %v684_v13 }
 0x1e1   : > { %879 = vmatmul.mubr.bf16.vlgmr.msra.gmra.mrb[0].mxu0 %v708_v15 }
 0x1e2   : > { %2261 = vmatpush3.bf16.msra.mxu0 %v2551_v11  ;;  %v2320_v11 = vpop.f32.mrb[3].mxu1 }
 0x1e3   : > { %2262 = vmatprep.subr.bf16.mxu0 %v2552_v14  ;;  %v1007_v25 = vpop.permute.xlu1 %1006  ;;  %v2581_v14 = vld [vmem:[#allocation11 + $0x1b8] sm:$0xff]   ;;  %v1822_v11 = vstv %s1820_s25 }
 0x1e4   : > { %v987_v19 = vpop.permute.xlu0 %986  ;;  %v1025_v32 = vsel %vm703_vm2, %v1023_v27, %v1007_v25 }
 0x1e5   : > { %v1015_v30 = vsel %vm467_vm0, %v898_v28, %v987_v19 }
 0x1e6   : > { %2263 = vmatpush3.bf16.msra.mxu0 %v2553_v16 }
 0x1e7   : > { %2264 = vmatprep.subr.bf16.mxu0 %v2554_v18 }
 0x1e9   : > { %v992_v24 = vpop.permute.xlu0 %991 }
 0x1ea   : > { %2265 = vmatpush3.bf16.msra.mxu0 %v2555_v20  ;;  %v1017_v36 = vsel %vm703_vm2, %v1015_v30, %v992_v24  ;;  %v560_v20 = vpop.f32.mrb[4].mxu1 }
 0x1eb   : > { %2266 = vmatprep.subr.bf16.mxu0 %v2556_v22  ;;  %v561_v22 = vadd.f32 %v560_v20, %v505_v1  ;;  %v2327_v23 = vpop.f32.mrb[5].mxu1 }
 0x1ec   : > { %v563_v25 = vpop.f32.mrb[6].mxu1 }
 0x1ed   : > { %v997_v29 = vpop.permute.xlu0 %996  ;;  %v2328_v27 = vpop.f32.mrb[7].mxu1 }
 0x1ee   : > { %v1012_v33 = vpop.permute.xlu1 %1011  ;;  %2267 = vmatpush3.bf16.msra.mxu0 %v2557_v26  ;;  %v1019_v40 = vsel %vm706_vm3, %v1017_v36, %v997_v29 }
 0x1ef   : > { %v1027_v37 = vsel %vm706_vm3, %v1025_v32, %v1012_v33  ;;  %2268 = vmatprep.subr.bf16.mxu0 %v2560_v2 }
 0x1f0   : > { %1189 = vmatprep.mubr.bf16.mxu1 %v1027_v37 }
 0x1f1   : > { %1190 = vmatmul.mubr.bf16.vlgmr.msra.gmra.mrb[8].mxu1 %v1019_v40 }
 0x1f2   : > { %2283 = vmatpush3.bf16.msra.mxu1 %v2559_v34  ;;  %2269 = vmatpush3.bf16.msra.mxu0 %v2561_v35 }
 0x1f3   : > { %2284 = vmatprep.subr.bf16.mxu1 %v2562_v38  ;;  %2270 = vmatprep.subr.bf16.mxu0 %v2564_v39 }
 0x1f6   : > { %2285 = vmatpush3.bf16.msra.mxu1 %v2563_v42  ;;  %2271 = vmatpush3.bf16.msra.mxu0 %v2565_v43  ;;  %v2582_v43 = vld [vmem:[#allocation12] sm:$0xff]  }
 0x1f7   : > { %2286 = vmatprep.subr.bf16.mxu1 %v2566_v44  ;;  %2272 = vmatprep.subr.bf16.mxu0 %v2568_v45  ;;  %v2584_v44 = vld [vmem:[#allocation12 + $0x10] sm:$0xff]   ;;  %v2586_v45 = vld [vmem:[#allocation12 + $0x20] sm:$0xff]  }
 0x1fa   : > { %2287 = vmatpush3.bf16.msra.mxu1 %v2567_v46  ;;  %2273 = vmatpush3.bf16.msra.mxu0 %v2569_v47  ;;  %v2587_v46 = vld [vmem:[#allocation12 + $0x28] sm:$0xff]   ;;  %v2588_v47 = vld [vmem:[#allocation12 + $0x30] sm:$0xff]  }
 0x1fb   : > { %2288 = vmatprep.subr.bf16.mxu1 %v2570_v48  ;;  %2274 = vmatprep.subr.bf16.mxu0 %v2572_v49  ;;  %v2589_v48 = vld [vmem:[#allocation12 + $0x38] sm:$0xff]   ;;  %v2108_v49 = vld [vmem:[%s3470_s5] ss:$0 sm:$0xff] }
 0x1fe   : > { %v1200_v53 = vpop.permute.xlu0 %1199  ;;  %2289 = vmatpush3.bf16.msra.mxu1 %v2571_v50  ;;  %2275 = vmatpush3.bf16.msra.mxu0 %v2573_v51 }
 0x1ff   : > { %v1559_v55 = vpop.permute.xlu1 %1558  ;;  %2290 = vmatprep.subr.bf16.mxu1 %v2574_v52  ;;  %2329 = vmatprep.subr.bf16.mxu0 %v2881_v31  ;;  %v1208_v63 = vrot.slane %v1200_v53, %v3279_v57  ;;  %v573_v52 = vadd.f32 %v2108_v49, %v561_v22 }
 0x200   : > { %v1567_v18 = vrot.slane %v1559_v55, %v3279_v57 }
 0x201   : > { %v1209_v9 = vmul.bf16 %v1208_v63, %v3269_v41 }
 0x202   : > { %v1313_v59 = vpop.permute.xlu0 %1312  ;;  %2291 = vmatpush3.bf16.msra.mxu1 %v2575_v54  ;;  %v1568_v2 = vmul.bf16 %v1567_v18, %v3269_v41 }
 0x203   : > { %2292 = vmatprep.subr.bf16.mxu1 %v2576_v56  ;;  %v1334_v58 = vsel %vm467_vm0, %v1257_v6, %v1313_v59 }
 0x204   : > { %v1511_v0 = vpop.permute.xlu1 %1510 }
 0x205   : > { %v1519_v32 = vrot.slane %v1511_v0, %v3279_v57  ;;  %v2583_v57 = vld [vmem:[#allocation12 + $0x8] sm:$0xff]  }
 0x206   : > { %v1318_v3 = vpop.permute.xlu0 %1317  ;;  %2293 = vmatpush3.bf16.msra.mxu1 %v2577_v60 }
 0x207   : > { %2294 = vmatprep.subr.bf16.mxu1 %v2578_v62  ;;  %v1336_v12 = vsel %vm703_vm2, %v1334_v58, %v1318_v3  ;;  %v1520_v37 = vmul.bf16 %v1519_v32, %v3269_v41  ;;  %v2585_v41 = vld [vmem:[#allocation12 + $0x18] sm:$0xff]  }
 0x208   : > { %v1298_v10 = vpop.permute.xlu1 %1297 }
 0x209   : > { %v1326_v16 = vsel %vm467_vm0, %v1209_v9, %v1298_v10 }
 0x20a   : > { %v1323_v13 = vpop.permute.xlu0 %1322  ;;  %2295 = vmatpush3.bf16.msra.mxu1 %v2579_v4 }
 0x20b   : > { %v1338_v15 = vsel %vm706_vm3, %v1336_v12, %v1323_v13  ;;  %2296 = vmatprep.subr.bf16.mxu1 %v2580_v7 }
 0x20c   : > { %v1303_v17 = vpop.permute.xlu1 %1302  ;;  %1500 = vmatprep.mubr.bf16.mxu0 %v1338_v15 }
 0x20d   : > { %v1328_v19 = vsel %vm703_vm2, %v1326_v16, %v1303_v17  ;;  %v2197_v16 = vld [vmem:[%s3472_s7] ss:$0 sm:$0xff] }
 0x20e   : > { %v1308_v21 = vpop.permute.xlu0 %1307  ;;  %2297 = vmatpush3.bf16.msra.mxu1 %v2581_v14 }
 0x20f   : > { %v1330_v24 = vsel %vm706_vm3, %v1328_v19, %v1308_v21 }
 0x210   : > { %v1624_v26 = vpop.permute.xlu1 %1623  ;;  %1501 = vmatmul.mubr.bf16.vlgmr.msra.gmra.mrb[4].mxu0 %v1330_v24 }
 0x211   : > { %2345 = vmatprep.mubr.msk.bf16.mxu0 %vm2884_vm1, %v2881_v31  ;;  %v1645_v29 = vsel %vm467_vm0, %v1568_v2, %v1624_v26  ;;  %2330 = vmatpush3.bf16.msra.mxu0 %v2582_v43 }
 0x212   : > { %v1629_v28 = vpop.permute.xlu0 %1628  ;;  %2331 = vmatprep.subr.bf16.mxu0 %v2881_v31 }
 0x213   : > { %v1647_v33 = vsel %vm703_vm2, %v1645_v29, %v1629_v28 }
 0x214   : > { %v1609_v30 = vpop.permute.xlu1 %1608 }
 0x215   : > { %v1637_v38 = vsel %vm467_vm0, %v1520_v37, %v1609_v30  ;;  %2332 = vmatpush3.bf16.msra.mxu0 %v2583_v57 }
 0x216   : > { %v1634_v34 = vpop.permute.xlu0 %1633  ;;  %2333 = vmatprep.subr.bf16.mxu0 %v2881_v31 }
 0x217   : > { %v1649_v35 = vsel %vm706_vm3, %v1647_v33, %v1634_v34 }
 0x218   : > { %v1614_v36 = vpop.permute.xlu1 %1613  ;;  %1811 = vmatprep.mubr.bf16.mxu1 %v1649_v35 }
 0x219   : > { %v1639_v39 = vsel %vm703_vm2, %v1637_v38, %v1614_v36  ;;  %2334 = vmatpush3.bf16.msra.mxu0 %v2584_v44 }
 0x21a   : > { %2335 = vmatprep.subr.bf16.mxu0 %v2881_v31 }
 0x21c   : > { %v1619_v40 = vpop.permute.xlu1 %1618 }
 0x21d   : > { %v1641_v42 = vsel %vm706_vm3, %v1639_v39, %v1619_v40  ;;  %2336 = vmatpush3.bf16.msra.mxu0 %v2585_v41 }
 0x21e   : > { %1812 = vmatmul.mubr.bf16.vlgmr.msra.gmra.mrb[12].mxu1 %v1641_v42  ;;  %2337 = vmatprep.subr.bf16.mxu0 %v2881_v31 }
 0x221   : > { %2338 = vmatpush3.bf16.msra.mxu0 %v2586_v45 }
 0x222   : > { %2339 = vmatprep.subr.bf16.mxu0 %v2881_v31 }
 0x225   : > { %2340 = vmatpush3.bf16.msra.mxu0 %v2587_v46 }
 0x226   : > { %2341 = vmatprep.subr.bf16.mxu0 %v2881_v31 }
 0x229   : > { %2342 = vmatpush3.bf16.msra.mxu0 %v2588_v47 }
 0x22a   : > { %2343 = vmatprep.subr.bf16.mxu0 %v2881_v31 }
 0x22d   : > { %2344 = vmatpush3.bf16.msra.mxu0 %v2589_v48 }
 0x2b4   : > { %v2232_v50 = vpop.f32.mrb[0].mxu0 }
 0x2b5   : > { %v2233_v51 = vpop.f32.mrb[1].mxu0 }
 0x2b6   : > { %v2234_v53 = vadd.f32 %v2233_v51, %v2232_v50  ;;  %v2235_v54 = vpop.f32.mrb[2].mxu0 }
 0x2b7   : > { %v2236_v55 = vpop.f32.mrb[3].mxu0 }
 0x2b8   : > { %v886_v56 = vadd.f32 %v2234_v53, %v573_v52 }
 0x2c4   : > { %v2254_v59 = vpop.f32.mrb[8].mxu1 }
 0x2c5   : > { %v2255_v60 = vpop.f32.mrb[9].mxu1 }
 0x2c6   : > { %v2256_v61 = vadd.f32 %v2255_v60, %v2254_v59  ;;  %v2257_v62 = vpop.f32.mrb[10].mxu1 }
 0x2c7   : > { %v2258_v63 = vpop.f32.mrb[11].mxu1 }
 0x2c8   : > { %v1197_v0 = vadd.f32 %v2256_v61, %v886_v56 }
 0x2e3   : > { %v2276_v31 = vpop.f32.mrb[4].mxu0 }
 0x2e4   : > { %v2277_v1 = vpop.f32.mrb[5].mxu0 }
 0x2e5   : > { %v2278_v3 = vadd.f32 %v2277_v1, %v2276_v31  ;;  %v2279_v4 = vpop.f32.mrb[6].mxu0 }
 0x2e6   : > { %v2280_v5 = vpop.f32.mrb[7].mxu0 }
 0x2e7   : > { %v1508_v6 = vadd.f32 %v2278_v3, %v1197_v0 }
 0x2f1   : > { %v2298_v7 = vpop.f32.mrb[12].mxu1 }
 0x2f2   : > { %v2299_v8 = vpop.f32.mrb[13].mxu1 }
 0x2f3   : > { %v2300_v9 = vadd.f32 %v2299_v8, %v2298_v7  ;;  %v2301_v10 = vpop.f32.mrb[14].mxu1 }
 0x2f4   : > { %v2302_v58 = vpop.f32.mrb[15].mxu1 }
 0x2f5   : > { %v1819_v12 = vadd.f32 %v2300_v9, %v1508_v6 }
 0x2f7   : > { %vm1821_vm4 = vcmp.ge.f32.partialorder %v1819_v12, 0.0  ;;  %v1823_v13 = vmul.f32 %v1822_v11, %v1819_v12 }
 0x2f9   : > { %v1824_v14 = vsel %vm1821_vm4, %v1819_v12, %v1823_v13 }
 0x2fa   : > { %v1825_v15 = vpack.c.bf16 %v1824_v14, %v1824_v14 }
 0x2fc   : > { %2346 = vmatmul.mubr.bf16.vlgmr.msra.gmra.mrb[8].mxu0 %v1825_v15 }
 0x3cf   : > { %v1931_v17 = vpop.f32.mrb[8].mxu0 }
 0x3d0   : > { %v1932_v18 = vadd.f32 %v2197_v16, %v1931_v17  ;;  %v2347_v19 = vpop.f32.mrb[9].mxu0 }
 0x3d1   : > { %v1934_v20 = vpop.f32.mrb[10].mxu0 }
 0x3d2   : > { %1937 = vst [vmem:[%s443_s20] sm:$0xff] %v1932_v18  ;;  %v2348_v21 = vpop.f32.mrb[11].mxu0 }
 0x3d3   : > { %2775 = shalt.err (!%p2772_p1)
}
 0x3d4   : > { %s2776_s22 = scalar_lea.hbm %s3421_s23, 128  ;;  %s2780_s10 = scalar_lea.hbm %s3474_s9, 256 }
 0x3d5   : > { %p2777_p6 = scmp.ne.s32.totalorder %s3421_s23, %s2776_s22  ;;  %p2781_p12 = scmp.lt.u32.totalorder %s3421_s23, %s3474_s9 }
 0x3d6   : > { %p2782_p3 = scmp.lt.u32.totalorder %s2780_s10, %s2776_s22  ;;  %p2784_p0 = scmp.lt.u32.totalorder %s2776_s22, %s3421_s23 }
 0x3d7   : > { %p2778_p11 = pnand %p2777_p6, %p3505_p2 }
 0x3d8   : > { %p2783_p13 = por %p2782_p3, %p2781_p12 }
 0x3d9   : > { %p2779_p9 = pneg %p2778_p11 }
 0x3da   : > { %p2785_p4 = por %p2784_p0, %p2783_p13 }
 0x3dc   : > { %p2786_p10 = pnand %p2785_p4, %p2779_p9 }
 0x3de   : > { %2789 = shalt.err (!%p2786_p10)
}
 0x3df   : > { %2369 = dma.vmem_to_hbm [thread:$0]  (%p3505_p2), %s3423_s4, 128, %s3421_s23, %s1939_s19  }
 0x3e0 PF: > { %s1964_s3 = sand.u32 1, %s2832_s11   ;;  %p3506_p5 = scmp.ne.s32.totalorder %s3495_s29, 0 }
 0x3e1   : > { %p3507_p7 = scmp.ge.s32.totalorder %s2844_s14, 2  ;;  %s1965_s30 = scalar_lea.sflag [#allocation5], %s1964_s3 }
 0x3e3   : > { %p2392_p8 = pnand %p3507_p7, %p3506_p5 }
 0x3e5   : > { %2827 = dma.done.wait (!%p2392_p8), %s1965_s30, 128  }
 0x3e6   : > { %2829 = vsyncadd (!%p2392_p8), %s1965_s30, 4294967168  ;;  %s3508_s15 = sld [smem:[#allocation21_spill]]  ;;  %p28_p1 = scmp.ge.s32.totalorder %s3098_s28, 4  }
 0x3e7   : > { %s3509_s11 = smov %s2836_s12  ;;  %s3510_s12 = smov %s2840_s13 }
 0x3e8   : > { %s3512_s14 = smov %s3098_s28  ;;  %30 = sbr.rel (!%p28_p1) target bundleno = 15 (0xf), region = 130 }
 0x3ec   : > { %s3511_s13 = smov %s3508_s15 }
 0x3ef   :  { %1970 = vsyncpa [#allocation4], 1 }
 0x3f0   :  { %1972 = vsyncpa [#allocation4 + $0x1], 1 }
 0x3f1   :  { %1973 = vsyncpa [#allocation7], 1 }
 0x3f2   :  { %1975 = vsyncpa [#allocation7 + $0x1], 1 }
 0x3f3   :  { %1976 = vsyncpa [#allocation10], 1 }
 0x3f4   :  { %1977 = vsyncpa [#allocation13], 1 }
 0x3f5   :  { %1978 = vsyncpa [#allocation5], 1 }
 0x3f6   :  { %1980 = vsyncpa [#allocation5 + $0x1], 1 }

// kernel: tpu_custom_call.1
= control target key start
LH: loop header
LB: loop body
LE: loop exit
PB: predicated region body
PF: predicated region fallthrough
CT: control target
= control target key end

     0   :  { %s3465_s0 = inlined_call_operand.hbm [shape: bf16[16,32], index: 0, kind: input, shape index: {}]   ;;  %s3466_s1 = inlined_call_operand.hbm [shape: bf16[16,32], index: 1, kind: input, shape index: {}]   ;;  %s3467_s2 = inlined_call_operand.hbm [shape: bf16[32,128], index: 2, kind: input, shape index: {}]   ;;  %s3468_s3 = inlined_call_operand.hbm [shape: bf16[32,128], index: 3, kind: input, shape index: {}]   ;;  %s3469_s4 = inlined_call_operand.hbm [shape: bf16[1024,128], index: 4, kind: input, shape index: {}]   ;;  %s3470_s5 = inlined_call_operand.vmem [shape: f32[1,128], index: 5, kind: input, shape index: {}]   ;;  %s3471_s6 = inlined_call_operand.hbm [shape: bf16[128,128], index: 6, kind: input, shape index: {}]   ;;  %s3472_s7 = inlined_call_operand.vmem [shape: f32[1,128], index: 7, kind: input, shape index: {}]   ;;  %s3473_s8 = inlined_call_operand.<no memory space> [shape: f32[1], index: 8, kind: input, shape index: {}]   ;;  %s3474_s9 = inlined_call_operand.hbm [shape: f32[16,128], index: 9, kind: output, shape index: {}]  }
   0x1   :  { %3479 = sst [smem:[#allocation22_spill]] %s3467_s2 }
   0x2   :  { %3480 = sst [smem:[#allocation23_spill]] %s3468_s3 }
   0x3   :  { %3481 = sst [smem:[#allocation24_spill]] %s3469_s4 }
   0x4   :  { %3482 = sst [smem:[#allocation25_spill]] %s3471_s6 }
   0x5   :  { %14 = sst [smem:[#allocation2]] %s3473_s8 }
   0x6   :  { %15 = vsyncpa [#allocation4], 0 }
   0x7   :  { %17 = vsyncpa [#allocation4 + $0x1], 0 }
   0x8   :  { %18 = vsyncpa [#allocation7], 0 }
   0x9   :  { %20 = vsyncpa [#allocation7 + $0x1], 0 }
   0xa   :  { %21 = vsyncpa [#allocation10], 0 }
   0xb   :  { %22 = vsyncpa [#allocation13], 0 }
   0xc   :  { %23 = vsyncpa [#allocation5], 0 }
   0xd   :  { %25 = vsyncpa [#allocation5 + $0x1], 0  ;;  %s2946_s11 = smov 0   ;;  %s2948_s12 = smov 0  }
   0xe   :  { %s2950_s13 = smov 0   ;;  %s2952_s14 = smov 0  }
   0xf LB: > { %s2846_s8 = smov [#allocation8]   ;;  %s2967_s16 = sadd.s32 4294967295, %s2844_s14   ;;  %s2844_s14 = sphi %s2952_s14, %s3512_s14   ;;  %s2840_s13 = sphi %s2950_s13, %s3511_s13   ;;  %s2836_s12 = sphi %s2948_s12, %s3510_s12   ;;  %s2832_s11 = sphi %s2946_s11, %s3509_s11  }
  0x10   : > { %s273_s15 = sshll.u32 %s2846_s8, 4  ;;  %p2084_p0 = scmp.ge.s32.totalorder %s2844_s14, 1  ;;  %s2972_s15 = int_to_ptr.vmem [resolvable:$true] %s273_s15 }
  0x11   : > { %p3475_p1 = scmp.eq.s32.totalorder %s2967_s16, 0  ;;  %p261_p2 = scmp.lt.s32.totalorder %s2844_s14, 3 }
  0x12   : > { %s2847_s18 = smov [#allocation9]   ;;  %s2848_s21 = smov [#allocation11]  }
  0x13   : > { %p2974_p3 = pnand %p2084_p0, %p261_p2  ;;  %s286_s19 = sshll.u32 %s2847_s18, 4  ;;  %s2987_s19 = int_to_ptr.vmem [resolvable:$true] %s286_s19 }
  0x14   : > { %s299_s22 = sshll.u32 %s2848_s21, 4  ;;  %s3485_s2 = sld [smem:[#allocation22_spill]]  ;;  %s2989_s22 = int_to_ptr.vmem [resolvable:$true] %s299_s22 }
  0x15   : > { %s3483_s17 = scalar_select %p2974_p3, 1, 0 }
  0x16   : > { %p2371_p5 = pneg %p2974_p3 }
  0x18   : > { %p2983_p6 = pnand %p2371_p5, %p3475_p1 }
  0x1a   : > { %s2590_s25 = scalar_lea.hbm %s3485_s2, 256  ;;  %p2999_p8 = pneg %p2983_p6 }
  0x1b   : > { %p2591_p7 = scmp.ne.s32.totalorder %s3485_s2, %s2590_s25  ;;  %p2597_p11 = scmp.lt.u32.totalorder %s2590_s25, %s3485_s2 }
  0x1d   : > { %p2593_p9 = pnand %p2999_p8, %p2591_p7 }
  0x1f   : > { %p2594_p10 = pneg %p2593_p9 }
  0x21   : > { %p2599_p12 = pnand %p2597_p11, %p2594_p10 }
  0x23   : > { %2602 = shalt.err (!%p2599_p12)
}
  0x24   : > { %s2603_s10 = scalar_lea.vmem %s2972_s15, 256  ;;  %p2611_p5 = scmp.lt.s32.totalorder %s2972_s15, %s2972_s15 }
  0x25   : > { %p2604_p13 = scmp.ne.s32.totalorder %s2972_s15, %s2603_s10  ;;  %p2612_p4 = scmp.lt.s32.totalorder %s2603_s10, %s2603_s10 }
  0x27   : > { %p2606_p0 = pnand %p2604_p13, %p2999_p8  ;;  %p2613_p7 = por %p2612_p4, %p2611_p5 }
  0x29   : > { %p2607_p2 = pneg %p2606_p0 }
  0x2b   : > { %p2614_p9 = pnand %p2613_p7, %p2607_p2 }
  0x2d   : > { %2617 = shalt.err (!%p2614_p9)
}
  0x2e   : > { %s2849_s8 = smov 64   ;;  %s2850_s18 = smov 4  }
  0x2f   : > { %2374 = dma.hbm_to_vmem [thread:$0]  (!%p2983_p6), %s3485_s2, 256, %s2972_s15, [#allocation7], %s2849_s8, %s2849_s8, %s2850_s18  }
  0x30   : > { %s3487_s3 = sld [smem:[#allocation23_spill]] }
  0x36   : > { %s2618_s26 = scalar_lea.hbm %s3487_s3, 256 }
  0x37   : > { %p2619_p4 = scmp.ne.s32.totalorder %s3487_s3, %s2618_s26  ;;  %p2625_p12 = scmp.lt.u32.totalorder %s2618_s26, %s3487_s3 }
  0x39   : > { %p2621_p10 = pnand %p2619_p4, %p2999_p8 }
  0x3b   : > { %p2622_p11 = pneg %p2621_p10 }
  0x3d   : > { %p2627_p13 = pnand %p2625_p12, %p2622_p11 }
  0x3f   : > { %2630 = shalt.err (!%p2627_p13)
}
  0x40   : > { %s2631_s15 = scalar_lea.vmem %s2987_s19, 256  ;;  %p2639_p7 = scmp.lt.s32.totalorder %s2987_s19, %s2987_s19 }
  0x41   : > { %p2632_p0 = scmp.ne.s32.totalorder %s2987_s19, %s2631_s15  ;;  %p2640_p9 = scmp.lt.s32.totalorder %s2631_s15, %s2631_s15 }
  0x43   : > { %p2634_p2 = pnand %p2632_p0, %p2999_p8  ;;  %p2641_p4 = por %p2640_p9, %p2639_p7 }
  0x45   : > { %p2635_p5 = pneg %p2634_p2 }
  0x47   : > { %p2642_p10 = pnand %p2641_p4, %p2635_p5 }
  0x49   : > { %2645 = shalt.err (!%p2642_p10)
}
  0x4a   : > { %2377 = dma.hbm_to_vmem [thread:$0]  (!%p2983_p6), %s3487_s3, 256, %s2987_s19, [#allocation10], %s2849_s8, %s2849_s8, %s2850_s18  }
  0x4b   : > { %s3488_s4 = sld [smem:[#allocation24_spill]] }
  0x51   : > { %s2646_s26 = scalar_lea.hbm %s3488_s4, 8192 }
  0x52   : > { %p2647_p11 = scmp.ne.s32.totalorder %s3488_s4, %s2646_s26  ;;  %p2653_p0 = scmp.lt.u32.totalorder %s2646_s26, %s3488_s4 }
  0x54   : > { %p2649_p12 = pnand %p2647_p11, %p2999_p8 }
  0x56   : > { %p2650_p13 = pneg %p2649_p12 }
  0x58   : > { %p2655_p2 = pnand %p2653_p0, %p2650_p13 }
  0x5a   : > { %2658 = shalt.err (!%p2655_p2)
}
  0x5b   : > { %s2659_s19 = scalar_lea.vmem %s2989_s22, 8192  ;;  %p2667_p4 = scmp.lt.s32.totalorder %s2989_s22, %s2989_s22 }
  0x5c   : > { %p2660_p5 = scmp.ne.s32.totalorder %s2989_s22, %s2659_s19  ;;  %p2668_p10 = scmp.lt.s32.totalorder %s2659_s19, %s2659_s19 }
  0x5e   : > { %p2662_p7 = pnand %p2660_p5, %p2999_p8  ;;  %p2669_p11 = por %p2668_p10, %p2667_p4 }
  0x60   : > { %p2663_p9 = pneg %p2662_p7 }
  0x62   : > { %p2670_p12 = pnand %p2669_p11, %p2663_p9 }
  0x64   : > { %2673 = shalt.err (!%p2670_p12)
}
  0x65   : > { %2380 = dma.hbm_to_vmem [thread:$0]  (!%p2983_p6), %s3488_s4, 8192, %s2989_s22, [#allocation10], %s2849_s8, %s2849_s8, %s2850_s18  }
  0x66   : > { %s2851_s23 = smov [#allocation12]   ;;  %s3489_s6 = sld [smem:[#allocation25_spill]] }
  0x67   : > { %s315_s24 = sshll.u32 %s2851_s23, 4  ;;  %s316_s24 = int_to_ptr.vmem [resolvable:$true] %s315_s24 }
  0x6c   : > { %s2674_s27 = scalar_lea.hbm %s3489_s6, 1024 }
  0x6d   : > { %p2675_p13 = scmp.ne.s32.totalorder %s3489_s6, %s2674_s27  ;;  %p2681_p5 = scmp.lt.u32.totalorder %s2674_s27, %s3489_s6 }
  0x6f   : > { %p2677_p0 = pnand %p2675_p13, %p2999_p8 }
  0x71   : > { %p2678_p2 = pneg %p2677_p0 }
  0x73   : > { %p2683_p7 = pnand %p2681_p5, %p2678_p2 }
  0x75   : > { %2686 = shalt.err (!%p2683_p7)
}
  0x76   : > { %s2687_s22 = scalar_lea.vmem %s316_s24, 1024  ;;  %p2695_p11 = scmp.lt.s32.totalorder %s316_s24, %s316_s24 }
  0x77   : > { %p2688_p9 = scmp.ne.s32.totalorder %s316_s24, %s2687_s22  ;;  %p2696_p12 = scmp.lt.s32.totalorder %s2687_s22, %s2687_s22 }
  0x79   : > { %p2690_p4 = pnand %p2688_p9, %p2999_p8  ;;  %p2697_p1 = por %p2696_p12, %p2695_p11 }
  0x7b   : > { %p2691_p10 = pneg %p2690_p4 }
  0x7d   : > { %p2698_p3 = pnand %p2697_p1, %p2691_p10 }
  0x7f   : > { %2701 = shalt.err (!%p2698_p3)
}
  0x80   : > { %2383 = dma.hbm_to_vmem [thread:$0]  (!%p2983_p6), %s3489_s6, 1024, %s316_s24, [#allocation13], %s2849_s8, %s2849_s8, %s2850_s18  }
  0x81   : > { %s2083_s20 = sadd.s32 4294967294, %s2844_s14   ;;  %s3098_s28 = sadd.s32 1, %s2844_s14  }
  0x82   : > { %s35_s23 = ssub.s32 %s2844_s14, %s3098_s28  ;;  %s38_s25 = sadd.s32 1, %s2840_s13 }
  0x83   : > { %p36_p1 = scmp.eq.s32.totalorder %s35_s23, 0  ;;  %p45_p3 = scmp.ne.s32.totalorder %s2840_s13, %s2836_s12 }
  0x84   : > { %p46_p8 = scmp.eq.s32.totalorder %s2844_s14, 0  ;;  %p51_p13 = scmp.ne.s32.totalorder %s2836_s12, %s2832_s11 }
  0x85   : > { %s3109_s26 = scalar_select %p36_p1, %s2840_s13, %s38_s25  }
  0x86   : > { %p3111_p0 = por %p46_p8, %p45_p3  ;;  %p3492_p2 = scmp.eq.s32.totalorder %s2967_s16, 0 }
  0x87   : > { %3490 = sst [smem:[#allocation21_spill]] %s3109_s26  ;;  %p248_p5 = scmp.eq.s32.totalorder %s2967_s16, 1 }
  0x88   : > { %p3117_p6 = por %p3492_p2, %p51_p13  ;;  %p254_p7 = scmp.eq.s32.totalorder %s2083_s20, 1 }
  0x89   : > { %p2399_p9 = scmp.lt.s32.totalorder %s2844_s14, 2  ;;  %s335_s18 = sand.u32 1, %s2840_s13  }
  0x8a   : > { %s3493_s8 = scalar_select %p3117_p6, 1, 0 }
  0x8b   : > { %p3124_p4 = por %p248_p5, %p45_p3  ;;  %p3128_p10 = por %p254_p7, %p51_p13 }
  0x8c   : > { %s3132_s30 = sshll.u32 %s335_s18, 2  ;;  %s2091_s10 = sshll.u32 %s2844_s14, 6 }
  0x8d   : > { %s3494_s24 = scalar_select %p3124_p4, 1, 0 }
  0x8e   : > { %s3495_s29 = scalar_select %p3128_p10, 1, 0 }
  0x8f   : > { %s3138_s15 = scalar_lea.hbm %s3465_s0, %s2091_s10  ;;  %s339_s21 = scalar_lea.vmem [#allocation3], %s3132_s30 }
  0x90   : > { %s346_s20 = sshll.u32 %s339_s21, 4  ;;  %p3145_p11 = pnand %p2399_p9, %p3111_p0  ;;  %s3141_s20 = int_to_ptr.vmem [resolvable:$true] %s346_s20 }
  0x91   : > { %s3152_s19 = scalar_lea.hbm %s3466_s1, %s2091_s10  ;;  %s353_s22 = sand.u32 1, %s2844_s14  }
  0x92   : > { %s336_s3 = scalar_lea.sflag [#allocation4], %s335_s18  ;;  %s2702_s4 = scalar_lea.hbm %s3138_s15, 64 }
  0x93   : > { %p2703_p12 = scmp.ne.s32.totalorder %s3138_s15, %s2702_s4  ;;  %p2704_p1 = pneg %p3145_p11 }
  0x94   : > { %s2707_s6 = scalar_lea.hbm %s3465_s0, 128  ;;  %p2708_p13 = scmp.lt.u32.totalorder %s3138_s15, %s3465_s0 }
  0x95   : > { %p2705_p3 = pnand %p2704_p1, %p2703_p12  ;;  %p2709_p0 = scmp.lt.u32.totalorder %s2707_s6, %s2702_s4 }
  0x96   : > { %p2711_p5 = scmp.lt.u32.totalorder %s2702_s4, %s3138_s15 }
  0x97   : > { %p2706_p8 = pneg %p2705_p3  ;;  %p2710_p2 = por %p2709_p0, %p2708_p13 }
  0x99   : > { %p2712_p7 = por %p2711_p5, %p2710_p2 }
  0x9b   : > { %p2713_p9 = pnand %p2712_p7, %p2706_p8 }
  0x9d   : > { %2716 = shalt.err (!%p2713_p9)
}
  0x9e   : > { %s2717_s18 = scalar_lea.vmem %s3141_s20, 64  ;;  %s2852_s10 = smov [#allocation3]  }
  0x9f   : > { %p2718_p12 = scmp.ne.s32.totalorder %s3141_s20, %s2717_s18  ;;  %s2722_s25 = sshll.u32 %s2852_s10, 4  ;;  %s2723_s25 = int_to_ptr.vmem [resolvable:$false] %s2722_s25 }
  0xa0   : > { %s2724_s26 = scalar_lea.vmem %s2723_s25, 128  ;;  %p2725_p4 = scmp.lt.s32.totalorder %s3141_s20, %s2723_s25 }
  0xa1   : > { %p2720_p3 = pnand %p2718_p12, %p2704_p1  ;;  %p2726_p13 = scmp.lt.s32.totalorder %s2724_s26, %s2717_s18 }
  0xa3   : > { %p2721_p10 = pneg %p2720_p3  ;;  %p2727_p0 = por %p2726_p13, %p2725_p4 }
  0xa5   : > { %p2728_p2 = pnand %p2727_p0, %p2721_p10 }
  0xa7   : > { %2731 = shalt.err (!%p2728_p2)
}
  0xa8   : > { %2387 = dma.hbm_to_vmem [thread:$0]  (!%p3145_p11), %s3138_s15, 64, %s3141_s20, %s336_s3  }
  0xa9   : > { %s357_s4 = scalar_lea.vmem [#allocation6], %s3132_s30  ;;  %s354_s27 = scalar_lea.sflag [#allocation7], %s353_s22 }
  0xaa   : > { %s364_s6 = sshll.u32 %s357_s4, 4  ;;  %s2732_s21 = scalar_lea.hbm %s3152_s19, 64  ;;  %s365_s6 = int_to_ptr.vmem [resolvable:$true] %s364_s6 }
  0xab   : > { %p2733_p4 = scmp.ne.s32.totalorder %s3152_s19, %s2732_s21  ;;  %s2737_s10 = scalar_lea.hbm %s3466_s1, 128 }
  0xac   : > { %p2738_p5 = scmp.lt.u32.totalorder %s3152_s19, %s3466_s1  ;;  %p2739_p7 = scmp.lt.u32.totalorder %s2737_s10, %s2732_s21 }
  0xad   : > { %p2735_p10 = pnand %p2733_p4, %p2704_p1  ;;  %p2741_p12 = scmp.lt.u32.totalorder %s2732_s21, %s3152_s19 }
  0xae   : > { %p2740_p9 = por %p2739_p7, %p2738_p5 }
  0xaf   : > { %p2736_p8 = pneg %p2735_p10 }
  0xb0   : > { %p2742_p3 = por %p2741_p12, %p2740_p9 }
  0xb2   : > { %p2743_p13 = pnand %p2742_p3, %p2736_p8 }
  0xb4   : > { %2746 = shalt.err (!%p2743_p13)
}
  0xb5   : > { %s2747_s3 = scalar_lea.vmem %s365_s6, 64  ;;  %s2853_s30 = smov [#allocation6]  }
  0xb6   : > { %p2748_p0 = scmp.ne.s32.totalorder %s365_s6, %s2747_s3  ;;  %s2752_s15 = sshll.u32 %s2853_s30, 4  ;;  %s2753_s15 = int_to_ptr.vmem [resolvable:$false] %s2752_s15 }
  0xb7   : > { %s2754_s20 = scalar_lea.vmem %s2753_s15, 128  ;;  %p2755_p10 = scmp.lt.s32.totalorder %s365_s6, %s2753_s15 }
  0xb8   : > { %p2750_p2 = pnand %p2748_p0, %p2704_p1  ;;  %p2756_p6 = scmp.lt.s32.totalorder %s2754_s20, %s2747_s3 }
  0xba   : > { %p2751_p4 = pneg %p2750_p2  ;;  %p2757_p5 = por %p2756_p6, %p2755_p10 }
  0xbc   : > { %p2758_p7 = pnand %p2757_p5, %p2751_p4 }
  0xbe   : > { %2761 = shalt.err (!%p2758_p7)
}
  0xbf   : > { %2390 = dma.hbm_to_vmem [thread:$0]  (!%p3145_p11), %s3152_s19, 64, %s365_s6, %s354_s27  }
  0xc0   : > { %p3497_p8 = scmp.ne.s32.totalorder %s3483_s17, 0 }
  0xc1   : > { %s3205_s22 = sand.u32 (!%p3497_p8), 1, %s2836_s12   ;;  %p3498_p1 = scmp.ne.s32.totalorder (!%p3497_p8), %s3493_s8, 0 }
  0xc2   : > { %373 = sbr.rel (%p3497_p8) target bundleno = 992 (0x3e0), region = 56  ;;  %s2095_s4 = sshll.u32 (!%p3497_p8), %s3205_s22, 2 }
  0xc3   : > { %s376_s21 = scalar_lea.sflag (!%p3497_p8), [#allocation4], %s3205_s22  ;;  %s379_s2 = scalar_lea.vmem (!%p3497_p8), [#allocation3], %s2095_s4 }
  0xc9   : > { %2807 = dma.done.wait (%p3498_p1), %s376_s21, 64  }
  0xca   : > { %2809 = vsyncadd (%p3498_p1), %s376_s21, 4294967232  ;;  %s384_s23 = sand.u32 1, %s2967_s16   ;;  %s3214_s17 = scalar_lea.vmem [#allocation6], %s2095_s4 }
  0xcb   : > { %s385_s19 = scalar_lea.sflag [#allocation7], %s384_s23 }
  0xcc   : > { %2811 = dma.done.wait (%p3498_p1), %s385_s19, 64  }
  0xcd   : > { %2813 = vsyncadd (%p3498_p1), %s385_s19, 4294967232  ;;  %p3499_p6 = scmp.eq.s32.totalorder %s2967_s16, 0 }
  0xcf   : > { %2815 = dma.done.wait (%p3499_p6), [#allocation7], 256   ;;  %p3500_p11 = pmov %p3499_p6 }
  0xd0   : > { %p3501_p9 = pmov %p3499_p6 }
  0xd1   : > { %2817 = vsyncadd (%p3500_p11), [#allocation7], 4294967040 }
  0xd2   : > { %2819 = dma.done.wait (%p3501_p9), [#allocation10], 8448   ;;  %p3502_p12 = pmov %p3499_p6 }
  0xd3   : > { %p3503_p3 = pmov %p3499_p6 }
  0xd4   : > { %2821 = vsyncadd (%p3502_p12), [#allocation10], 4294958848 }
  0xd5   : > { %2823 = dma.done.wait (%p3503_p3), [#allocation13], 1024   ;;  %p3504_p13 = pmov %p3503_p3 }
  0xd6   : > { %v2854_v0 = vmov 6   ;;  %v2855_v1 = vmov 5   ;;  %v3232_v2 = vld [vmem:[%s379_s2] sm:$0xf]  ;;  %v2856_v3 = vmov 2   ;;  %v2857_v4 = vmov 1  }
  0xd7   : > { %2825 = vsyncadd (%p3504_p13), [#allocation13], 4294966272  ;;  %2483 = vset.pattern.permute.xlu1 %v2854_v0  ;;  %2481 = vset.pattern.permute.xlu0 %v2855_v1  ;;  %v2858_v5 = vmov 7   ;;  %v2859_v6 = vmov 13   ;;  %v2860_v7 = vmov 3   ;;  %v2861_v8 = vmov 14  }
  0xd8   : > { %647 = vperm.xlu1 %2483, %v3232_v2   ;;  %635 = vperm.xlu0 %2481, %v3232_v2   ;;  %v2862_v9 = vmov 9   ;;  %v2863_v10 = vmov 11   ;;  %v2864_v11 = vmov 10   ;;  %v2865_v12 = vmov 22   ;;  %v2514_v28 = vld [vmem:[#allocation11 + $0x40] sm:$0xff]   ;;  %v2515_v29 = vld [vmem:[#allocation9] sm:$0xff]  }
  0xd9   : > { %v2866_v13 = vmov 15   ;;  %v2867_v14 = vmov 29   ;;  %v2868_v15 = vmov 21   ;;  %v2869_v16 = vmov 30   ;;  %v2516_v30 = vld [vmem:[#allocation11] sm:$0xff]   ;;  %2216 = vmatprep.subr.bf16.mxu0 %v2514_v28  ;;  %v2517_v33 = vld [vmem:[#allocation11 + $0x48] sm:$0xff]  }
  0xda   : > { %v2870_v17 = vmov 17   ;;  %v2871_v18 = vmov 27   ;;  %v2872_v19 = vmov 18   ;;  %v2873_v20 = vmov 12   ;;  %2217 = vmatpush3.bf16.msra.mxu0 %v2516_v30  ;;  %v2518_v34 = vld [vmem:[#allocation9 + $0x8] sm:$0xff]   ;;  %v2519_v35 = vld [vmem:[#allocation11 + $0x8] sm:$0xff]  }
  0xdb   : > { %v2874_v21 = vmov 23   ;;  %v2875_v22 = vmov 16   ;;  %v2876_v23 = vmov 19   ;;  %v2877_v24 = vmov 25   ;;  %2218 = vmatprep.subr.bf16.mxu0 %v2517_v33  ;;  %v2520_v37 = vld [vmem:[#allocation11 + $0x50] sm:$0xff]   ;;  %v2521_v38 = vld [vmem:[#allocation8] sm:$0xff]  }
  0xdc   : > { %2484 = vset.pattern.permute.xlu1 %v2856_v3  ;;  %2482 = vset.pattern.permute.xlu0 %v2857_v4  ;;  %v2878_v25 = vmov 26   ;;  %v2879_v26 = vmov 31   ;;  %v2880_v27 = vmov 4   ;;  %v2881_v31 = vmov 0.0   ;;  %v2522_v39 = vld [vmem:[#allocation11 + $0x10] sm:$0xff]   ;;  %v2523_v42 = vld [vmem:[#allocation11 + $0x58] sm:$0xff]  }
  0xdd   : > { %599 = vperm.xlu1 %2484, %v3232_v2   ;;  %587 = vperm.xlu0 %2482, %v3232_v2   ;;  %v2882_v32 = vmov 0   ;;  %v2883_v36 = vmov 8   ;;  %vm467_vm0 = vcmask 261120   ;;  %vm2884_vm1 = vmmov 0   ;;  %v3269_v41 = vld [vmem:[%s3214_s17] sm:$0xf] }
  0xde   : > { %2313 = vmatprep.subr.bf16.mxu1 %v2881_v31  ;;  %2219 = vmatpush3.bf16.msra.mxu0 %v2519_v35  ;;  %v2885_v40 = vmov 20   ;;  %v2524_v43 = vld [vmem:[#allocation8 + $0x8] sm:$0xff]   ;;  %v2525_v44 = vld [vmem:[#allocation11 + $0x18] sm:$0xff]   ;;  %v2886_v45 = vmov 28   ;;  %v2887_v46 = vmov 839922192   ;;  %v581_v48 = vlaneseq }
  0xdf   : > { %2314 = vmatpush3.bf16.msra.mxu1 %v2515_v29  ;;  %2317 = vmatprep.mubr.msk.bf16.mxu1 %vm2884_vm1, %v2881_v31  ;;  %v579_v47 = vunpack.c.l.s4 %v2887_v46  ;;  %v2526_v49 = vld [vmem:[#allocation11 + $0x60] sm:$0xff]   ;;  %v2530_v55 = vld [vmem:[#allocation11 + $0x68] sm:$0xff]   ;;  %v2534_v60 = vld [vmem:[#allocation11 + $0x70] sm:$0xff]   ;;  %s2888_s8 = smov 32   ;;  %s2889_s6 = smov 64   ;;  %vm703_vm2 = vcmask 523264  }
  0xe0   : > { %2315 = vmatprep.subr.bf16.mxu1 %v2881_v31  ;;  %2220 = vmatprep.subr.bf16.mxu0 %v2520_v37  ;;  %v2527_v50 = vld [vmem:[#allocation11 + $0xc0] sm:$0xff]   ;;  %v582_v52 = vshrl.u32 %v581_v48, 7  ;;  %v2531_v56 = vld [vmem:[#allocation11 + $0xc8] sm:$0xff]   ;;  %v2535_v63 = vld [vmem:[#allocation11 + $0xd0] sm:$0xff]   ;;  %s2890_s27 = smov 96   ;;  %vm706_vm3 = vcmask 785408  }
  0xe1   : > { %2485 = vset.pattern.permute.xlu1 %v2858_v5  ;;  %2486 = vset.pattern.permute.xlu0 %v2859_v6  ;;  %v580_v51 = vunpack.c.0.s8 %v579_v47  ;;  %v2528_v53 = vld [vmem:[#allocation11 + $0x20] sm:$0xff]   ;;  %v2532_v58 = vld [vmem:[#allocation11 + $0x28] sm:$0xff]   ;;  %v2536_v3 = vld [vmem:[#allocation11 + $0x30] sm:$0xff]   ;;  %s1820_s25 = sld [smem:[#allocation2]]  ;;  %s2101_s26 = sshll.u32 %s3205_s22, 3 }
  0xe2   : > { %659 = vperm.xlu1 %2485, %v3232_v2   ;;  %948 = vperm.xlu0 %2486, %v3232_v2   ;;  %v2529_v54 = vld [vmem:[#allocation11 + $0x80] sm:$0xff]   ;;  %v2533_v59 = vld [vmem:[#allocation11 + $0x88] sm:$0xff]   ;;  %v2537_v4 = vld [vmem:[#allocation11 + $0x90] sm:$0xff]   ;;  %s2207_s15 = sshll.u32 %s2967_s16, 7  ;;  %s443_s20 = scalar_lea.vmem [#allocation14], %s2101_s26 }
  0xe3   : > { %2316 = vmatpush3.bf16.msra.mxu1 %v2518_v34  ;;  %2221 = vmatpush3.bf16.msra.mxu0 %v2522_v39  ;;  %v3279_v57 = vsub.s32 %v580_v51, %v582_v52  ;;  %v2538_v6 = vld [vmem:[#allocation11 + $0x78] sm:$0xff]   ;;  %v2545_v30 = vld [vmem:[#allocation11 + $0xa8] sm:$0xff]   ;;  %v2546_v39 = vld [vmem:[#allocation11 + $0xf0] sm:$0xff]   ;;  %s1952_s4 = sshll.u32 %s443_s20, 4  ;;  %s3421_s23 = scalar_lea.hbm %s3474_s9, %s2207_s15  ;;  %s3423_s4 = int_to_ptr.vmem [resolvable:$true] %s1952_s4 }
  0xe4   : > { %2321 = vmatprep.subr.bf16.mxu1 %v2881_v31  ;;  %2222 = vmatprep.subr.bf16.mxu0 %v2523_v42  ;;  %v2548_v46 = vld [vmem:[#allocation11 + $0xf8] sm:$0xff]   ;;  %v2550_v52 = vld [vmem:[#allocation11 + $0x140] sm:$0xff]   ;;  %s1939_s19 = scalar_lea.sflag [#allocation5], %s3205_s22  ;;  %s2762_s16 = scalar_lea.vmem %s3423_s4, 128 }
  0xe5   : > { %p2763_p0 = scmp.ne.s32.totalorder %s3423_s4, %s2762_s16  ;;  %p3505_p2 = scmp.ne.s32.totalorder %s3494_s24, 0 }
  0xe6   : > { %2487 = vset.pattern.permute.xlu1 %v2860_v7  ;;  %2489 = vset.pattern.permute.xlu0 %v2861_v8  ;;  %v2539_v7 = vld [vmem:[#allocation11 + $0xd8] sm:$0xff]   ;;  %s2892_s17 = smov [#allocation14]  }
  0xe7   : > { %611 = vperm.xlu1 %2487, %v3232_v2   ;;  %960 = vperm.xlu0 %2489, %v3232_v2   ;;  %p2764_p4 = pnand %p2763_p0, %p3505_p2 }
  0xe8   : > { %2318 = vmatmul.mubr.msk.bf16.vlgmr.msra.gmra.mrb[0].mxu1 %vm467_vm0, %v3269_v41  ;;  %2223 = vmatpush3.bf16.msra.mxu0 %v2525_v44 }
  0xe9   : > { %2322 = vmatpush3.bf16.msra.mxu1 %v2521_v38  ;;  %2325 = vmatprep.mubr.msk.bf16.mxu1 %vm2884_vm1, %v2881_v31  ;;  %p2765_p10 = pneg %p2764_p4 }
  0xea   : > { %2323 = vmatprep.subr.bf16.mxu1 %v2881_v31  ;;  %2224 = vmatprep.subr.bf16.mxu0 %v2526_v49  ;;  %v2549_v49 = vld [vmem:[#allocation11 + $0xb8] sm:$0xff]  }
  0xeb   : > { %2488 = vset.pattern.permute.xlu1 %v2862_v9  ;;  %2492 = vset.pattern.permute.xlu0 %v2863_v10 }
  0xec   : > { %900 = vperm.xlu1 %2488, %v3232_v2   ;;  %924 = vperm.xlu0 %2492, %v3232_v2  }
  0xed   : > { %2324 = vmatpush3.bf16.msra.mxu1 %v2524_v43  ;;  %2225 = vmatpush3.bf16.msra.mxu0 %v2528_v53 }
  0xee   : > { %2238 = vmatprep.subr.bf16.mxu1 %v2527_v50  ;;  %2226 = vmatprep.subr.bf16.mxu0 %v2530_v55 }
  0xf0   : > { %2490 = vset.pattern.permute.xlu1 %v2864_v11  ;;  %2495 = vset.pattern.permute.xlu0 %v2865_v12  ;;  %v2540_v12 = vld [vmem:[#allocation11 + $0x38] sm:$0xff]  }
  0xf1   : > { %912 = vperm.xlu1 %2490, %v3232_v2   ;;  %1271 = vperm.xlu0 %2495, %v3232_v2  }
  0xf2   : > { %2326 = vmatmul.mubr.msk.bf16.vlgmr.msra.gmra.mrb[4].mxu1 %vm467_vm0, %v3232_v2  ;;  %2227 = vmatpush3.bf16.msra.mxu0 %v2532_v58 }
  0xf3   : > { %2239 = vmatpush3.bf16.msra.mxu1 %v2529_v54  ;;  %2228 = vmatprep.subr.bf16.mxu0 %v2534_v60 }
  0xf4   : > { %2240 = vmatprep.subr.bf16.mxu1 %v2531_v56 }
  0xf5   : > { %2491 = vset.pattern.permute.xlu1 %v2866_v13  ;;  %2498 = vset.pattern.permute.xlu0 %v2867_v14  ;;  %v2541_v13 = vld [vmem:[#allocation11 + $0x98] sm:$0xff]  }
  0xf6   : > { %972 = vperm.xlu1 %2491, %v3232_v2   ;;  %1570 = vperm.xlu0 %2498, %v3232_v2  }
  0xf7   : > { %2241 = vmatpush3.bf16.msra.mxu1 %v2533_v59  ;;  %2229 = vmatpush3.bf16.msra.mxu0 %v2536_v3 }
  0xf8   : > { %2242 = vmatprep.subr.bf16.mxu1 %v2535_v63  ;;  %2230 = vmatprep.subr.bf16.mxu0 %v2538_v6 }
  0xfa   : > { %2493 = vset.pattern.permute.xlu1 %v2868_v15  ;;  %2501 = vset.pattern.permute.xlu0 %v2869_v16 }
  0xfb   : > { %1259 = vperm.xlu1 %2493, %v3232_v2   ;;  %1582 = vperm.xlu0 %2501, %v3232_v2  }
  0xfc   : > { %2243 = vmatpush3.bf16.msra.mxu1 %v2537_v4  ;;  %2231 = vmatpush3.bf16.msra.mxu0 %v2540_v12 }
  0xfd   : > { %2244 = vmatprep.subr.bf16.mxu1 %v2539_v7  ;;  %2260 = vmatprep.subr.bf16.mxu0 %v2550_v52  ;;  %v2558_v7 = vld [vmem:[#allocation11 + $0x1c0] sm:$0xff]  }
  0xff   : > { %2494 = vset.pattern.permute.xlu1 %v2870_v17  ;;  %2504 = vset.pattern.permute.xlu0 %v2871_v18  ;;  %v2542_v17 = vld [vmem:[#allocation11 + $0xe0] sm:$0xff]  }
 0x100   : > { %1211 = vperm.xlu1 %2494, %v3232_v2   ;;  %1546 = vperm.xlu0 %2504, %v3232_v2  }
 0x101   : > { %2245 = vmatpush3.bf16.msra.mxu1 %v2541_v13 }
 0x102   : > { %2246 = vmatprep.subr.bf16.mxu1 %v2542_v17 }
 0x104   : > { %2496 = vset.pattern.permute.xlu1 %v2872_v19  ;;  %2507 = vset.pattern.permute.xlu0 %v2873_v20  ;;  %v2543_v19 = vld [vmem:[#allocation11 + $0xa0] sm:$0xff]  }
 0x105   : > { %1223 = vperm.xlu1 %2496, %v3232_v2   ;;  %936 = vperm.xlu0 %2507, %v3232_v2  }
 0x106   : > { %2247 = vmatpush3.bf16.msra.mxu1 %v2543_v19 }
 0x109   : > { %2497 = vset.pattern.permute.xlu1 %v2874_v21  ;;  %2510 = vset.pattern.permute.xlu0 %v2875_v22 }
 0x10a   : > { %1283 = vperm.xlu1 %2497, %v3232_v2  }
 0x10e   : > { %2499 = vset.pattern.permute.xlu1 %v2876_v23 }
 0x10f   : > { %1235 = vperm.xlu1 %2499, %v3232_v2  }
 0x113   : > { %2500 = vset.pattern.permute.xlu1 %v2877_v24 }
 0x114   : > { %1522 = vperm.xlu1 %2500, %v3232_v2  }
 0x118   : > { %2502 = vset.pattern.permute.xlu1 %v2878_v25 }
 0x119   : > { %1534 = vperm.xlu1 %2502, %v3232_v2  }
 0x11d   : > { %2503 = vset.pattern.permute.xlu1 %v2879_v26 }
 0x11e   : > { %1594 = vperm.xlu1 %2503, %v3232_v2  }
 0x122   : > { %2505 = vset.pattern.permute.xlu1 %v2880_v27  ;;  %v2544_v27 = vld [vmem:[#allocation11 + $0xe8] sm:$0xff]  }
 0x123   : > { %623 = vperm.xlu1 %2505, %v3232_v2   ;;  %2248 = vmatprep.subr.bf16.mxu1 %v2544_v27 }
 0x124   : > { %2249 = vmatpush3.bf16.msra.mxu1 %v2545_v30 }
 0x125   : > { %2250 = vmatprep.subr.bf16.mxu1 %v2546_v39 }
 0x127   : > { %2506 = vset.pattern.permute.xlu1 %v2882_v32 }
 0x128   : > { %575 = vperm.xlu1 %2506, %v3232_v2  }
 0x12c   : > { %2508 = vset.pattern.permute.xlu1 %v2883_v36 }
 0x12d   : > { %888 = vperm.xlu1 %2508, %v3232_v2  }
 0x131   : > { %2509 = vset.pattern.permute.xlu1 %v2885_v40  ;;  %v2547_v40 = vld [vmem:[#allocation11 + $0xb0] sm:$0xff]  }
 0x132   : > { %1247 = vperm.xlu1 %2509, %v3232_v2   ;;  %2251 = vmatpush3.bf16.msra.mxu1 %v2547_v40 }
 0x133   : > { %2252 = vmatprep.subr.bf16.mxu1 %v2548_v46 }
 0x136   : > { %2511 = vset.pattern.permute.xlu1 %v2886_v45  ;;  %2253 = vmatpush3.bf16.msra.mxu1 %v2549_v49 }
 0x137   : > { %2282 = vmatprep.subr.bf16.mxu1 %v2558_v7 }
 0x157   : > { %v648_v61 = vpop.permute.xlu1 %647  ;;  %v636_v62 = vpop.permute.xlu0 %635 }
 0x158   : > { %v656_v0 = vrot.slane %v648_v61, %v3279_v57  ;;  %v644_v1 = vrot.slane %v636_v62, %v3279_v57 }
 0x15a   : > { %v645_v5 = vmul.bf16 %v644_v1, %v3269_v41  ;;  %v657_v8 = vmul.bf16 %v656_v0, %v3269_v41 }
 0x15c   : > { %v2112_v9 = vcombine.low %v645_v5, %v645_v5  ;;  %v600_v10 = vpop.permute.xlu1 %599  ;;  %v588_v11 = vpop.permute.xlu0 %587  ;;  %v2113_v18 = vcombine.low %v657_v8, %v657_v8 }
 0x15d   : > { %v608_v14 = vrot.slane %v600_v10, %v3279_v57  ;;  %v596_v15 = vrot.slane %v588_v11, %v3279_v57 }
 0x15e   : > { %688 = vrot.lane.b32.xlu1 %v2112_v9, %s2888_s8 }
 0x15f   : > { %v597_v16 = vmul.bf16 %v596_v15, %v3269_v41  ;;  %v609_v20 = vmul.bf16 %v608_v14, %v3269_v41 }
 0x161   : > { %v2109_v21 = vcombine.low %v597_v16, %v597_v16  ;;  %v660_v22 = vpop.permute.xlu1 %659  ;;  %v949_v23 = vpop.permute.xlu0 %948  ;;  %v2110_v32 = vcombine.low %v609_v20, %v609_v20  ;;  %v2891_v16 = vmov 24  }
 0x162   : > { %v668_v24 = vrot.slane %v660_v22, %v3279_v57  ;;  %693 = vrot.lane.b32.xlu1 %v2113_v18, %s2889_s6  ;;  %v957_v25 = vrot.slane %v949_v23, %v3279_v57 }
 0x163   : > { %673 = vrot.lane.b32.xlu0 %v2109_v21, %s2888_s8 }
 0x164   : > { %v669_v28 = vmul.bf16 %v668_v24, %v3269_v41  ;;  %v958_v29 = vmul.bf16 %v957_v25, %v3269_v41 }
 0x166   : > { %v2114_v33 = vcombine.low %v669_v28, %v669_v28  ;;  %v612_v34 = vpop.permute.xlu1 %611  ;;  %v961_v35 = vpop.permute.xlu0 %960  ;;  %v2134_v37 = vcombine.low %v958_v29, %v958_v29 }
 0x167   : > { %v620_v36 = vrot.slane %v612_v34, %v3279_v57  ;;  %678 = vrot.lane.b32.xlu0 %v2110_v32, %s2889_s6  ;;  %v969_v38 = vrot.slane %v961_v35, %v3279_v57 }
 0x168   : > { %698 = vrot.lane.b32.xlu1 %v2114_v33, %s2890_s27 }
 0x169   : > { %v621_v42 = vmul.bf16 %v620_v36, %v3269_v41  ;;  %v970_v43 = vmul.bf16 %v969_v38, %v3269_v41 }
 0x16b   : > { %v2111_v44 = vcombine.low %v621_v42, %v621_v42  ;;  %v901_v45 = vpop.permute.xlu1 %900  ;;  %1001 = vrot.lane.b32.xlu0 %v2134_v37, %s2888_s8  ;;  %v925_v48 = vpop.permute.xlu0 %924  ;;  %v2135_v50 = vcombine.low %v970_v43, %v970_v43 }
 0x16c   : > { %v909_v47 = vrot.slane %v901_v45, %v3279_v57  ;;  %v933_v53 = vrot.slane %v925_v48, %v3279_v57 }
 0x16d   : > { %683 = vrot.lane.b32.xlu1 %v2111_v44, %s2890_s27 }
 0x16e   : > { %v910_v51 = vmul.bf16 %v909_v47, %v3269_v41  ;;  %v934_v59 = vmul.bf16 %v933_v53, %v3269_v41 }
 0x170   : > { %v2131_v54 = vcombine.low %v910_v51, %v910_v51  ;;  %v913_v55 = vpop.permute.xlu1 %912  ;;  %v2133_v63 = vcombine.low %v934_v59, %v934_v59  ;;  %v1272_v1 = vpop.permute.xlu0 %1271 }
 0x171   : > { %v921_v56 = vrot.slane %v913_v55, %v3279_v57  ;;  %1006 = vrot.lane.b32.xlu1 %v2135_v50, %s2889_s6  ;;  %v1280_v6 = vrot.slane %v1272_v1, %v3279_v57 }
 0x172   : > { %986 = vrot.lane.b32.xlu0 %v2131_v54, %s2888_s8 }
 0x173   : > { %v922_v58 = vmul.bf16 %v921_v56, %v3269_v41  ;;  %v1281_v11 = vmul.bf16 %v1280_v6, %v3269_v41 }
 0x175   : > { %v2132_v60 = vcombine.low %v922_v58, %v922_v58  ;;  %v973_v61 = vpop.permute.xlu1 %972  ;;  %v1571_v14 = vpop.permute.xlu0 %1570  ;;  %v2157_v15 = vcombine.low %v1281_v11, %v1281_v11  ;;  %v2551_v11 = vld [vmem:[#allocation11 + $0x100] sm:$0xff]  }
 0x176   : > { %v981_v62 = vrot.slane %v973_v61, %v3279_v57  ;;  %v1579_v20 = vrot.slane %v1571_v14, %v3279_v57  ;;  %v2552_v14 = vld [vmem:[#allocation11 + $0x148] sm:$0xff]  }
 0x177   : > { %991 = vrot.lane.b32.xlu0 %v2132_v60, %s2889_s6 }
 0x178   : > { %v982_v0 = vmul.bf16 %v981_v62, %v3269_v41  ;;  %v1580_v24 = vmul.bf16 %v1579_v20, %v3269_v41  ;;  %v2555_v20 = vld [vmem:[#allocation11 + $0x110] sm:$0xff]  }
 0x17a   : > { %v2136_v3 = vcombine.low %v982_v0, %v982_v0  ;;  %v1260_v4 = vpop.permute.xlu1 %1259 }
 0x17b   : > { %996 = vrot.lane.b32.xlu0 %v2133_v63, %s2890_s27  ;;  %v1268_v5 = vrot.slane %v1260_v4, %v3279_v57 }
 0x17c   : > { %1011 = vrot.lane.b32.xlu1 %v2136_v3, %s2890_s27 }
 0x17d   : > { %v1269_v8 = vmul.bf16 %v1268_v5, %v3269_v41 }
 0x17f   : > { %v2156_v9 = vcombine.low %v1269_v8, %v1269_v8  ;;  %1199 = vperm.xlu0 %2510, %v3232_v2   ;;  %v1212_v10 = vpop.permute.xlu1 %1211 }
 0x180   : > { %1558 = vperm.xlu1 %2511, %v3232_v2   ;;  %v1220_v12 = vrot.slane %v1212_v10, %v3279_v57 }
 0x182   : > { %v1221_v13 = vmul.bf16 %v1220_v12, %v3269_v41 }
 0x183   : > { %1312 = vrot.lane.b32.xlu0 %v2156_v9, %s2888_s8 }
 0x184   : > { %2512 = vset.pattern.permute.xlu1 %v2891_v16  ;;  %v1224_v17 = vpop.permute.xlu1 %1223  ;;  %2513 = vset.pattern.permute.xlu0 %v2879_v26  ;;  %v2153_v18 = vcombine.low %v1221_v13, %v1221_v13  ;;  %v1583_v26 = vpop.permute.xlu0 %1582  ;;  %v2553_v16 = vld [vmem:[#allocation11 + $0x108] sm:$0xff]  }
 0x185   : > { %1510 = vperm.xlu1 %2512, %v3232_v2   ;;  %v1232_v19 = vrot.slane %v1224_v17, %v3279_v57  ;;  %v2178_v2 = vcombine.low %v1580_v24, %v1580_v24  ;;  %v1591_v28 = vrot.slane %v1583_v26, %v3279_v57  ;;  %v2557_v26 = vld [vmem:[#allocation11 + $0x118] sm:$0xff]  }
 0x187   : > { %v1233_v21 = vmul.bf16 %v1232_v19, %v3269_v41  ;;  %1317 = vrot.lane.b32.xlu0 %v2157_v15, %s2889_s6  ;;  %v1592_v34 = vmul.bf16 %v1591_v28, %v3269_v41 }
 0x188   : > { %v1547_v38 = vpop.permute.xlu0 %1546 }
 0x189   : > { %v2154_v22 = vcombine.low %v1233_v21, %v1233_v21  ;;  %1297 = vrot.lane.b32.xlu1 %v2153_v18, %s2888_s8  ;;  %v1284_v23 = vpop.permute.xlu1 %1283  ;;  %v2179_v39 = vcombine.low %v1592_v34, %v1592_v34  ;;  %v1555_v42 = vrot.slane %v1547_v38, %v3279_v57  ;;  %v2554_v18 = vld [vmem:[#allocation11 + $0x150] sm:$0xff]   ;;  %v2559_v34 = vld [vmem:[#allocation11 + $0x180] sm:$0xff]   ;;  %v2562_v38 = vld [vmem:[#allocation11 + $0x1c8] sm:$0xff]  }
 0x18a   : > { %v1292_v25 = vrot.slane %v1284_v23, %v3279_v57 }
 0x18b   : > { %v1556_v47 = vmul.bf16 %v1555_v42, %v3269_v41  ;;  %v2563_v42 = vld [vmem:[#allocation11 + $0x188] sm:$0xff]  }
 0x18c   : > { %v1293_v27 = vmul.bf16 %v1292_v25, %v3269_v41  ;;  %v937_v60 = vpop.permute.xlu0 %936 }
 0x18d   : > { %1302 = vrot.lane.b32.xlu1 %v2154_v22, %s2889_s6  ;;  %v2177_v51 = vcombine.low %v1556_v47, %v1556_v47  ;;  %v945_v17 = vrot.slane %v937_v60, %v3279_v57  ;;  %v2556_v22 = vld [vmem:[#allocation11 + $0x158] sm:$0xff]   ;;  %v2569_v47 = vld [vmem:[#allocation11 + $0x130] sm:$0xff]   ;;  %v2577_v60 = vld [vmem:[#allocation11 + $0x1a8] sm:$0xff]  }
 0x18e   : > { %v2158_v29 = vcombine.low %v1293_v27, %v1293_v27  ;;  %v1236_v30 = vpop.permute.xlu1 %1235 }
 0x18f   : > { %v1244_v32 = vrot.slane %v1236_v30, %v3279_v57  ;;  %v946_v21 = vmul.bf16 %v945_v17, %v3269_v41 }
 0x190   : > { %1322 = vrot.lane.b32.xlu0 %v2158_v29, %s2890_s27 }
 0x191   : > { %v1245_v33 = vmul.bf16 %v1244_v32, %v3269_v41  ;;  %1623 = vrot.lane.b32.xlu1 %v2178_v2, %s2888_s8  ;;  %v2560_v2 = vld [vmem:[#allocation11 + $0x160] sm:$0xff]  }
 0x193   : > { %v2155_v35 = vcombine.low %v1245_v33, %v1245_v33  ;;  %v1523_v36 = vpop.permute.xlu1 %1522 }
 0x194   : > { %v1531_v37 = vrot.slane %v1523_v36, %v3279_v57 }
 0x195   : > { %1307 = vrot.lane.b32.xlu0 %v2155_v35, %s2890_s27  ;;  %v2561_v35 = vld [vmem:[#allocation11 + $0x120] sm:$0xff]  }
 0x196   : > { %v1532_v40 = vmul.bf16 %v1531_v37, %v3269_v41 }
 0x198   : > { %v2175_v43 = vcombine.low %v1532_v40, %v1532_v40  ;;  %v1535_v44 = vpop.permute.xlu1 %1534 }
 0x199   : > { %v1543_v45 = vrot.slane %v1535_v44, %v3279_v57  ;;  %1628 = vrot.lane.b32.xlu0 %v2179_v39, %s2889_s6  ;;  %v2564_v39 = vld [vmem:[#allocation11 + $0x168] sm:$0xff]   ;;  %v2566_v44 = vld [vmem:[#allocation11 + $0x1d0] sm:$0xff]  }
 0x19a   : > { %1608 = vrot.lane.b32.xlu1 %v2175_v43, %s2888_s8  ;;  %v2565_v43 = vld [vmem:[#allocation11 + $0x128] sm:$0xff]   ;;  %s2766_s8 = sshll.u32 %s2892_s17, 4  ;;  %s2767_s8 = int_to_ptr.vmem [resolvable:$false] %s2766_s8 }
 0x19b   : > { %v1544_v46 = vmul.bf16 %v1543_v45, %v3269_v41  ;;  %v2568_v45 = vld [vmem:[#allocation11 + $0x170] sm:$0xff]   ;;  %p2769_p5 = scmp.lt.s32.totalorder %s3423_s4, %s2767_s8 }
 0x19d   : > { %v2176_v48 = vcombine.low %v1544_v46, %v1544_v46  ;;  %v1595_v49 = vpop.permute.xlu1 %1594  ;;  %v2567_v46 = vld [vmem:[#allocation11 + $0x190] sm:$0xff]  }
 0x19e   : > { %v1603_v50 = vrot.slane %v1595_v49, %v3279_v57  ;;  %v2572_v49 = vld [vmem:[#allocation11 + $0x178] sm:$0xff]  }
 0x19f   : > { %1613 = vrot.lane.b32.xlu1 %v2176_v48, %s2889_s6  ;;  %v2570_v48 = vld [vmem:[#allocation11 + $0x1d8] sm:$0xff]   ;;  %s2768_s6 = scalar_lea.vmem %s2767_s8, 256 }
 0x1a0   : > { %v1604_v52 = vmul.bf16 %v1603_v50, %v3269_v41  ;;  %v2571_v50 = vld [vmem:[#allocation11 + $0x198] sm:$0xff]   ;;  %p2770_p7 = scmp.lt.s32.totalorder %s2768_s6, %s2762_s16 }
 0x1a2   : > { %v2180_v53 = vcombine.low %v1604_v52, %v1604_v52  ;;  %v624_v54 = vpop.permute.xlu1 %623  ;;  %v2574_v52 = vld [vmem:[#allocation11 + $0x1e0] sm:$0xff]   ;;  %p2771_p8 = por %p2770_p7, %p2769_p5 }
 0x1a3   : > { %1618 = vrot.lane.b32.xlu1 %v2177_v51, %s2890_s27  ;;  %v632_v59 = vrot.slane %v624_v54, %v3279_v57  ;;  %v2573_v51 = vld [vmem:[#allocation11 + $0x138] sm:$0xff]   ;;  %v2575_v54 = vld [vmem:[#allocation11 + $0x1a0] sm:$0xff]  }
 0x1a4   : > { %1633 = vrot.lane.b32.xlu0 %v2180_v53, %s2890_s27  ;;  %p2772_p1 = pnand %p2771_p8, %p2765_p10 }
 0x1a5   : > { %v633_v62 = vmul.bf16 %v632_v59, %v3269_v41 }
 0x1a7   : > { %v576_v55 = vpop.permute.xlu1 %575 }
 0x1a8   : > { %v584_v63 = vrot.slane %v576_v55, %v3279_v57 }
 0x1aa   : > { %v585_v4 = vmul.bf16 %v584_v63, %v3269_v41 }
 0x1ac   : > { %v889_v56 = vpop.permute.xlu1 %888 }
 0x1ad   : > { %v897_v23 = vrot.slane %v889_v56, %v3279_v57  ;;  %v2576_v56 = vld [vmem:[#allocation11 + $0x1e8] sm:$0xff]  }
 0x1af   : > { %v898_v28 = vmul.bf16 %v897_v23, %v3269_v41 }
 0x1b1   : > { %v3357_v58 = vpop.permute.xlu1 %1247 }
 0x1d0   : > { %v689_v61 = vpop.permute.xlu1 %688 }
 0x1d1   : > { %v712_v3 = vsel %vm467_vm0, %v633_v62, %v689_v61  ;;  %v1256_v61 = vrot.slane %v3357_v58, %v3279_v57  ;;  %v2578_v62 = vld [vmem:[#allocation11 + $0x1f0] sm:$0xff]  }
 0x1d4   : > { %v694_v1 = vpop.permute.xlu1 %693 }
 0x1d5   : > { %v674_v0 = vpop.permute.xlu0 %673  ;;  %v714_v5 = vsel %vm703_vm2, %v712_v3, %v694_v1  ;;  %v505_v1 = vpop.f32.mrb[0].mxu1 }
 0x1d6   : > { %v702_v9 = vsel %vm467_vm0, %v585_v4, %v674_v0  ;;  %v2579_v4 = vld [vmem:[#allocation11 + $0x1b0] sm:$0xff]  }
 0x1d9   : > { %v679_v6 = vpop.permute.xlu0 %678 }
 0x1da   : > { %v699_v7 = vpop.permute.xlu1 %698  ;;  %v705_v12 = vsel %vm703_vm2, %v702_v9, %v679_v6  ;;  %v1257_v6 = vmul.bf16 %v1256_v61, %v3269_v41 }
 0x1db   : > { %v716_v8 = vsel %vm706_vm3, %v714_v5, %v699_v7  ;;  %v2319_v5 = vpop.f32.mrb[1].mxu1  ;;  %v2580_v7 = vld [vmem:[#allocation11 + $0x1f8] sm:$0xff]  }
 0x1dc   : > { %878 = vmatprep.mubr.bf16.mxu0 %v716_v8  ;;  %v508_v8 = vpop.f32.mrb[2].mxu1 }
 0x1dd   : > { %v1002_v10 = vpop.permute.xlu0 %1001 }
 0x1de   : > { %v1023_v27 = vsel %vm467_vm0, %v946_v21, %v1002_v10 }
 0x1df   : > { %v684_v13 = vpop.permute.xlu1 %683 }
 0x1e0   : > { %v708_v15 = vsel %vm706_vm3, %v705_v12, %v684_v13 }
 0x1e1   : > { %879 = vmatmul.mubr.bf16.vlgmr.msra.gmra.mrb[0].mxu0 %v708_v15 }
 0x1e2   : > { %2261 = vmatpush3.bf16.msra.mxu0 %v2551_v11  ;;  %v2320_v11 = vpop.f32.mrb[3].mxu1 }
 0x1e3   : > { %2262 = vmatprep.subr.bf16.mxu0 %v2552_v14  ;;  %v1007_v25 = vpop.permute.xlu1 %1006  ;;  %v2581_v14 = vld [vmem:[#allocation11 + $0x1b8] sm:$0xff]   ;;  %v1822_v11 = vstv %s1820_s25 }
 0x1e4   : > { %v987_v19 = vpop.permute.xlu0 %986  ;;  %v1025_v32 = vsel %vm703_vm2, %v1023_v27, %v1007_v25 }
 0x1e5   : > { %v1015_v30 = vsel %vm467_vm0, %v898_v28, %v987_v19 }
 0x1e6   : > { %2263 = vmatpush3.bf16.msra.mxu0 %v2553_v16 }
 0x1e7   : > { %2264 = vmatprep.subr.bf16.mxu0 %v2554_v18 }
 0x1e9   : > { %v992_v24 = vpop.permute.xlu0 %991 }
 0x1ea   : > { %2265 = vmatpush3.bf16.msra.mxu0 %v2555_v20  ;;  %v1017_v36 = vsel %vm703_vm2, %v1015_v30, %v992_v24  ;;  %v560_v20 = vpop.f32.mrb[4].mxu1 }
 0x1eb   : > { %2266 = vmatprep.subr.bf16.mxu0 %v2556_v22  ;;  %v561_v22 = vadd.f32 %v560_v20, %v505_v1  ;;  %v2327_v23 = vpop.f32.mrb[5].mxu1 }
 0x1ec   : > { %v563_v25 = vpop.f32.mrb[6].mxu1 }
 0x1ed   : > { %v997_v29 = vpop.permute.xlu0 %996  ;;  %v2328_v27 = vpop.f32.mrb[7].mxu1 }
 0x1ee   : > { %v1012_v33 = vpop.permute.xlu1 %1011  ;;  %2267 = vmatpush3.bf16.msra.mxu0 %v2557_v26  ;;  %v1019_v40 = vsel %vm706_vm3, %v1017_v36, %v997_v29 }
 0x1ef   : > { %v1027_v37 = vsel %vm706_vm3, %v1025_v32, %v1012_v33  ;;  %2268 = vmatprep.subr.bf16.mxu0 %v2560_v2 }
 0x1f0   : > { %1189 = vmatprep.mubr.bf16.mxu1 %v1027_v37 }
 0x1f1   : > { %1190 = vmatmul.mubr.bf16.vlgmr.msra.gmra.mrb[8].mxu1 %v1019_v40 }
 0x1f2   : > { %2283 = vmatpush3.bf16.msra.mxu1 %v2559_v34  ;;  %2269 = vmatpush3.bf16.msra.mxu0 %v2561_v35 }
 0x1f3   : > { %2284 = vmatprep.subr.bf16.mxu1 %v2562_v38  ;;  %2270 = vmatprep.subr.bf16.mxu0 %v2564_v39 }
 0x1f6   : > { %2285 = vmatpush3.bf16.msra.mxu1 %v2563_v42  ;;  %2271 = vmatpush3.bf16.msra.mxu0 %v2565_v43  ;;  %v2582_v43 = vld [vmem:[#allocation12] sm:$0xff]  }
 0x1f7   : > { %2286 = vmatprep.subr.bf16.mxu1 %v2566_v44  ;;  %2272 = vmatprep.subr.bf16.mxu0 %v2568_v45  ;;  %v2584_v44 = vld [vmem:[#allocation12 + $0x10] sm:$0xff]   ;;  %v2586_v45 = vld [vmem:[#allocation12 + $0x20] sm:$0xff]  }
 0x1fa   : > { %2287 = vmatpush3.bf16.msra.mxu1 %v2567_v46  ;;  %2273 = vmatpush3.bf16.msra.mxu0 %v2569_v47  ;;  %v2587_v46 = vld [vmem:[#allocation12 + $0x28] sm:$0xff]   ;;  %v2588_v47 = vld [vmem:[#allocation12 + $0x30] sm:$0xff]  }
 0x1fb   : > { %2288 = vmatprep.subr.bf16.mxu1 %v2570_v48  ;;  %2274 = vmatprep.subr.bf16.mxu0 %v2572_v49  ;;  %v2589_v48 = vld [vmem:[#allocation12 + $0x38] sm:$0xff]   ;;  %v2108_v49 = vld [vmem:[%s3470_s5] ss:$0 sm:$0xff] }
 0x1fe   : > { %v1200_v53 = vpop.permute.xlu0 %1199  ;;  %2289 = vmatpush3.bf16.msra.mxu1 %v2571_v50  ;;  %2275 = vmatpush3.bf16.msra.mxu0 %v2573_v51 }
 0x1ff   : > { %v1559_v55 = vpop.permute.xlu1 %1558  ;;  %2290 = vmatprep.subr.bf16.mxu1 %v2574_v52  ;;  %2329 = vmatprep.subr.bf16.mxu0 %v2881_v31  ;;  %v1208_v63 = vrot.slane %v1200_v53, %v3279_v57  ;;  %v573_v52 = vadd.f32 %v2108_v49, %v561_v22 }
 0x200   : > { %v1567_v18 = vrot.slane %v1559_v55, %v3279_v57 }
 0x201   : > { %v1209_v9 = vmul.bf16 %v1208_v63, %v3269_v41 }
 0x202   : > { %v1313_v59 = vpop.permute.xlu0 %1312  ;;  %2291 = vmatpush3.bf16.msra.mxu1 %v2575_v54  ;;  %v1568_v2 = vmul.bf16 %v1567_v18, %v3269_v41 }
 0x203   : > { %2292 = vmatprep.subr.bf16.mxu1 %v2576_v56  ;;  %v1334_v58 = vsel %vm467_vm0, %v1257_v6, %v1313_v59 }
 0x204   : > { %v1511_v0 = vpop.permute.xlu1 %1510 }
 0x205   : > { %v1519_v32 = vrot.slane %v1511_v0, %v3279_v57  ;;  %v2583_v57 = vld [vmem:[#allocation12 + $0x8] sm:$0xff]  }
 0x206   : > { %v1318_v3 = vpop.permute.xlu0 %1317  ;;  %2293 = vmatpush3.bf16.msra.mxu1 %v2577_v60 }
 0x207   : > { %2294 = vmatprep.subr.bf16.mxu1 %v2578_v62  ;;  %v1336_v12 = vsel %vm703_vm2, %v1334_v58, %v1318_v3  ;;  %v1520_v37 = vmul.bf16 %v1519_v32, %v3269_v41  ;;  %v2585_v41 = vld [vmem:[#allocation12 + $0x18] sm:$0xff]  }
 0x208   : > { %v1298_v10 = vpop.permute.xlu1 %1297 }
 0x209   : > { %v1326_v16 = vsel %vm467_vm0, %v1209_v9, %v1298_v10 }
 0x20a   : > { %v1323_v13 = vpop.permute.xlu0 %1322  ;;  %2295 = vmatpush3.bf16.msra.mxu1 %v2579_v4 }
 0x20b   : > { %v1338_v15 = vsel %vm706_vm3, %v1336_v12, %v1323_v13  ;;  %2296 = vmatprep.subr.bf16.mxu1 %v2580_v7 }
 0x20c   : > { %v1303_v17 = vpop.permute.xlu1 %1302  ;;  %1500 = vmatprep.mubr.bf16.mxu0 %v1338_v15 }
 0x20d   : > { %v1328_v19 = vsel %vm703_vm2, %v1326_v16, %v1303_v17  ;;  %v2197_v16 = vld [vmem:[%s3472_s7] ss:$0 sm:$0xff] }
 0x20e   : > { %v1308_v21 = vpop.permute.xlu0 %1307  ;;  %2297 = vmatpush3.bf16.msra.mxu1 %v2581_v14 }
 0x20f   : > { %v1330_v24 = vsel %vm706_vm3, %v1328_v19, %v1308_v21 }
 0x210   : > { %v1624_v26 = vpop.permute.xlu1 %1623  ;;  %1501 = vmatmul.mubr.bf16.vlgmr.msra.gmra.mrb[4].mxu0 %v1330_v24 }
 0x211   : > { %2345 = vmatprep.mubr.msk.bf16.mxu0 %vm2884_vm1, %v2881_v31  ;;  %v1645_v29 = vsel %vm467_vm0, %v1568_v2, %v1624_v26  ;;  %2330 = vmatpush3.bf16.msra.mxu0 %v2582_v43 }
 0x212   : > { %v1629_v28 = vpop.permute.xlu0 %1628  ;;  %2331 = vmatprep.subr.bf16.mxu0 %v2881_v31 }
 0x213   : > { %v1647_v33 = vsel %vm703_vm2, %v1645_v29, %v1629_v28 }
 0x214   : > { %v1609_v30 = vpop.permute.xlu1 %1608 }
 0x215   : > { %v1637_v38 = vsel %vm467_vm0, %v1520_v37, %v1609_v30  ;;  %2332 = vmatpush3.bf16.msra.mxu0 %v2583_v57 }
 0x216   : > { %v1634_v34 = vpop.permute.xlu0 %1633  ;;  %2333 = vmatprep.subr.bf16.mxu0 %v2881_v31 }
 0x217   : > { %v1649_v35 = vsel %vm706_vm3, %v1647_v33, %v1634_v34 }
 0x218   : > { %v1614_v36 = vpop.permute.xlu1 %1613  ;;  %1811 = vmatprep.mubr.bf16.mxu1 %v1649_v35 }
 0x219   : > { %v1639_v39 = vsel %vm703_vm2, %v1637_v38, %v1614_v36  ;;  %2334 = vmatpush3.bf16.msra.mxu0 %v2584_v44 }
 0x21a   : > { %2335 = vmatprep.subr.bf16.mxu0 %v2881_v31 }
 0x21c   : > { %v1619_v40 = vpop.permute.xlu1 %1618 }
 0x21d   : > { %v1641_v42 = vsel %vm706_vm3, %v1639_v39, %v1619_v40  ;;  %2336 = vmatpush3.bf16.msra.mxu0 %v2585_v41 }
 0x21e   : > { %1812 = vmatmul.mubr.bf16.vlgmr.msra.gmra.mrb[12].mxu1 %v1641_v42  ;;  %2337 = vmatprep.subr.bf16.mxu0 %v2881_v31 }
 0x221   : > { %2338 = vmatpush3.bf16.msra.mxu0 %v2586_v45 }
 0x222   : > { %2339 = vmatprep.subr.bf16.mxu0 %v2881_v31 }
 0x225   : > { %2340 = vmatpush3.bf16.msra.mxu0 %v2587_v46 }
 0x226   : > { %2341 = vmatprep.subr.bf16.mxu0 %v2881_v31 }
 0x229   : > { %2342 = vmatpush3.bf16.msra.mxu0 %v2588_v47 }
 0x22a   : > { %2343 = vmatprep.subr.bf16.mxu0 %v2881_v31 }
 0x22d   : > { %2344 = vmatpush3.bf16.msra.mxu0 %v2589_v48 }
 0x2b4   : > { %v2232_v50 = vpop.f32.mrb[0].mxu0 }
 0x2b5   : > { %v2233_v51 = vpop.f32.mrb[1].mxu0 }
 0x2b6   : > { %v2234_v53 = vadd.f32 %v2233_v51, %v2232_v50  ;;  %v2235_v54 = vpop.f32.mrb[2].mxu0 }
 0x2b7   : > { %v2236_v55 = vpop.f32.mrb[3].mxu0 }
 0x2b8   : > { %v886_v56 = vadd.f32 %v2234_v53, %v573_v52 }
 0x2c4   : > { %v2254_v59 = vpop.f32.mrb[8].mxu1 }
 0x2c5   : > { %v2255_v60 = vpop.f32.mrb[9].mxu1 }
 0x2c6   : > { %v2256_v61 = vadd.f32 %v2255_v60, %v2254_v59  ;;  %v2257_v62 = vpop.f32.mrb[10].mxu1 }
 0x2c7   : > { %v2258_v63 = vpop.f32.mrb[11].mxu1 }
 0x2c8   : > { %v1197_v0 = vadd.f32 %v2256_v61, %v886_v56 }
 0x2e3   : > { %v2276_v31 = vpop.f32.mrb[4].mxu0 }
 0x2e4   : > { %v2277_v1 = vpop.f32.mrb[5].mxu0 }
 0x2e5   : > { %v2278_v3 = vadd.f32 %v2277_v1, %v2276_v31  ;;  %v2279_v4 = vpop.f32.mrb[6].mxu0 }
 0x2e6   : > { %v2280_v5 = vpop.f32.mrb[7].mxu0 }
 0x2e7   : > { %v1508_v6 = vadd.f32 %v2278_v3, %v1197_v0 }
 0x2f1   : > { %v2298_v7 = vpop.f32.mrb[12].mxu1 }
 0x2f2   : > { %v2299_v8 = vpop.f32.mrb[13].mxu1 }
 0x2f3   : > { %v2300_v9 = vadd.f32 %v2299_v8, %v2298_v7  ;;  %v2301_v10 = vpop.f32.mrb[14].mxu1 }
 0x2f4   : > { %v2302_v58 = vpop.f32.mrb[15].mxu1 }
 0x2f5   : > { %v1819_v12 = vadd.f32 %v2300_v9, %v1508_v6 }
 0x2f7   : > { %vm1821_vm4 = vcmp.ge.f32.partialorder %v1819_v12, 0.0  ;;  %v1823_v13 = vmul.f32 %v1822_v11, %v1819_v12 }
 0x2f9   : > { %v1824_v14 = vsel %vm1821_vm4, %v1819_v12, %v1823_v13 }
 0x2fa   : > { %v1825_v15 = vpack.c.bf16 %v1824_v14, %v1824_v14 }
 0x2fc   : > { %2346 = vmatmul.mubr.bf16.vlgmr.msra.gmra.mrb[8].mxu0 %v1825_v15 }
 0x3cf   : > { %v1931_v17 = vpop.f32.mrb[8].mxu0 }
 0x3d0   : > { %v1932_v18 = vadd.f32 %v2197_v16, %v1931_v17  ;;  %v2347_v19 = vpop.f32.mrb[9].mxu0 }
 0x3d1   : > { %v1934_v20 = vpop.f32.mrb[10].mxu0 }
 0x3d2   : > { %1937 = vst [vmem:[%s443_s20] sm:$0xff] %v1932_v18  ;;  %v2348_v21 = vpop.f32.mrb[11].mxu0 }
 0x3d3   : > { %2775 = shalt.err (!%p2772_p1)
}
 0x3d4   : > { %s2776_s22 = scalar_lea.hbm %s3421_s23, 128  ;;  %s2780_s10 = scalar_lea.hbm %s3474_s9, 256 }
 0x3d5   : > { %p2777_p6 = scmp.ne.s32.totalorder %s3421_s23, %s2776_s22  ;;  %p2781_p12 = scmp.lt.u32.totalorder %s3421_s23, %s3474_s9 }
 0x3d6   : > { %p2782_p3 = scmp.lt.u32.totalorder %s2780_s10, %s2776_s22  ;;  %p2784_p0 = scmp.lt.u32.totalorder %s2776_s22, %s3421_s23 }
 0x3d7   : > { %p2778_p11 = pnand %p2777_p6, %p3505_p2 }
 0x3d8   : > { %p2783_p13 = por %p2782_p3, %p2781_p12 }
 0x3d9   : > { %p2779_p9 = pneg %p2778_p11 }
 0x3da   : > { %p2785_p4 = por %p2784_p0, %p2783_p13 }
 0x3dc   : > { %p2786_p10 = pnand %p2785_p4, %p2779_p9 }
 0x3de   : > { %2789 = shalt.err (!%p2786_p10)
}
 0x3df   : > { %2369 = dma.vmem_to_hbm [thread:$0]  (%p3505_p2), %s3423_s4, 128, %s3421_s23, %s1939_s19  }
 0x3e0 PF: > { %s1964_s3 = sand.u32 1, %s2832_s11   ;;  %p3506_p5 = scmp.ne.s32.totalorder %s3495_s29, 0 }
 0x3e1   : > { %p3507_p7 = scmp.ge.s32.totalorder %s2844_s14, 2  ;;  %s1965_s30 = scalar_lea.sflag [#allocation5], %s1964_s3 }
 0x3e3   : > { %p2392_p8 = pnand %p3507_p7, %p3506_p5 }
 0x3e5   : > { %2827 = dma.done.wait (!%p2392_p8), %s1965_s30, 128  }
 0x3e6   : > { %2829 = vsyncadd (!%p2392_p8), %s1965_s30, 4294967168  ;;  %s3508_s15 = sld [smem:[#allocation21_spill]]  ;;  %p28_p1 = scmp.ge.s32.totalorder %s3098_s28, 4  }
 0x3e7   : > { %s3509_s11 = smov %s2836_s12  ;;  %s3510_s12 = smov %s2840_s13 }
 0x3e8   : > { %s3512_s14 = smov %s3098_s28  ;;  %30 = sbr.rel (!%p28_p1) target bundleno = 15 (0xf), region = 130 }
 0x3ec   : > { %s3511_s13 = smov %s3508_s15 }
 0x3ef   :  { %1970 = vsyncpa [#allocation4], 1 }
 0x3f0   :  { %1972 = vsyncpa [#allocation4 + $0x1], 1 }
 0x3f1   :  { %1973 = vsyncpa [#allocation7], 1 }
 0x3f2   :  { %1975 = vsyncpa [#allocation7 + $0x1], 1 }
 0x3f3   :  { %1976 = vsyncpa [#allocation10], 1 }
 0x3f4   :  { %1977 = vsyncpa [#allocation13], 1 }
 0x3f5   :  { %1978 = vsyncpa [#allocation5], 1 }
 0x3f6   :  { %1980 = vsyncpa [#allocation5 + $0x1], 1 }

</bundles_post_ra>
